<compile_context>
chip_gen: v6e
topology: v6e:2x2x1
jax: 0.10.0
libtpu: 0.0.40
codegen_flags: <defaults>
</compile_context>

<pallas_src>
import functools

import jax
import jax.numpy as jnp
from jax.experimental import pallas as pl
from jax.experimental.pallas import tpu as pltpu

LANE = 128
SUBLANE = 8


def _round_up(n, m):
    return ((n + m - 1) // m) * m


def _pad2(a, rows, cols):
    return jnp.pad(a, ((0, rows - a.shape[0]), (0, cols - a.shape[1])))


def vae_kernel(
    xe_ref,                                   # (TB, Dp+Hp)  packed [x | eps]
    w1_ref, b1_ref, w2_ref, b2_ref,           # encoder
    wmlv_ref, bmlv_ref,                       # fused [mu | log_var] head
    wd1_ref, bd1_ref, wd2_ref, bd2_ref,       # decoder
    out_ref,                                  # (TB, 4*Hp+Dp) packed outputs
    *, dp, hp,
):
    def linear(x, w_ref, b_ref):
        # MXU matmul with f32 accumulation + bias broadcast
        return jnp.dot(x, w_ref[...], preferred_element_type=jnp.float32) + b_ref[...]

    # 128-aligned slices of the input slab -> unmasked loads, no shuffles.
    x = xe_ref[:, :dp]
    eps = xe_ref[:, dp:dp + hp]

    # encoder: Linear(D, D/2) -> ReLU -> Linear(D/2, H) -> ReLU
    h1 = jnp.maximum(linear(x, w1_ref, b1_ref), 0.0)
    encoded = jnp.maximum(linear(h1, w2_ref, b2_ref), 0.0)

    # fused mu / log_var head: one Linear(Hp, 2*Hp); split is 128-aligned.
    mulv = linear(encoded, wmlv_ref, bmlv_ref)
    mu = mulv[:, :hp]
    log_var = mulv[:, hp:]

    # reparameterize: z = mu + eps * exp(0.5 * log_var)   (eps supplied, f32 EUP exp)
    z = mu + eps * jnp.exp(0.5 * log_var)

    # decoder: Linear(H, D/2) -> ReLU -> Linear(D/2, D) -> Sigmoid
    d1 = jnp.maximum(linear(z, wd1_ref, bd1_ref), 0.0)
    decoded = jax.nn.sigmoid(linear(d1, wd2_ref, bd2_ref))

    # Single lane-dense output slab; every offset is a multiple of 128 lanes so
    # all stores are full-vreg unmasked vst (no concat / lane shuffles).
    out_ref[:, 0 * hp:1 * hp] = encoded
    out_ref[:, 1 * hp:3 * hp] = mulv            # [mu | log_var] stored as one chunk
    out_ref[:, 3 * hp:4 * hp] = z
    out_ref[:, 4 * hp:4 * hp + dp] = decoded


def vae_forward(x, eps, params, *, tb=None):
    """Full VAE forward in one Pallas kernel (lane-padded, batch-tiled).

    Returns (encoded, mu, log_var, z, decoded) exactly like the PyTorch module.
    """
    B, D = x.shape
    H = eps.shape[1]
    D2 = params["w1"].shape[1]

    # Lane-padded feature widths (zero padding keeps padded lanes exactly zero
    # through every layer: 0-weights + 0-bias -> ReLU(0)=0, exp(0)*eps(0)=0).
    Dp = _round_up(D, LANE)
    Hp = _round_up(H, LANE)
    D2p = _round_up(D2, LANE)

    # Pad weights / biases once (XLA side, amortized across calls under jit).
    w1 = _pad2(params["w1"], Dp, D2p);   b1 = _pad2(params["b1"], 1, D2p)
    w2 = _pad2(params["w2"], D2p, Hp);   b2 = _pad2(params["b2"], 1, Hp)
    wmu = _pad2(params["wmu"], Hp, Hp);  bmu = _pad2(params["bmu"], 1, Hp)
    wlv = _pad2(params["wlv"], Hp, Hp);  blv = _pad2(params["blv"], 1, Hp)
    wmlv = jnp.concatenate([wmu, wlv], axis=1)     # (Hp, 2*Hp) fused head
    bmlv = jnp.concatenate([bmu, blv], axis=1)     # (1, 2*Hp)
    wd1 = _pad2(params["wd1"], Hp, D2p); bd1 = _pad2(params["bd1"], 1, D2p)
    wd2 = _pad2(params["wd2"], D2p, Dp); bd2 = _pad2(params["bd2"], 1, Dp)

    # Batch tile: as large as reasonable (fewer grid steps), multiple of 8.
    if tb is None:
        tb = min(512, _round_up(B, SUBLANE))
    tb = _round_up(tb, SUBLANE)
    Bp = _round_up(B, tb)

    in_w = Dp + Hp          # packed input slab width
    out_w = 4 * Hp + Dp     # packed output slab width (multiple of 128)

    # One lane-dense input slab [x | eps] -> single DMA stream per grid step.
    xe = jnp.concatenate([_pad2(x, Bp, Dp), _pad2(eps, Bp, Hp)], axis=1)

    grid = (Bp // tb,)
    act_in_spec = pl.BlockSpec((tb, in_w), lambda i: (i, 0))
    out_spec = pl.BlockSpec((tb, out_w), lambda i: (i, 0))

    weight_shapes = [
        (Dp, D2p), (1, D2p),          # w1, b1
        (D2p, Hp), (1, Hp),           # w2, b2
        (Hp, 2 * Hp), (1, 2 * Hp),    # wmlv, bmlv
        (Hp, D2p), (1, D2p),          # wd1, bd1
        (D2p, Dp), (1, Dp),           # wd2, bd2
    ]
    weight_args = (w1, b1, w2, b2, wmlv, bmlv, wd1, bd1, wd2, bd2)

    # VMEM budget from the actual buffers (+ headroom), clamped so it is safe
    # on every generation (<= 48 MiB fits v7x's 64 MiB/TC with margin).
    weights_bytes = 4 * sum(r * c for r, c in weight_shapes)
    act_bytes = 4 * 2 * tb * (in_w + out_w)          # double-buffered act slabs
    vmem_limit = int(min(max(2 * weights_bytes + act_bytes + (8 << 20), 16 << 20),
                         48 << 20))

    cparams = pltpu.CompilerParams(
        # Batch axis is embarrassingly parallel; at production grid sizes on v7x
        # verify both TCs engage (switch to pltpu.CORE_PARALLEL if one is idle).
        dimension_semantics=(pltpu.PARALLEL,),
        vmem_limit_bytes=vmem_limit,
    )
    kern = functools.partial(vae_kernel, dp=Dp, hp=Hp)
    out_shape = jax.ShapeDtypeStruct((Bp, out_w), jnp.float32)

    def resident_spec(shape, single_buffer):
        # Grid-invariant weights: constant index_map keeps them VMEM-resident
        # (DMA'd once); single-buffering halves their VMEM footprint.
        if single_buffer:
            return pl.BlockSpec(shape, lambda i: (0, 0),
                                pipeline_mode=pl.Buffered(1))
        return pl.BlockSpec(shape, lambda i: (0, 0))

    def run(single_buffer_weights):
        in_specs = [act_in_spec] + [
            resident_spec(s, single_buffer_weights) for s in weight_shapes
        ]
        return pl.pallas_call(
            kern,
            grid=grid,
            in_specs=in_specs,
            out_specs=out_spec,
            out_shape=out_shape,
            compiler_params=cparams,
        )(xe, *weight_args)

    try:
        out = run(True)            # single-buffered resident weights
    except Exception:
        out = run(False)           # fallback: default double-buffering

    encoded = out[:B, 0 * Hp:0 * Hp + H]
    mu      = out[:B, 1 * Hp:1 * Hp + H]
    log_var = out[:B, 2 * Hp:2 * Hp + H]
    z       = out[:B, 3 * Hp:3 * Hp + H]
    decoded = out[:B, 4 * Hp:4 * Hp + D]
    return encoded, mu, log_var, z, decoded


def init_params(key, data_length, num_hidden):
    """Deterministic init mimicking nn.Linear default (uniform ±1/sqrt(fan_in))."""
    d2 = data_length // 2
    shapes = {
        "w1": (data_length, d2), "b1": (1, d2),
        "w2": (d2, num_hidden), "b2": (1, num_hidden),
        "wmu": (num_hidden, num_hidden), "bmu": (1, num_hidden),
        "wlv": (num_hidden, num_hidden), "blv": (1, num_hidden),
        "wd1": (num_hidden, d2), "bd1": (1, d2),
        "wd2": (d2, data_length), "bd2": (1, data_length),
    }
    fan_in = {
        "w1": data_length, "b1": data_length,
        "w2": d2, "b2": d2,
        "wmu": num_hidden, "bmu": num_hidden,
        "wlv": num_hidden, "blv": num_hidden,
        "wd1": num_hidden, "bd1": num_hidden,
        "wd2": d2, "bd2": d2,
    }
    params = {}
    keys = jax.random.split(key, len(shapes))
    for k, (name, shape) in zip(keys, sorted(shapes.items())):
        bound = 1.0 / jnp.sqrt(jnp.float32(fan_in[name]))
        params[name] = jax.random.uniform(
            k, shape, jnp.float32, minval=-bound, maxval=bound
        )
    return params


def vae_reference(x, eps, p):
    """Pure-JAX reference of the PyTorch forward, for correctness checking."""
    h1 = jnp.maximum(x @ p["w1"] + p["b1"], 0.0)
    enc = jnp.maximum(h1 @ p["w2"] + p["b2"], 0.0)
    mu = enc @ p["wmu"] + p["bmu"]
    lv = enc @ p["wlv"] + p["blv"]
    z = mu + eps * jnp.exp(0.5 * lv)
    d1 = jnp.maximum(z @ p["wd1"] + p["bd1"], 0.0)
    dec = jax.nn.sigmoid(d1 @ p["wd2"] + p["bd2"])
    return enc, mu, lv, z, dec


if __name__ == "__main__":
    data_length = 32   # config.data_length
    num_hidden = 16    # config.num_hidden
    batch = 200        # non-multiple of 8: exercises batch padding

    root = jax.random.PRNGKey(0)
    k_x, k_eps, k_params = jax.random.split(root, 3)

    x = jax.random.normal(k_x, (batch, data_length), jnp.float32)
    # eps ~ N(0,1), generated outside the kernel (torch.randn_like equivalent)
    eps = jax.random.normal(k_eps, (batch, num_hidden), jnp.float32)
    params = init_params(k_params, data_length, num_hidden)

    # Default tb -> whole padded batch in ONE grid step (weights DMA'd once).
    outs = vae_forward(x, eps, params)
    outs = jax.block_until_ready(outs)

    refs = vae_reference(x, eps, params)
    names = ("encoded", "mu", "log_var", "z", "decoded")
    for name, o, r in zip(names, outs, refs):
        assert o.shape == r.shape and o.dtype == r.dtype, name
        assert jnp.allclose(o, r, atol=1e-5, rtol=1e-5), f"mismatch vs reference: {name}"

    print("KERNEL_OK")
</pallas_src>

<mosaic_0001>
module attributes {stable_mosaic.version = 11 : i64} {
  func.func @vae_kernel(%arg0: i32, %arg1: memref<200x256xf32, #tpu.memory_space<vmem>>, %arg2: memref<128x128xf32, #tpu.memory_space<vmem>>, %arg3: memref<1x128xf32, #tpu.memory_space<vmem>>, %arg4: memref<128x128xf32, #tpu.memory_space<vmem>>, %arg5: memref<1x128xf32, #tpu.memory_space<vmem>>, %arg6: memref<128x256xf32, #tpu.memory_space<vmem>>, %arg7: memref<1x256xf32, #tpu.memory_space<vmem>>, %arg8: memref<128x128xf32, #tpu.memory_space<vmem>>, %arg9: memref<1x128xf32, #tpu.memory_space<vmem>>, %arg10: memref<128x128xf32, #tpu.memory_space<vmem>>, %arg11: memref<1x128xf32, #tpu.memory_space<vmem>>, %arg12: memref<200x640xf32, #tpu.memory_space<vmem>>) attributes {dimension_semantics = [#tpu.dimension_semantics<parallel>], iteration_bounds = array<i64: 1>, scalar_prefetch = 0 : i64, scratch_operands = 0 : i64, tpu.core_type = #tpu.core_type<tc>, window_params = [{transform_indices = @transform_0, window_bounds = array<i64: 200, 256>}, {pipeline_mode = #tpu.pipeline_mode<synchronous>, transform_indices = @transform_1, window_bounds = array<i64: 128, 128>}, {pipeline_mode = #tpu.pipeline_mode<synchronous>, transform_indices = @transform_2, window_bounds = array<i64: 1, 128>}, {pipeline_mode = #tpu.pipeline_mode<synchronous>, transform_indices = @transform_3, window_bounds = array<i64: 128, 128>}, {pipeline_mode = #tpu.pipeline_mode<synchronous>, transform_indices = @transform_4, window_bounds = array<i64: 1, 128>}, {pipeline_mode = #tpu.pipeline_mode<synchronous>, transform_indices = @transform_5, window_bounds = array<i64: 128, 256>}, {pipeline_mode = #tpu.pipeline_mode<synchronous>, transform_indices = @transform_6, window_bounds = array<i64: 1, 256>}, {pipeline_mode = #tpu.pipeline_mode<synchronous>, transform_indices = @transform_7, window_bounds = array<i64: 128, 128>}, {pipeline_mode = #tpu.pipeline_mode<synchronous>, transform_indices = @transform_8, window_bounds = array<i64: 1, 128>}, {pipeline_mode = #tpu.pipeline_mode<synchronous>, transform_indices = @transform_9, window_bounds = array<i64: 128, 128>}, {pipeline_mode = #tpu.pipeline_mode<synchronous>, transform_indices = @transform_10, window_bounds = array<i64: 1, 128>}, {transform_indices = @transform_11, window_bounds = array<i64: 200, 640>}]} {
    %c0 = arith.constant 0 : index
    %c0_0 = arith.constant 0 : index
    %0 = vector.load %arg1[%c0, %c0_0] : memref<200x256xf32, #tpu.memory_space<vmem>>, vector<200x128xf32>
    %c0_1 = arith.constant 0 : index
    %c128 = arith.constant 128 : index
    %1 = vector.load %arg1[%c0_1, %c128] : memref<200x256xf32, #tpu.memory_space<vmem>>, vector<200x128xf32>
    %c0_2 = arith.constant 0 : index
    %c0_3 = arith.constant 0 : index
    %2 = vector.load %arg2[%c0_2, %c0_3] : memref<128x128xf32, #tpu.memory_space<vmem>>, vector<128x128xf32>
    %cst = arith.constant dense<0.000000e+00> : vector<200x128xf32>
    %3 = tpu.matmul %0, %2, %cst {dimension_numbers = #tpu.dot_dimension_numbers<[1], [0], [0], [1], [0, 0, 1, 1], [], []>} : vector<200x128xf32>, vector<128x128xf32>, vector<200x128xf32> -> vector<200x128xf32>
    %c0_4 = arith.constant 0 : index
    %c0_5 = arith.constant 0 : index
    %4 = vector.load %arg3[%c0_4, %c0_5] : memref<1x128xf32, #tpu.memory_space<vmem>>, vector<1x128xf32>
    %5 = vector.broadcast %4 : vector<1x128xf32> to vector<200x128xf32>
    %6 = arith.addf %3, %5 : vector<200x128xf32>
    %cst_6 = arith.constant 0.000000e+00 : f32
    %7 = vector.broadcast %cst_6 : f32 to vector<200x128xf32>
    %8 = arith.maximumf %6, %7 : vector<200x128xf32>
    %c0_7 = arith.constant 0 : index
    %c0_8 = arith.constant 0 : index
    %9 = vector.load %arg4[%c0_7, %c0_8] : memref<128x128xf32, #tpu.memory_space<vmem>>, vector<128x128xf32>
    %cst_9 = arith.constant dense<0.000000e+00> : vector<200x128xf32>
    %10 = tpu.matmul %8, %9, %cst_9 {dimension_numbers = #tpu.dot_dimension_numbers<[1], [0], [0], [1], [0, 0, 1, 1], [], []>} : vector<200x128xf32>, vector<128x128xf32>, vector<200x128xf32> -> vector<200x128xf32>
    %c0_10 = arith.constant 0 : index
    %c0_11 = arith.constant 0 : index
    %11 = vector.load %arg5[%c0_10, %c0_11] : memref<1x128xf32, #tpu.memory_space<vmem>>, vector<1x128xf32>
    %12 = vector.broadcast %11 : vector<1x128xf32> to vector<200x128xf32>
    %13 = arith.addf %10, %12 : vector<200x128xf32>
    %cst_12 = arith.constant 0.000000e+00 : f32
    %14 = vector.broadcast %cst_12 : f32 to vector<200x128xf32>
    %15 = arith.maximumf %13, %14 : vector<200x128xf32>
    %c0_13 = arith.constant 0 : index
    %c0_14 = arith.constant 0 : index
    %16 = vector.load %arg6[%c0_13, %c0_14] : memref<128x256xf32, #tpu.memory_space<vmem>>, vector<128x256xf32>
    %cst_15 = arith.constant dense<0.000000e+00> : vector<200x256xf32>
    %17 = tpu.matmul %15, %16, %cst_15 {dimension_numbers = #tpu.dot_dimension_numbers<[1], [0], [0], [1], [0, 0, 1, 1], [], []>} : vector<200x128xf32>, vector<128x256xf32>, vector<200x256xf32> -> vector<200x256xf32>
    %c0_16 = arith.constant 0 : index
    %c0_17 = arith.constant 0 : index
    %18 = vector.load %arg7[%c0_16, %c0_17] : memref<1x256xf32, #tpu.memory_space<vmem>>, vector<1x256xf32>
    %19 = vector.broadcast %18 : vector<1x256xf32> to vector<200x256xf32>
    %20 = arith.addf %17, %19 : vector<200x256xf32>
    %21 = vector.extract_strided_slice %20 {offsets = [0, 0], sizes = [200, 128], strides = [1, 1]} : vector<200x256xf32> to vector<200x128xf32>
    %22 = vector.extract_strided_slice %20 {offsets = [0, 128], sizes = [200, 128], strides = [1, 1]} : vector<200x256xf32> to vector<200x128xf32>
    %cst_18 = arith.constant 5.000000e-01 : f32
    %23 = vector.broadcast %cst_18 : f32 to vector<200x128xf32>
    %24 = arith.mulf %23, %22 : vector<200x128xf32>
    %25 = math.exp %24 : vector<200x128xf32>
    %26 = arith.mulf %1, %25 : vector<200x128xf32>
    %27 = arith.addf %21, %26 : vector<200x128xf32>
    %c0_19 = arith.constant 0 : index
    %c0_20 = arith.constant 0 : index
    %28 = vector.load %arg8[%c0_19, %c0_20] : memref<128x128xf32, #tpu.memory_space<vmem>>, vector<128x128xf32>
    %cst_21 = arith.constant dense<0.000000e+00> : vector<200x128xf32>
    %29 = tpu.matmul %27, %28, %cst_21 {dimension_numbers = #tpu.dot_dimension_numbers<[1], [0], [0], [1], [0, 0, 1, 1], [], []>} : vector<200x128xf32>, vector<128x128xf32>, vector<200x128xf32> -> vector<200x128xf32>
    %c0_22 = arith.constant 0 : index
    %c0_23 = arith.constant 0 : index
    %30 = vector.load %arg9[%c0_22, %c0_23] : memref<1x128xf32, #tpu.memory_space<vmem>>, vector<1x128xf32>
    %31 = vector.broadcast %30 : vector<1x128xf32> to vector<200x128xf32>
    %32 = arith.addf %29, %31 : vector<200x128xf32>
    %cst_24 = arith.constant 0.000000e+00 : f32
    %33 = vector.broadcast %cst_24 : f32 to vector<200x128xf32>
    %34 = arith.maximumf %32, %33 : vector<200x128xf32>
    %c0_25 = arith.constant 0 : index
    %c0_26 = arith.constant 0 : index
    %35 = vector.load %arg10[%c0_25, %c0_26] : memref<128x128xf32, #tpu.memory_space<vmem>>, vector<128x128xf32>
    %cst_27 = arith.constant dense<0.000000e+00> : vector<200x128xf32>
    %36 = tpu.matmul %34, %35, %cst_27 {dimension_numbers = #tpu.dot_dimension_numbers<[1], [0], [0], [1], [0, 0, 1, 1], [], []>} : vector<200x128xf32>, vector<128x128xf32>, vector<200x128xf32> -> vector<200x128xf32>
    %c0_28 = arith.constant 0 : index
    %c0_29 = arith.constant 0 : index
    %37 = vector.load %arg11[%c0_28, %c0_29] : memref<1x128xf32, #tpu.memory_space<vmem>>, vector<1x128xf32>
    %38 = vector.broadcast %37 : vector<1x128xf32> to vector<200x128xf32>
    %39 = arith.addf %36, %38 : vector<200x128xf32>
    %40 = arith.negf %39 : vector<200x128xf32>
    %41 = math.exp %40 : vector<200x128xf32>
    %cst_30 = arith.constant 1.000000e+00 : f32
    %42 = vector.broadcast %cst_30 : f32 to vector<200x128xf32>
    %43 = arith.addf %42, %41 : vector<200x128xf32>
    %44 = arith.divf %42, %43 : vector<200x128xf32>
    %c0_31 = arith.constant 0 : index
    %c0_32 = arith.constant 0 : index
    %45 = vector.load %arg12[%c0_31, %c0_32] : memref<200x640xf32, #tpu.memory_space<vmem>>, vector<200x128xf32>
    tpu.vector_store %arg12[%c0_31, %c0_32], %15 {strides = array<i32>} : memref<200x640xf32, #tpu.memory_space<vmem>>, vector<200x128xf32>,
    %c0_33 = arith.constant 0 : index
    %c128_34 = arith.constant 128 : index
    %46 = vector.load %arg12[%c0_33, %c128_34] : memref<200x640xf32, #tpu.memory_space<vmem>>, vector<200x256xf32>
    tpu.vector_store %arg12[%c0_33, %c128_34], %20 {strides = array<i32>} : memref<200x640xf32, #tpu.memory_space<vmem>>, vector<200x256xf32>,
    %c0_35 = arith.constant 0 : index
    %c384 = arith.constant 384 : index
    %47 = vector.load %arg12[%c0_35, %c384] : memref<200x640xf32, #tpu.memory_space<vmem>>, vector<200x128xf32>
    tpu.vector_store %arg12[%c0_35, %c384], %27 {strides = array<i32>} : memref<200x640xf32, #tpu.memory_space<vmem>>, vector<200x128xf32>,
    %c0_36 = arith.constant 0 : index
    %c512 = arith.constant 512 : index
    %48 = vector.load %arg12[%c0_36, %c512] : memref<200x640xf32, #tpu.memory_space<vmem>>, vector<200x128xf32>
    tpu.vector_store %arg12[%c0_36, %c512], %44 {strides = array<i32>} : memref<200x640xf32, #tpu.memory_space<vmem>>, vector<200x128xf32>,
    return
  }
  func.func @transform_0(%arg0: i32) -> (i32, i32) {
    %c0_i32 = arith.constant 0 : i32
    %c0_i32_0 = arith.constant 0 : i32
    return %arg0, %c0_i32 : i32, i32
  }
  func.func @transform_1(%arg0: i32) -> (i32, i32) {
    %c0_i32 = arith.constant 0 : i32
    %c0_i32_0 = arith.constant 0 : i32
    %c0_i32_1 = arith.constant 0 : i32
    return %c0_i32, %c0_i32_0 : i32, i32
  }
  func.func @transform_2(%arg0: i32) -> (i32, i32) {
    %c0_i32 = arith.constant 0 : i32
    %c0_i32_0 = arith.constant 0 : i32
    %c0_i32_1 = arith.constant 0 : i32
    return %c0_i32, %c0_i32_0 : i32, i32
  }
  func.func @transform_3(%arg0: i32) -> (i32, i32) {
    %c0_i32 = arith.constant 0 : i32
    %c0_i32_0 = arith.constant 0 : i32
    %c0_i32_1 = arith.constant 0 : i32
    return %c0_i32, %c0_i32_0 : i32, i32
  }
  func.func @transform_4(%arg0: i32) -> (i32, i32) {
    %c0_i32 = arith.constant 0 : i32
    %c0_i32_0 = arith.constant 0 : i32
    %c0_i32_1 = arith.constant 0 : i32
    return %c0_i32, %c0_i32_0 : i32, i32
  }
  func.func @transform_5(%arg0: i32) -> (i32, i32) {
    %c0_i32 = arith.constant 0 : i32
    %c0_i32_0 = arith.constant 0 : i32
    %c0_i32_1 = arith.constant 0 : i32
    return %c0_i32, %c0_i32_0 : i32, i32
  }
  func.func @transform_6(%arg0: i32) -> (i32, i32) {
    %c0_i32 = arith.constant 0 : i32
    %c0_i32_0 = arith.constant 0 : i32
    %c0_i32_1 = arith.constant 0 : i32
    return %c0_i32, %c0_i32_0 : i32, i32
  }
  func.func @transform_7(%arg0: i32) -> (i32, i32) {
    %c0_i32 = arith.constant 0 : i32
    %c0_i32_0 = arith.constant 0 : i32
    %c0_i32_1 = arith.constant 0 : i32
    return %c0_i32, %c0_i32_0 : i32, i32
  }
  func.func @transform_8(%arg0: i32) -> (i32, i32) {
    %c0_i32 = arith.constant 0 : i32
    %c0_i32_0 = arith.constant 0 : i32
    %c0_i32_1 = arith.constant 0 : i32
    return %c0_i32, %c0_i32_0 : i32, i32
  }
  func.func @transform_9(%arg0: i32) -> (i32, i32) {
    %c0_i32 = arith.constant 0 : i32
    %c0_i32_0 = arith.constant 0 : i32
    %c0_i32_1 = arith.constant 0 : i32
    return %c0_i32, %c0_i32_0 : i32, i32
  }
  func.func @transform_10(%arg0: i32) -> (i32, i32) {
    %c0_i32 = arith.constant 0 : i32
    %c0_i32_0 = arith.constant 0 : i32
    %c0_i32_1 = arith.constant 0 : i32
    return %c0_i32, %c0_i32_0 : i32, i32
  }
  func.func @transform_11(%arg0: i32) -> (i32, i32) {
    %c0_i32 = arith.constant 0 : i32
    %c0_i32_0 = arith.constant 0 : i32
    return %arg0, %c0_i32 : i32, i32
  }
}

module attributes {stable_mosaic.version = 11 : i64} {
  func.func @vae_kernel(%arg0: i32, %arg1: memref<200x256xf32, #tpu.memory_space<vmem>>, %arg2: memref<128x128xf32, #tpu.memory_space<vmem>>, %arg3: memref<1x128xf32, #tpu.memory_space<vmem>>, %arg4: memref<128x128xf32, #tpu.memory_space<vmem>>, %arg5: memref<1x128xf32, #tpu.memory_space<vmem>>, %arg6: memref<128x256xf32, #tpu.memory_space<vmem>>, %arg7: memref<1x256xf32, #tpu.memory_space<vmem>>, %arg8: memref<128x128xf32, #tpu.memory_space<vmem>>, %arg9: memref<1x128xf32, #tpu.memory_space<vmem>>, %arg10: memref<128x128xf32, #tpu.memory_space<vmem>>, %arg11: memref<1x128xf32, #tpu.memory_space<vmem>>, %arg12: memref<200x640xf32, #tpu.memory_space<vmem>>) attributes {dimension_semantics = [#tpu.dimension_semantics<parallel>], iteration_bounds = array<i64: 1>, scalar_prefetch = 0 : i64, scratch_operands = 0 : i64, tpu.core_type = #tpu.core_type<tc>, window_params = [{transform_indices = @transform_0, window_bounds = array<i64: 200, 256>}, {pipeline_mode = #tpu.pipeline_mode<synchronous>, transform_indices = @transform_1, window_bounds = array<i64: 128, 128>}, {pipeline_mode = #tpu.pipeline_mode<synchronous>, transform_indices = @transform_2, window_bounds = array<i64: 1, 128>}, {pipeline_mode = #tpu.pipeline_mode<synchronous>, transform_indices = @transform_3, window_bounds = array<i64: 128, 128>}, {pipeline_mode = #tpu.pipeline_mode<synchronous>, transform_indices = @transform_4, window_bounds = array<i64: 1, 128>}, {pipeline_mode = #tpu.pipeline_mode<synchronous>, transform_indices = @transform_5, window_bounds = array<i64: 128, 256>}, {pipeline_mode = #tpu.pipeline_mode<synchronous>, transform_indices = @transform_6, window_bounds = array<i64: 1, 256>}, {pipeline_mode = #tpu.pipeline_mode<synchronous>, transform_indices = @transform_7, window_bounds = array<i64: 128, 128>}, {pipeline_mode = #tpu.pipeline_mode<synchronous>, transform_indices = @transform_8, window_bounds = array<i64: 1, 128>}, {pipeline_mode = #tpu.pipeline_mode<synchronous>, transform_indices = @transform_9, window_bounds = array<i64: 128, 128>}, {pipeline_mode = #tpu.pipeline_mode<synchronous>, transform_indices = @transform_10, window_bounds = array<i64: 1, 128>}, {transform_indices = @transform_11, window_bounds = array<i64: 200, 640>}]} {
    %c0 = arith.constant 0 : index
    %c0_0 = arith.constant 0 : index
    %0 = vector.load %arg1[%c0, %c0_0] : memref<200x256xf32, #tpu.memory_space<vmem>>, vector<200x128xf32>
    %c0_1 = arith.constant 0 : index
    %c128 = arith.constant 128 : index
    %1 = vector.load %arg1[%c0_1, %c128] : memref<200x256xf32, #tpu.memory_space<vmem>>, vector<200x128xf32>
    %c0_2 = arith.constant 0 : index
    %c0_3 = arith.constant 0 : index
    %2 = vector.load %arg2[%c0_2, %c0_3] : memref<128x128xf32, #tpu.memory_space<vmem>>, vector<128x128xf32>
    %cst = arith.constant dense<0.000000e+00> : vector<200x128xf32>
    %3 = tpu.matmul %0, %2, %cst {dimension_numbers = #tpu.dot_dimension_numbers<[1], [0], [0], [1], [0, 0, 1, 1], [], []>} : vector<200x128xf32>, vector<128x128xf32>, vector<200x128xf32> -> vector<200x128xf32>
    %c0_4 = arith.constant 0 : index
    %c0_5 = arith.constant 0 : index
    %4 = vector.load %arg3[%c0_4, %c0_5] : memref<1x128xf32, #tpu.memory_space<vmem>>, vector<1x128xf32>
    %5 = vector.broadcast %4 : vector<1x128xf32> to vector<200x128xf32>
    %6 = arith.addf %3, %5 : vector<200x128xf32>
    %cst_6 = arith.constant 0.000000e+00 : f32
    %7 = vector.broadcast %cst_6 : f32 to vector<200x128xf32>
    %8 = arith.maximumf %6, %7 : vector<200x128xf32>
    %c0_7 = arith.constant 0 : index
    %c0_8 = arith.constant 0 : index
    %9 = vector.load %arg4[%c0_7, %c0_8] : memref<128x128xf32, #tpu.memory_space<vmem>>, vector<128x128xf32>
    %cst_9 = arith.constant dense<0.000000e+00> : vector<200x128xf32>
    %10 = tpu.matmul %8, %9, %cst_9 {dimension_numbers = #tpu.dot_dimension_numbers<[1], [0], [0], [1], [0, 0, 1, 1], [], []>} : vector<200x128xf32>, vector<128x128xf32>, vector<200x128xf32> -> vector<200x128xf32>
    %c0_10 = arith.constant 0 : index
    %c0_11 = arith.constant 0 : index
    %11 = vector.load %arg5[%c0_10, %c0_11] : memref<1x128xf32, #tpu.memory_space<vmem>>, vector<1x128xf32>
    %12 = vector.broadcast %11 : vector<1x128xf32> to vector<200x128xf32>
    %13 = arith.addf %10, %12 : vector<200x128xf32>
    %cst_12 = arith.constant 0.000000e+00 : f32
    %14 = vector.broadcast %cst_12 : f32 to vector<200x128xf32>
    %15 = arith.maximumf %13, %14 : vector<200x128xf32>
    %c0_13 = arith.constant 0 : index
    %c0_14 = arith.constant 0 : index
    %16 = vector.load %arg6[%c0_13, %c0_14] : memref<128x256xf32, #tpu.memory_space<vmem>>, vector<128x256xf32>
    %cst_15 = arith.constant dense<0.000000e+00> : vector<200x256xf32>
    %17 = tpu.matmul %15, %16, %cst_15 {dimension_numbers = #tpu.dot_dimension_numbers<[1], [0], [0], [1], [0, 0, 1, 1], [], []>} : vector<200x128xf32>, vector<128x256xf32>, vector<200x256xf32> -> vector<200x256xf32>
    %c0_16 = arith.constant 0 : index
    %c0_17 = arith.constant 0 : index
    %18 = vector.load %arg7[%c0_16, %c0_17] : memref<1x256xf32, #tpu.memory_space<vmem>>, vector<1x256xf32>
    %19 = vector.broadcast %18 : vector<1x256xf32> to vector<200x256xf32>
    %20 = arith.addf %17, %19 : vector<200x256xf32>
    %21 = vector.extract_strided_slice %20 {offsets = [0, 0], sizes = [200, 128], strides = [1, 1]} : vector<200x256xf32> to vector<200x128xf32>
    %22 = vector.extract_strided_slice %20 {offsets = [0, 128], sizes = [200, 128], strides = [1, 1]} : vector<200x256xf32> to vector<200x128xf32>
    %cst_18 = arith.constant 5.000000e-01 : f32
    %23 = vector.broadcast %cst_18 : f32 to vector<200x128xf32>
    %24 = arith.mulf %23, %22 : vector<200x128xf32>
    %25 = math.exp %24 : vector<200x128xf32>
    %26 = arith.mulf %1, %25 : vector<200x128xf32>
    %27 = arith.addf %21, %26 : vector<200x128xf32>
    %c0_19 = arith.constant 0 : index
    %c0_20 = arith.constant 0 : index
    %28 = vector.load %arg8[%c0_19, %c0_20] : memref<128x128xf32, #tpu.memory_space<vmem>>, vector<128x128xf32>
    %cst_21 = arith.constant dense<0.000000e+00> : vector<200x128xf32>
    %29 = tpu.matmul %27, %28, %cst_21 {dimension_numbers = #tpu.dot_dimension_numbers<[1], [0], [0], [1], [0, 0, 1, 1], [], []>} : vector<200x128xf32>, vector<128x128xf32>, vector<200x128xf32> -> vector<200x128xf32>
    %c0_22 = arith.constant 0 : index
    %c0_23 = arith.constant 0 : index
    %30 = vector.load %arg9[%c0_22, %c0_23] : memref<1x128xf32, #tpu.memory_space<vmem>>, vector<1x128xf32>
    %31 = vector.broadcast %30 : vector<1x128xf32> to vector<200x128xf32>
    %32 = arith.addf %29, %31 : vector<200x128xf32>
    %cst_24 = arith.constant 0.000000e+00 : f32
    %33 = vector.broadcast %cst_24 : f32 to vector<200x128xf32>
    %34 = arith.maximumf %32, %33 : vector<200x128xf32>
    %c0_25 = arith.constant 0 : index
    %c0_26 = arith.constant 0 : index
    %35 = vector.load %arg10[%c0_25, %c0_26] : memref<128x128xf32, #tpu.memory_space<vmem>>, vector<128x128xf32>
    %cst_27 = arith.constant dense<0.000000e+00> : vector<200x128xf32>
    %36 = tpu.matmul %34, %35, %cst_27 {dimension_numbers = #tpu.dot_dimension_numbers<[1], [0], [0], [1], [0, 0, 1, 1], [], []>} : vector<200x128xf32>, vector<128x128xf32>, vector<200x128xf32> -> vector<200x128xf32>
    %c0_28 = arith.constant 0 : index
    %c0_29 = arith.constant 0 : index
    %37 = vector.load %arg11[%c0_28, %c0_29] : memref<1x128xf32, #tpu.memory_space<vmem>>, vector<1x128xf32>
    %38 = vector.broadcast %37 : vector<1x128xf32> to vector<200x128xf32>
    %39 = arith.addf %36, %38 : vector<200x128xf32>
    %40 = arith.negf %39 : vector<200x128xf32>
    %41 = math.exp %40 : vector<200x128xf32>
    %cst_30 = arith.constant 1.000000e+00 : f32
    %42 = vector.broadcast %cst_30 : f32 to vector<200x128xf32>
    %43 = arith.addf %42, %41 : vector<200x128xf32>
    %44 = arith.divf %42, %43 : vector<200x128xf32>
    %c0_31 = arith.constant 0 : index
    %c0_32 = arith.constant 0 : index
    %45 = vector.load %arg12[%c0_31, %c0_32] : memref<200x640xf32, #tpu.memory_space<vmem>>, vector<200x128xf32>
    tpu.vector_store %arg12[%c0_31, %c0_32], %15 {strides = array<i32>} : memref<200x640xf32, #tpu.memory_space<vmem>>, vector<200x128xf32>,
    %c0_33 = arith.constant 0 : index
    %c128_34 = arith.constant 128 : index
    %46 = vector.load %arg12[%c0_33, %c128_34] : memref<200x640xf32, #tpu.memory_space<vmem>>, vector<200x256xf32>
    tpu.vector_store %arg12[%c0_33, %c128_34], %20 {strides = array<i32>} : memref<200x640xf32, #tpu.memory_space<vmem>>, vector<200x256xf32>,
    %c0_35 = arith.constant 0 : index
    %c384 = arith.constant 384 : index
    %47 = vector.load %arg12[%c0_35, %c384] : memref<200x640xf32, #tpu.memory_space<vmem>>, vector<200x128xf32>
    tpu.vector_store %arg12[%c0_35, %c384], %27 {strides = array<i32>} : memref<200x640xf32, #tpu.memory_space<vmem>>, vector<200x128xf32>,
    %c0_36 = arith.constant 0 : index
    %c512 = arith.constant 512 : index
    %48 = vector.load %arg12[%c0_36, %c512] : memref<200x640xf32, #tpu.memory_space<vmem>>, vector<200x128xf32>
    tpu.vector_store %arg12[%c0_36, %c512], %44 {strides = array<i32>} : memref<200x640xf32, #tpu.memory_space<vmem>>, vector<200x128xf32>,
    return
  }
  func.func @transform_0(%arg0: i32) -> (i32, i32) {
    %c0_i32 = arith.constant 0 : i32
    %c0_i32_0 = arith.constant 0 : i32
    return %arg0, %c0_i32 : i32, i32
  }
  func.func @transform_1(%arg0: i32) -> (i32, i32) {
    %c0_i32 = arith.constant 0 : i32
    %c0_i32_0 = arith.constant 0 : i32
    %c0_i32_1 = arith.constant 0 : i32
    return %c0_i32, %c0_i32_0 : i32, i32
  }
  func.func @transform_2(%arg0: i32) -> (i32, i32) {
    %c0_i32 = arith.constant 0 : i32
    %c0_i32_0 = arith.constant 0 : i32
    %c0_i32_1 = arith.constant 0 : i32
    return %c0_i32, %c0_i32_0 : i32, i32
  }
  func.func @transform_3(%arg0: i32) -> (i32, i32) {
    %c0_i32 = arith.constant 0 : i32
    %c0_i32_0 = arith.constant 0 : i32
    %c0_i32_1 = arith.constant 0 : i32
    return %c0_i32, %c0_i32_0 : i32, i32
  }
  func.func @transform_4(%arg0: i32) -> (i32, i32) {
    %c0_i32 = arith.constant 0 : i32
    %c0_i32_0 = arith.constant 0 : i32
    %c0_i32_1 = arith.constant 0 : i32
    return %c0_i32, %c0_i32_0 : i32, i32
  }
  func.func @transform_5(%arg0: i32) -> (i32, i32) {
    %c0_i32 = arith.constant 0 : i32
    %c0_i32_0 = arith.constant 0 : i32
    %c0_i32_1 = arith.constant 0 : i32
    return %c0_i32, %c0_i32_0 : i32, i32
  }
  func.func @transform_6(%arg0: i32) -> (i32, i32) {
    %c0_i32 = arith.constant 0 : i32
    %c0_i32_0 = arith.constant 0 : i32
    %c0_i32_1 = arith.constant 0 : i32
    return %c0_i32, %c0_i32_0 : i32, i32
  }
  func.func @transform_7(%arg0: i32) -> (i32, i32) {
    %c0_i32 = arith.constant 0 : i32
    %c0_i32_0 = arith.constant 0 : i32
    %c0_i32_1 = arith.constant 0 : i32
    return %c0_i32, %c0_i32_0 : i32, i32
  }
  func.func @transform_8(%arg0: i32) -> (i32, i32) {
    %c0_i32 = arith.constant 0 : i32
    %c0_i32_0 = arith.constant 0 : i32
    %c0_i32_1 = arith.constant 0 : i32
    return %c0_i32, %c0_i32_0 : i32, i32
  }
  func.func @transform_9(%arg0: i32) -> (i32, i32) {
    %c0_i32 = arith.constant 0 : i32
    %c0_i32_0 = arith.constant 0 : i32
    %c0_i32_1 = arith.constant 0 : i32
    return %c0_i32, %c0_i32_0 : i32, i32
  }
  func.func @transform_10(%arg0: i32) -> (i32, i32) {
    %c0_i32 = arith.constant 0 : i32
    %c0_i32_0 = arith.constant 0 : i32
    %c0_i32_1 = arith.constant 0 : i32
    return %c0_i32, %c0_i32_0 : i32, i32
  }
  func.func @transform_11(%arg0: i32) -> (i32, i32) {
    %c0_i32 = arith.constant 0 : i32
    %c0_i32_0 = arith.constant 0 : i32
    return %arg0, %c0_i32 : i32, i32
  }
}

</mosaic_0001>

<bundles_post_ra>
// kernel: tpu_custom_call.1
= control target key start
LH: loop header
LB: loop body
LE: loop exit
PB: predicated region body
PF: predicated region fallthrough
CT: control target
= control target key end

     0   :  { %16 = vsyncpa [#allocation3], 0  ;;  %s3460_s0 = inlined_call_operand.hbm [shape: f32[200,256], index: 0, kind: input, shape index: {}]   ;;  %s3461_s1 = inlined_call_operand.hbm [shape: f32[128,128], index: 1, kind: input, shape index: {}]   ;;  %s3462_s2 = inlined_call_operand.vmem [shape: f32[1,128], index: 2, kind: input, shape index: {}]   ;;  %s3463_s3 = inlined_call_operand.hbm [shape: f32[128,128], index: 3, kind: input, shape index: {}]   ;;  %s3464_s4 = inlined_call_operand.vmem [shape: f32[1,128], index: 4, kind: input, shape index: {}]   ;;  %s3465_s5 = inlined_call_operand.hbm [shape: f32[128,256], index: 5, kind: input, shape index: {}]   ;;  %s3466_s6 = inlined_call_operand.vmem [shape: f32[1,256], index: 6, kind: input, shape index: {}]   ;;  %s3467_s7 = inlined_call_operand.hbm [shape: f32[128,128], index: 7, kind: input, shape index: {}]   ;;  %s3468_s8 = inlined_call_operand.vmem [shape: f32[1,128], index: 8, kind: input, shape index: {}]   ;;  %s3469_s9 = inlined_call_operand.hbm [shape: f32[128,128], index: 9, kind: input, shape index: {}]   ;;  %s3470_s10 = inlined_call_operand.vmem [shape: f32[1,128], index: 10, kind: input, shape index: {}]   ;;  %s3471_s11 = inlined_call_operand.hbm [shape: f32[200,640], index: 11, kind: output, shape index: {}]  }
   0x1   :  { %17 = vsyncpa [#allocation6], 0 }
   0x2   :  { %18 = vsyncpa [#allocation9], 0 }
   0x3   :  { %19 = vsyncpa [#allocation12], 0 }
   0x4   :  { %20 = vsyncpa [#allocation4], 0  ;;  %s2745_s17 = smov [#allocation5]  }
   0x5   :  { %s38_s18 = sshll.u32 %s2745_s17, 4  ;;  %s39_s18 = int_to_ptr.vmem [resolvable:$true] %s38_s18 }
   0x6   :  { %s2603_s19 = scalar_lea.vmem %s39_s18, 2048  ;;  %p2608_p1 = scmp.lt.s32.totalorder %s39_s18, %s39_s18 }
   0x7   :  { %p2604_p0 = scmp.ne.s32.totalorder %s39_s18, %s2603_s19  ;;  %p2609_p2 = scmp.lt.s32.totalorder %s2603_s19, %s2603_s19 }
   0x9   :  { %p2610_p3 = por %p2609_p2, %p2608_p1 }
   0xb   :  { %p2611_p4 = pnand %p2610_p3, %p2604_p0 }
   0xd   :  { %2614 = shalt.err (!%p2611_p4)
}
   0xe   :  { %s2746_s20 = smov 128   ;;  %s2747_s21 = smov 8  }
   0xf   :  { %44 = dma.hbm_to_vmem [thread:$0]  %s3461_s1, 2048, %s39_s18, [#allocation6], %s2746_s20, %s2746_s20, %s2747_s21  }
  0x10   :  { %s2748_s24 = smov [#allocation8]   ;;  %s2749_s26 = smov [#allocation2]  }
  0x11   :  { %s66_s25 = sshll.u32 %s2748_s24, 4  ;;  %s26_s27 = sshll.u32 %s2749_s26, 4  ;;  %s67_s25 = int_to_ptr.vmem [resolvable:$true] %s66_s25  ;;  %s27_s27 = int_to_ptr.vmem [resolvable:$true] %s26_s27 }
  0x12   :  { %s2623_s28 = scalar_lea.vmem %s67_s25, 4096  ;;  %p2628_p6 = scmp.lt.s32.totalorder %s67_s25, %s67_s25 }
  0x13   :  { %p2624_p5 = scmp.ne.s32.totalorder %s67_s25, %s2623_s28  ;;  %p2629_p7 = scmp.lt.s32.totalorder %s2623_s28, %s2623_s28 }
  0x15   :  { %p2630_p8 = por %p2629_p7, %p2628_p6 }
  0x17   :  { %p2631_p9 = pnand %p2630_p8, %p2624_p5 }
  0x19   :  { %2634 = shalt.err (!%p2631_p9)
}
  0x1a   :  { %s2750_s29 = smov 256   ;;  %s2751_s30 = smov 16  }
  0x1b   :  { %72 = dma.hbm_to_vmem [thread:$0]  %s3465_s5, 4096, %s67_s25, [#allocation9], %s2750_s29, %s2750_s29, %s2751_s30  }
  0x1c   :  { %s2643_s1 = scalar_lea.vmem %s27_s27, 6400  ;;  %p2648_p11 = scmp.lt.s32.totalorder %s27_s27, %s27_s27 }
  0x1d   :  { %p2644_p10 = scmp.ne.s32.totalorder %s27_s27, %s2643_s1  ;;  %p2649_p12 = scmp.lt.s32.totalorder %s2643_s1, %s2643_s1 }
  0x1f   :  { %p2650_p13 = por %p2649_p12, %p2648_p11 }
  0x21   :  { %p2651_p0 = pnand %p2650_p13, %p2644_p10 }
  0x23   :  { %2654 = shalt.err (!%p2651_p0)
}
  0x24   :  { %32 = dma.hbm_to_vmem [thread:$0]  %s3460_s0, 6400, %s27_s27, [#allocation3], %s2750_s29, %s2750_s29, %s2751_s30  }
  0x25   :  { %s2752_s16 = smov [#allocation7]   ;;  %s2753_s18 = smov [#allocation10]  }
  0x26   :  { %s52_s17 = sshll.u32 %s2752_s16, 4  ;;  %s80_s19 = sshll.u32 %s2753_s18, 4  ;;  %s53_s17 = int_to_ptr.vmem [resolvable:$true] %s52_s17  ;;  %s81_s19 = int_to_ptr.vmem [resolvable:$true] %s80_s19 }
  0x27   :  { %s2663_s22 = scalar_lea.vmem %s53_s17, 2048  ;;  %p2668_p2 = scmp.lt.s32.totalorder %s53_s17, %s53_s17 }
  0x28   :  { %p2664_p1 = scmp.ne.s32.totalorder %s53_s17, %s2663_s22  ;;  %p2669_p3 = scmp.lt.s32.totalorder %s2663_s22, %s2663_s22 }
  0x2a   :  { %p2670_p4 = por %p2669_p3, %p2668_p2 }
  0x2c   :  { %p2671_p5 = pnand %p2670_p4, %p2664_p1 }
  0x2e   :  { %2674 = shalt.err (!%p2671_p5)
}
  0x2f   :  { %58 = dma.hbm_to_vmem [thread:$0]  %s3463_s3, 2048, %s53_s17, [#allocation6], %s2746_s20, %s2746_s20, %s2747_s21  }
  0x30   :  { %s2683_s0 = scalar_lea.vmem %s81_s19, 2048  ;;  %p2688_p7 = scmp.lt.s32.totalorder %s81_s19, %s81_s19 }
  0x31   :  { %p2684_p6 = scmp.ne.s32.totalorder %s81_s19, %s2683_s0  ;;  %p2689_p8 = scmp.lt.s32.totalorder %s2683_s0, %s2683_s0 }
  0x33   :  { %p2690_p9 = por %p2689_p8, %p2688_p7 }
  0x35   :  { %p2691_p10 = pnand %p2690_p9, %p2684_p6 }
  0x37   :  { %2694 = shalt.err (!%p2691_p10)
}
  0x38   :  { %86 = dma.hbm_to_vmem [thread:$0]  %s3467_s7, 2048, %s81_s19, [#allocation9], %s2746_s20, %s2746_s20, %s2747_s21  }
  0x39   :  { %s2754_s26 = smov [#allocation11]  }
  0x3a   :  { %s94_s27 = sshll.u32 %s2754_s26, 4  ;;  %s95_s27 = int_to_ptr.vmem [resolvable:$true] %s94_s27 }
  0x3b   :  { %s2703_s28 = scalar_lea.vmem %s95_s27, 2048  ;;  %p2708_p12 = scmp.lt.s32.totalorder %s95_s27, %s95_s27 }
  0x3c   :  { %p2704_p11 = scmp.ne.s32.totalorder %s95_s27, %s2703_s28  ;;  %p2709_p13 = scmp.lt.s32.totalorder %s2703_s28, %s2703_s28 }
  0x3e   :  { %p2710_p0 = por %p2709_p13, %p2708_p12 }
  0x40   :  { %p2711_p1 = pnand %p2710_p0, %p2704_p11 }
  0x42   :  { %2714 = shalt.err (!%p2711_p1)
}
  0x43   :  { %100 = dma.hbm_to_vmem [thread:$0]  %s3469_s9, 2048, %s95_s27, [#allocation12], %s2746_s20, %s2746_s20, %s2747_s21  }
  0x44   :  { %2735 = dma.done.wait [#allocation3], 6400  }
  0x45   :  { %2736 = vsyncadd [#allocation3], 4294960896 }
  0x46   :  { %2737 = dma.done.wait [#allocation6], 4096  }
  0x47   :  { %2738 = vsyncadd [#allocation6], 4294963200 }
  0x48   :  { %2739 = dma.done.wait [#allocation9], 6144  }
  0x49   :  { %2740 = vsyncadd [#allocation9], 4294961152 }
  0x4a   :  { %2741 = dma.done.wait [#allocation12], 2048  }
  0x4b   :  { %2742 = vsyncadd [#allocation12], 4294965248  ;;  %v2755_v0 = vmov 0.0   ;;  %vm2756_vm0 = vmmov 0   ;;  %v186_v1 = vld [vmem:[#allocation5 + $0x78] sm:$0xff]  ;;  %v185_v2 = vld [vmem:[#allocation5 + $0x70] sm:$0xff] }
  0x4c   :  { %1970 = vmatprep.subr.mxu0 %v2755_v0  ;;  %2002 = vmatprep.mubr.msk.f32.mxu0 %vm2756_vm0, %v2755_v0  ;;  %v184_v3 = vld [vmem:[#allocation5 + $0x68] sm:$0xff]  ;;  %v183_v4 = vld [vmem:[#allocation5 + $0x60] sm:$0xff]  ;;  %v182_v5 = vld [vmem:[#allocation5 + $0x58] sm:$0xff] }
  0x4d   :  { %2398 = vmatprep.subr.mxu1 %v2755_v0  ;;  %2041 = vmatprep.mubr.msk.f32.mxu1 %vm2756_vm0, %v2755_v0  ;;  %v181_v6 = vld [vmem:[#allocation5 + $0x50] sm:$0xff]  ;;  %v180_v7 = vld [vmem:[#allocation5 + $0x48] sm:$0xff]  ;;  %v179_v8 = vld [vmem:[#allocation5 + $0x40] sm:$0xff] }
  0x4e   :  { %1971 = vmatpush3.msra.mxu0 %v186_v1  ;;  %2414 = vmatpush3.msra.mxu1 %v186_v1  ;;  %v178_v9 = vld [vmem:[#allocation5 + $0x38] sm:$0xff]  ;;  %v177_v10 = vld [vmem:[#allocation5 + $0x30] sm:$0xff]  ;;  %v176_v11 = vld [vmem:[#allocation5 + $0x28] sm:$0xff] }
  0x4f   :  { %1972 = vmatprep.subr.mxu0 %v2755_v0  ;;  %2399 = vmatprep.subr.mxu1 %v2755_v0  ;;  %v175_v12 = vld [vmem:[#allocation5 + $0x20] sm:$0xff]  ;;  %v174_v13 = vld [vmem:[#allocation5 + $0x18] sm:$0xff]  ;;  %v173_v14 = vld [vmem:[#allocation5 + $0x10] sm:$0xff] }
  0x50   :  { %1973 = vmatpush3.msra.mxu0 %v185_v2  ;;  %2415 = vmatpush3.msra.mxu1 %v185_v2  ;;  %v172_v15 = vld [vmem:[#allocation5 + $0x8] sm:$0xff]  ;;  %v171_v16 = vld [vmem:[#allocation5] sm:$0xff]  ;;  %v121_v17 = vld [vmem:[#allocation2] sm:$0xff] }
  0x51   :  { %1974 = vmatprep.subr.mxu0 %v2755_v0  ;;  %2400 = vmatprep.subr.mxu1 %v2755_v0  ;;  %v134_v18 = vld [vmem:[#allocation2 + $0xd0] sm:$0xff]  ;;  %v424_v19 = vld [vmem:[#allocation7 + $0x78] sm:$0xff]  ;;  %v135_v21 = vld [vmem:[#allocation2 + $0xe0] sm:$0xff] }
  0x52   :  { %1975 = vmatpush3.msra.mxu0 %v184_v3  ;;  %2416 = vmatpush3.msra.mxu1 %v184_v3  ;;  %v122_v20 = vld [vmem:[#allocation2 + $0x10] sm:$0xff]  ;;  %v423_v22 = vld [vmem:[#allocation7 + $0x70] sm:$0xff]  ;;  %v422_v25 = vld [vmem:[#allocation7 + $0x68] sm:$0xff] }
  0x53   :  { %1976 = vmatprep.subr.mxu0 %v2755_v0  ;;  %2401 = vmatprep.subr.mxu1 %v2755_v0  ;;  %v123_v23 = vld [vmem:[#allocation2 + $0x20] sm:$0xff]  ;;  %v136_v24 = vld [vmem:[#allocation2 + $0xf0] sm:$0xff]  ;;  %v420_v31 = vld [vmem:[#allocation7 + $0x58] sm:$0xff] }
  0x54   :  { %1977 = vmatpush3.msra.mxu0 %v183_v4  ;;  %2417 = vmatpush3.msra.mxu1 %v183_v4  ;;  %v124_v26 = vld [vmem:[#allocation2 + $0x30] sm:$0xff]  ;;  %v137_v27 = vld [vmem:[#allocation2 + $0x100] sm:$0xff]  ;;  %v418_v37 = vld [vmem:[#allocation7 + $0x48] sm:$0xff] }
  0x55   :  { %1978 = vmatprep.subr.mxu0 %v2755_v0  ;;  %2402 = vmatprep.subr.mxu1 %v2755_v0  ;;  %v421_v28 = vld [vmem:[#allocation7 + $0x60] sm:$0xff]  ;;  %v125_v29 = vld [vmem:[#allocation2 + $0x40] sm:$0xff]  ;;  %v416_v43 = vld [vmem:[#allocation7 + $0x38] sm:$0xff] }
  0x56   :  { %1979 = vmatpush3.msra.mxu0 %v182_v5  ;;  %2418 = vmatpush3.msra.mxu1 %v182_v5  ;;  %v138_v30 = vld [vmem:[#allocation2 + $0x110] sm:$0xff]  ;;  %v139_v33 = vld [vmem:[#allocation2 + $0x120] sm:$0xff]  ;;  %v414_v49 = vld [vmem:[#allocation7 + $0x28] sm:$0xff] }
  0x57   :  { %1980 = vmatprep.subr.mxu0 %v2755_v0  ;;  %2403 = vmatprep.subr.mxu1 %v2755_v0  ;;  %v126_v32 = vld [vmem:[#allocation2 + $0x50] sm:$0xff]  ;;  %v419_v34 = vld [vmem:[#allocation7 + $0x50] sm:$0xff]  ;;  %v412_v54 = vld [vmem:[#allocation7 + $0x18] sm:$0xff] }
  0x58   :  { %1981 = vmatpush3.msra.mxu0 %v181_v6  ;;  %2419 = vmatpush3.msra.mxu1 %v181_v6  ;;  %v127_v35 = vld [vmem:[#allocation2 + $0x60] sm:$0xff]  ;;  %v140_v36 = vld [vmem:[#allocation2 + $0x130] sm:$0xff]  ;;  %v410_v56 = vld [vmem:[#allocation7 + $0x8] sm:$0xff] }
  0x59   :  { %1982 = vmatprep.subr.mxu0 %v2755_v0  ;;  %2404 = vmatprep.subr.mxu1 %v2755_v0  ;;  %v128_v38 = vld [vmem:[#allocation2 + $0x70] sm:$0xff]  ;;  %v141_v39 = vld [vmem:[#allocation2 + $0x140] sm:$0xff]  ;;  %v678_v58 = vld [vmem:[#allocation8 + $0xf8] sm:$0xff] }
  0x5a   :  { %1983 = vmatpush3.msra.mxu0 %v180_v7  ;;  %2420 = vmatpush3.msra.mxu1 %v180_v7  ;;  %v417_v40 = vld [vmem:[#allocation7 + $0x40] sm:$0xff]  ;;  %v129_v41 = vld [vmem:[#allocation2 + $0x80] sm:$0xff]  ;;  %v676_v60 = vld [vmem:[#allocation8 + $0xe8] sm:$0xff] }
  0x5b   :  { %1984 = vmatprep.subr.mxu0 %v2755_v0  ;;  %2405 = vmatprep.subr.mxu1 %v2755_v0  ;;  %v142_v42 = vld [vmem:[#allocation2 + $0x150] sm:$0xff]  ;;  %v143_v45 = vld [vmem:[#allocation2 + $0x160] sm:$0xff]  ;;  %v674_v62 = vld [vmem:[#allocation8 + $0xd8] sm:$0xff] }
  0x5c   :  { %1985 = vmatpush3.msra.mxu0 %v179_v8  ;;  %2421 = vmatpush3.msra.mxu1 %v179_v8  ;;  %v130_v44 = vld [vmem:[#allocation2 + $0x90] sm:$0xff]  ;;  %v415_v46 = vld [vmem:[#allocation7 + $0x30] sm:$0xff]  ;;  %v672_v1 = vld [vmem:[#allocation8 + $0xc8] sm:$0xff] }
  0x5d   :  { %1986 = vmatprep.subr.mxu0 %v2755_v0  ;;  %2406 = vmatprep.subr.mxu1 %v2755_v0  ;;  %v131_v47 = vld [vmem:[#allocation2 + $0xa0] sm:$0xff]  ;;  %v144_v48 = vld [vmem:[#allocation2 + $0x170] sm:$0xff]  ;;  %v670_v3 = vld [vmem:[#allocation8 + $0xb8] sm:$0xff] }
  0x5e   :  { %1987 = vmatpush3.msra.mxu0 %v178_v9  ;;  %2422 = vmatpush3.msra.mxu1 %v178_v9  ;;  %v132_v50 = vld [vmem:[#allocation2 + $0xb0] sm:$0xff]  ;;  %v145_v51 = vld [vmem:[#allocation2 + $0x180] sm:$0xff]  ;;  %v668_v5 = vld [vmem:[#allocation8 + $0xa8] sm:$0xff] }
  0x5f   :  { %1988 = vmatprep.subr.mxu0 %v2755_v0  ;;  %2407 = vmatprep.subr.mxu1 %v2755_v0  ;;  %v413_v52 = vld [vmem:[#allocation7 + $0x20] sm:$0xff]  ;;  %v133_v53 = vld [vmem:[#allocation2 + $0xc0] sm:$0xff]  ;;  %v666_v7 = vld [vmem:[#allocation8 + $0x98] sm:$0xff] }
  0x60   :  { %1989 = vmatpush3.msra.mxu0 %v177_v10  ;;  %2423 = vmatpush3.msra.mxu1 %v177_v10  ;;  %v411_v55 = vld [vmem:[#allocation7 + $0x10] sm:$0xff]  ;;  %v409_v57 = vld [vmem:[#allocation7] sm:$0xff]  ;;  %v664_v9 = vld [vmem:[#allocation8 + $0x88] sm:$0xff] }
  0x61   :  { %1990 = vmatprep.subr.mxu0 %v2755_v0  ;;  %2408 = vmatprep.subr.mxu1 %v2755_v0  ;;  %v677_v59 = vld [vmem:[#allocation8 + $0xf0] sm:$0xff]  ;;  %v675_v61 = vld [vmem:[#allocation8 + $0xe0] sm:$0xff] }
  0x62   :  { %1991 = vmatpush3.msra.mxu0 %v176_v11  ;;  %2424 = vmatpush3.msra.mxu1 %v176_v11  ;;  %v673_v63 = vld [vmem:[#allocation8 + $0xd0] sm:$0xff]  ;;  %v671_v2 = vld [vmem:[#allocation8 + $0xc0] sm:$0xff]  ;;  %v662_v11 = vld [vmem:[#allocation8 + $0x78] sm:$0xff] }
  0x63   :  { %1992 = vmatprep.subr.mxu0 %v2755_v0  ;;  %2409 = vmatprep.subr.mxu1 %v2755_v0  ;;  %v669_v4 = vld [vmem:[#allocation8 + $0xb0] sm:$0xff]  ;;  %v667_v6 = vld [vmem:[#allocation8 + $0xa0] sm:$0xff] }
  0x64   :  { %1993 = vmatpush3.msra.mxu0 %v175_v12  ;;  %2425 = vmatpush3.msra.mxu1 %v175_v12  ;;  %v665_v8 = vld [vmem:[#allocation8 + $0x90] sm:$0xff]  ;;  %v663_v10 = vld [vmem:[#allocation8 + $0x80] sm:$0xff] }
  0x65   :  { %1994 = vmatprep.subr.mxu0 %v2755_v0  ;;  %2410 = vmatprep.subr.mxu1 %v2755_v0  ;;  %v661_v12 = vld [vmem:[#allocation8 + $0x70] sm:$0xff] }
  0x66   :  { %1995 = vmatpush3.msra.mxu0 %v174_v13  ;;  %2426 = vmatpush3.msra.mxu1 %v174_v13  ;;  %v660_v13 = vld [vmem:[#allocation8 + $0x68] sm:$0xff] }
  0x67   :  { %1996 = vmatprep.subr.mxu0 %v2755_v0  ;;  %2411 = vmatprep.subr.mxu1 %v2755_v0 }
  0x68   :  { %1997 = vmatpush3.msra.mxu0 %v173_v14  ;;  %2427 = vmatpush3.msra.mxu1 %v173_v14  ;;  %v659_v14 = vld [vmem:[#allocation8 + $0x60] sm:$0xff] }
  0x69   :  { %1998 = vmatprep.subr.mxu0 %v2755_v0  ;;  %2412 = vmatprep.subr.mxu1 %v2755_v0 }
  0x6a   :  { %1999 = vmatpush3.msra.mxu0 %v172_v15  ;;  %2428 = vmatpush3.msra.mxu1 %v172_v15  ;;  %v658_v15 = vld [vmem:[#allocation8 + $0x58] sm:$0xff] }
  0x6b   :  { %2000 = vmatprep.subr.mxu0 %v2755_v0  ;;  %2413 = vmatprep.subr.mxu1 %v2755_v0 }
  0x6c   :  { %2001 = vmatpush3.msra.mxu0 %v171_v16  ;;  %2429 = vmatpush3.msra.mxu1 %v171_v16  ;;  %v657_v16 = vld [vmem:[#allocation8 + $0x50] sm:$0xff] }
  0x6d   :  { %2003 = vmatmul.mubr.f32.vlgmr.msra.gmra.mxu0 %v121_v17  ;;  %2042 = vmatmul.mubr.f32.vlgmr.msra.gmra.mxu1 %v134_v18  ;;  %v656_v17 = vld [vmem:[#allocation8 + $0x48] sm:$0xff]  ;;  %v655_v18 = vld [vmem:[#allocation8 + $0x40] sm:$0xff] }
  0x6e   :  { %2005 = vmatprep.mubr.msk.f32.mxu0 %vm2756_vm0, %v2755_v0  ;;  %2044 = vmatprep.mubr.msk.f32.mxu1 %vm2756_vm0, %v2755_v0 }
  0x6f   :  { %2077 = vmatprep.subr.mxu1 %v2755_v0  ;;  %691 = vmatprep.subr.mxu0 %v678_v58 }
  0x70   :  { %2078 = vmatpush3.msra.mxu1 %v424_v19  ;;  %692 = vmatpush1.msra.mxu0 %v677_v59  ;;  %v654_v19 = vld [vmem:[#allocation8 + $0x38] sm:$0xff] }
  0x71   :  { %2006 = vmatmul.mubr.f32.gmra.mxu0 %v122_v20  ;;  %2045 = vmatmul.mubr.f32.gmra.mxu1 %v135_v21  ;;  %v653_v20 = vld [vmem:[#allocation8 + $0x30] sm:$0xff]  ;;  %v652_v21 = vld [vmem:[#allocation8 + $0x28] sm:$0xff] }
  0x72   :  { %2008 = vmatprep.mubr.msk.f32.mxu0 %vm2756_vm0, %v2755_v0  ;;  %2047 = vmatprep.mubr.msk.f32.mxu1 %vm2756_vm0, %v2755_v0 }
  0x73   :  { %2079 = vmatprep.subr.mxu1 %v2755_v0  ;;  %693 = vmatprep.subr.mxu0 %v676_v60 }
  0x74   :  { %2080 = vmatpush3.msra.mxu1 %v423_v22  ;;  %694 = vmatpush1.msra.mxu0 %v675_v61  ;;  %v2955_v22 = vld [vmem:[%s3462_s2] ss:$0 sm:$0xff] }
  0x75   :  { %2009 = vmatmul.mubr.f32.gmra.mxu0 %v123_v23  ;;  %2048 = vmatmul.mubr.f32.gmra.mxu1 %v136_v24  ;;  %v651_v23 = vld [vmem:[#allocation8 + $0x20] sm:$0xff]  ;;  %v650_v24 = vld [vmem:[#allocation8 + $0x18] sm:$0xff] }
  0x76   :  { %2011 = vmatprep.mubr.msk.f32.mxu0 %vm2756_vm0, %v2755_v0  ;;  %2050 = vmatprep.mubr.msk.f32.mxu1 %vm2756_vm0, %v2755_v0 }
  0x77   :  { %2081 = vmatprep.subr.mxu1 %v2755_v0  ;;  %695 = vmatprep.subr.mxu0 %v674_v62 }
  0x78   :  { %2082 = vmatpush3.msra.mxu1 %v422_v25  ;;  %696 = vmatpush1.msra.mxu0 %v673_v63 }
  0x79   :  { %2012 = vmatmul.mubr.f32.gmra.mxu0 %v124_v26  ;;  %2051 = vmatmul.mubr.f32.gmra.mxu1 %v137_v27  ;;  %v649_v27 = vld [vmem:[#allocation8 + $0x10] sm:$0xff] }
  0x7a   :  { %2014 = vmatprep.mubr.msk.f32.mxu0 %vm2756_vm0, %v2755_v0  ;;  %2053 = vmatprep.mubr.msk.f32.mxu1 %vm2756_vm0, %v2755_v0 }
  0x7b   :  { %2083 = vmatprep.subr.mxu1 %v2755_v0  ;;  %697 = vmatprep.subr.mxu0 %v672_v1 }
  0x7c   :  { %2084 = vmatpush3.msra.mxu1 %v421_v28  ;;  %698 = vmatpush1.msra.mxu0 %v671_v2 }
  0x7d   :  { %2015 = vmatmul.mubr.f32.gmra.mxu0 %v125_v29  ;;  %2054 = vmatmul.mubr.f32.gmra.mxu1 %v138_v30 }
  0x7e   :  { %2017 = vmatprep.mubr.msk.f32.mxu0 %vm2756_vm0, %v2755_v0  ;;  %2056 = vmatprep.mubr.msk.f32.mxu1 %vm2756_vm0, %v2755_v0 }
  0x7f   :  { %2085 = vmatprep.subr.mxu1 %v2755_v0  ;;  %699 = vmatprep.subr.mxu0 %v670_v3 }
  0x80   :  { %2086 = vmatpush3.msra.mxu1 %v420_v31  ;;  %700 = vmatpush1.msra.mxu0 %v669_v4 }
  0x81   :  { %2018 = vmatmul.mubr.f32.gmra.mxu0 %v126_v32  ;;  %2057 = vmatmul.mubr.f32.gmra.mxu1 %v139_v33 }
  0x82   :  { %2020 = vmatprep.mubr.msk.f32.mxu0 %vm2756_vm0, %v2755_v0  ;;  %2059 = vmatprep.mubr.msk.f32.mxu1 %vm2756_vm0, %v2755_v0 }
  0x83   :  { %2087 = vmatprep.subr.mxu1 %v2755_v0  ;;  %701 = vmatprep.subr.mxu0 %v668_v5 }
  0x84   :  { %2088 = vmatpush3.msra.mxu1 %v419_v34  ;;  %702 = vmatpush1.msra.mxu0 %v667_v6 }
  0x85   :  { %2021 = vmatmul.mubr.f32.gmra.mxu0 %v127_v35  ;;  %2060 = vmatmul.mubr.f32.gmra.mxu1 %v140_v36 }
  0x86   :  { %2023 = vmatprep.mubr.msk.f32.mxu0 %vm2756_vm0, %v2755_v0  ;;  %2062 = vmatprep.mubr.msk.f32.mxu1 %vm2756_vm0, %v2755_v0 }
  0x87   :  { %2089 = vmatprep.subr.mxu1 %v2755_v0  ;;  %703 = vmatprep.subr.mxu0 %v666_v7 }
  0x88   :  { %2090 = vmatpush3.msra.mxu1 %v418_v37  ;;  %704 = vmatpush1.msra.mxu0 %v665_v8 }
  0x89   :  { %2024 = vmatmul.mubr.f32.gmra.mxu0 %v128_v38  ;;  %2063 = vmatmul.mubr.f32.gmra.mxu1 %v141_v39 }
  0x8a   :  { %2026 = vmatprep.mubr.msk.f32.mxu0 %vm2756_vm0, %v2755_v0  ;;  %2065 = vmatprep.mubr.msk.f32.mxu1 %vm2756_vm0, %v2755_v0 }
  0x8b   :  { %2091 = vmatprep.subr.mxu1 %v2755_v0  ;;  %705 = vmatprep.subr.mxu0 %v664_v9 }
  0x8c   :  { %2092 = vmatpush3.msra.mxu1 %v417_v40  ;;  %706 = vmatpush1.msra.mxu0 %v663_v10 }
  0x8d   :  { %2027 = vmatmul.mubr.f32.gmra.mxu0 %v129_v41  ;;  %2066 = vmatmul.mubr.f32.gmra.mxu1 %v142_v42 }
  0x8e   :  { %2029 = vmatprep.mubr.msk.f32.mxu0 %vm2756_vm0, %v2755_v0  ;;  %2068 = vmatprep.mubr.msk.f32.mxu1 %vm2756_vm0, %v2755_v0 }
  0x8f   :  { %2093 = vmatprep.subr.mxu1 %v2755_v0  ;;  %707 = vmatprep.subr.mxu0 %v662_v11 }
  0x90   :  { %2094 = vmatpush3.msra.mxu1 %v416_v43  ;;  %708 = vmatpush1.msra.mxu0 %v661_v12 }
  0x91   :  { %2030 = vmatmul.mubr.f32.gmra.mxu0 %v130_v44  ;;  %2069 = vmatmul.mubr.f32.gmra.mxu1 %v143_v45 }
  0x92   :  { %2032 = vmatprep.mubr.msk.f32.mxu0 %vm2756_vm0, %v2755_v0  ;;  %2071 = vmatprep.mubr.msk.f32.mxu1 %vm2756_vm0, %v2755_v0 }
  0x93   :  { %2095 = vmatprep.subr.mxu1 %v2755_v0  ;;  %709 = vmatprep.subr.mxu0 %v660_v13 }
  0x94   :  { %2096 = vmatpush3.msra.mxu1 %v415_v46  ;;  %710 = vmatpush1.msra.mxu0 %v659_v14 }
  0x95   :  { %2033 = vmatmul.mubr.f32.gmra.mxu0 %v131_v47  ;;  %2072 = vmatmul.mubr.f32.gmra.mxu1 %v144_v48 }
  0x96   :  { %2035 = vmatprep.mubr.msk.f32.mxu0 %vm2756_vm0, %v2755_v0  ;;  %2074 = vmatprep.mubr.msk.f32.mxu1 %vm2756_vm0, %v2755_v0 }
  0x97   :  { %2097 = vmatprep.subr.mxu1 %v2755_v0  ;;  %711 = vmatprep.subr.mxu0 %v658_v15 }
  0x98   :  { %2098 = vmatpush3.msra.mxu1 %v414_v49  ;;  %712 = vmatpush1.msra.mxu0 %v657_v16 }
  0x99   :  { %2036 = vmatmul.mubr.f32.gmra.mxu0 %v132_v50  ;;  %2075 = vmatmul.mubr.f32.gmra.mxu1 %v145_v51 }
  0x9a   :  { %2038 = vmatprep.mubr.msk.f32.mxu0 %vm2756_vm0, %v2755_v0  ;;  %2099 = vmatprep.subr.mxu1 %v2755_v0 }
  0x9b   :  { %2100 = vmatpush3.msra.mxu1 %v413_v52  ;;  %2109 = vmatprep.mubr.msk.f32.mxu1 %vm2756_vm0, %v2755_v0 }
  0x9c   :  { %2101 = vmatprep.subr.mxu1 %v2755_v0  ;;  %713 = vmatprep.subr.mxu0 %v656_v17 }
  0x9d   :  { %2039 = vmatmul.mubr.f32.gmra.mxu0 %v133_v53  ;;  %2102 = vmatpush3.msra.mxu1 %v412_v54 }
  0x9e   :  { %2103 = vmatprep.subr.mxu1 %v2755_v0  ;;  %755 = vmatprep.mubr.f32.mxu0 %v2755_v0 }
  0x9f   :  { %2104 = vmatpush3.msra.mxu1 %v411_v55  ;;  %714 = vmatpush1.msra.mxu0 %v655_v18 }
  0xa0   :  { %2105 = vmatprep.subr.mxu1 %v2755_v0  ;;  %715 = vmatprep.subr.mxu0 %v654_v19 }
  0xa1   :  { %2106 = vmatpush3.msra.mxu1 %v410_v56  ;;  %716 = vmatpush1.msra.mxu0 %v653_v20 }
  0xa2   :  { %2107 = vmatprep.subr.mxu1 %v2755_v0  ;;  %717 = vmatprep.subr.mxu0 %v652_v21 }
  0xa3   :  { %2108 = vmatpush3.msra.mxu1 %v409_v57  ;;  %718 = vmatpush1.msra.mxu0 %v651_v23 }
  0xa4   :  { %2184 = vmatprep.subr.mxu1 %v2755_v0  ;;  %719 = vmatprep.subr.mxu0 %v650_v24 }
  0xa5   :  { %720 = vmatpush1.msra.mxu0 %v649_v27 }
 0x12d   :  { %v260_v25 = vpop.f32.mrf.mxu0  ;;  %v2957_v26 = vpop.f32.mrf.mxu1 }
 0x12e   :  { %v261_v28 = vadd.f32 %v2955_v22, %v260_v25 }
 0x12f   :  { %v2004_v29 = vpop.f32.mrf.mxu0  ;;  %v2043_v30 = vpop.f32.mrf.mxu1 }
 0x130   :  { %v384_v31 = vmax.f32 %v261_v28, 0.0 }
 0x131   :  { %v265_v32 = vpop.f32.mrf.mxu0  ;;  %v2960_v33 = vpop.f32.mrf.mxu1 }
 0x132   :  { %v266_v34 = vadd.f32 %v2955_v22, %v265_v32  ;;  %2110 = vmatmul.mubr.f32.vlgmr.msra.gmra.mxu1 %v384_v31 }
 0x133   :  { %v2007_v35 = vpop.f32.mrf.mxu0  ;;  %2112 = vmatprep.mubr.msk.f32.mxu1 %vm2756_vm0, %v2755_v0  ;;  %v2046_v36 = vpop.f32.mrf.mxu1 }
 0x134   :  { %v385_v37 = vmax.f32 %v266_v34, 0.0 }
 0x135   :  { %v270_v38 = vpop.f32.mrf.mxu0  ;;  %v2965_v39 = vpop.f32.mrf.mxu1 }
 0x136   :  { %v271_v40 = vadd.f32 %v2955_v22, %v270_v38  ;;  %2113 = vmatmul.mubr.f32.gmra.mxu1 %v385_v37 }
 0x137   :  { %v2010_v41 = vpop.f32.mrf.mxu0  ;;  %2115 = vmatprep.mubr.msk.f32.mxu1 %vm2756_vm0, %v2755_v0  ;;  %v2049_v42 = vpop.f32.mrf.mxu1 }
 0x138   :  { %v386_v43 = vmax.f32 %v271_v40, 0.0  ;;  %v326_v41 = vadd.f32 %v2955_v22, %v2957_v26 }
 0x139   :  { %v275_v44 = vpop.f32.mrf.mxu0  ;;  %v2970_v45 = vpop.f32.mrf.mxu1 }
 0x13a   :  { %v276_v46 = vadd.f32 %v2955_v22, %v275_v44  ;;  %2116 = vmatmul.mubr.f32.gmra.mxu1 %v386_v43  ;;  %v397_v44 = vmax.f32 %v326_v41, 0.0 }
 0x13b   :  { %v2013_v47 = vpop.f32.mrf.mxu0  ;;  %2118 = vmatprep.mubr.msk.f32.mxu1 %vm2756_vm0, %v2755_v0  ;;  %v2052_v48 = vpop.f32.mrf.mxu1 }
 0x13c   :  { %v387_v49 = vmax.f32 %v276_v46, 0.0  ;;  %v331_v46 = vadd.f32 %v2955_v22, %v2960_v33  ;;  %v336_v48 = vadd.f32 %v2955_v22, %v2965_v39 }
 0x13d   :  { %v280_v50 = vpop.f32.mrf.mxu0  ;;  %v2975_v51 = vpop.f32.mrf.mxu1 }
 0x13e   :  { %v281_v52 = vadd.f32 %v2955_v22, %v280_v50  ;;  %2119 = vmatmul.mubr.f32.gmra.mxu1 %v387_v49  ;;  %v398_v47 = vmax.f32 %v331_v46, 0.0  ;;  %v399_v26 = vmax.f32 %v336_v48, 0.0  ;;  %v341_v49 = vadd.f32 %v2955_v22, %v2970_v45  ;;  %v648_v45 = vld [vmem:[#allocation8 + $0x8] sm:$0xff] }
 0x13f   :  { %v2016_v53 = vpop.f32.mrf.mxu0  ;;  %2121 = vmatprep.mubr.msk.f32.mxu1 %vm2756_vm0, %v2755_v0  ;;  %v2055_v54 = vpop.f32.mrf.mxu1  ;;  %v346_v50 = vadd.f32 %v2955_v22, %v2975_v51  ;;  %721 = vmatprep.subr.mxu0 %v648_v45 }
 0x140   :  { %v388_v55 = vmax.f32 %v281_v52, 0.0  ;;  %v400_v33 = vmax.f32 %v341_v49, 0.0  ;;  %v647_v53 = vld [vmem:[#allocation8] sm:$0xff] }
 0x141   :  { %v285_v56 = vpop.f32.mrf.mxu0  ;;  %v2980_v57 = vpop.f32.mrf.mxu1  ;;  %v401_v39 = vmax.f32 %v346_v50, 0.0  ;;  %722 = vmatpush1.msra.mxu0 %v647_v53 }
 0x142   :  { %v286_v58 = vadd.f32 %v2955_v22, %v285_v56  ;;  %2122 = vmatmul.mubr.f32.gmra.mxu1 %v388_v55  ;;  %v351_v52 = vadd.f32 %v2955_v22, %v2980_v57  ;;  %2291 = vmatprep.subr.mxu0 %v2755_v0 }
 0x143   :  { %v2019_v59 = vpop.f32.mrf.mxu0  ;;  %2124 = vmatprep.mubr.msk.f32.mxu1 %vm2756_vm0, %v2755_v0  ;;  %v2058_v60 = vpop.f32.mrf.mxu1 }
 0x144   :  { %v389_v61 = vmax.f32 %v286_v58, 0.0  ;;  %v402_v54 = vmax.f32 %v351_v52, 0.0 }
 0x145   :  { %v290_v62 = vpop.f32.mrf.mxu0  ;;  %v2985_v63 = vpop.f32.mrf.mxu1 }
 0x146   :  { %v291_v1 = vadd.f32 %v2955_v22, %v290_v62  ;;  %2125 = vmatmul.mubr.f32.gmra.mxu1 %v389_v61  ;;  %v356_v55 = vadd.f32 %v2955_v22, %v2985_v63 }
 0x147   :  { %v2022_v2 = vpop.f32.mrf.mxu0  ;;  %2127 = vmatprep.mubr.msk.f32.mxu1 %vm2756_vm0, %v2755_v0  ;;  %v2061_v3 = vpop.f32.mrf.mxu1 }
 0x148   :  { %v390_v4 = vmax.f32 %v291_v1, 0.0  ;;  %v403_v51 = vmax.f32 %v356_v55, 0.0  ;;  %v1046_v3 = vld [vmem:[#allocation10 + $0x78] sm:$0xff] }
 0x149   :  { %v295_v5 = vpop.f32.mrf.mxu0  ;;  %v2990_v6 = vpop.f32.mrf.mxu1  ;;  %2185 = vmatpush3.msra.mxu1 %v1046_v3 }
 0x14a   :  { %v296_v7 = vadd.f32 %v2955_v22, %v295_v5  ;;  %2128 = vmatmul.mubr.f32.gmra.mxu1 %v390_v4  ;;  %v361_v56 = vadd.f32 %v2955_v22, %v2990_v6  ;;  %v1045_v4 = vld [vmem:[#allocation10 + $0x70] sm:$0xff]  ;;  %2186 = vmatprep.subr.mxu1 %v2755_v0  ;;  %v1044_v5 = vld [vmem:[#allocation10 + $0x68] sm:$0xff]  ;;  %v1042_v6 = vld [vmem:[#allocation10 + $0x58] sm:$0xff] }
 0x14b   :  { %v2025_v8 = vpop.f32.mrf.mxu0  ;;  %2130 = vmatprep.mubr.msk.f32.mxu1 %vm2756_vm0, %v2755_v0  ;;  %v2064_v9 = vpop.f32.mrf.mxu1  ;;  %2187 = vmatpush3.msra.mxu1 %v1045_v4 }
 0x14c   :  { %v391_v10 = vmax.f32 %v296_v7, 0.0  ;;  %v404_v57 = vmax.f32 %v361_v56, 0.0  ;;  %2188 = vmatprep.subr.mxu1 %v2755_v0  ;;  %v1041_v7 = vld [vmem:[#allocation10 + $0x50] sm:$0xff]  ;;  %v1040_v8 = vld [vmem:[#allocation10 + $0x48] sm:$0xff]  ;;  %v1039_v9 = vld [vmem:[#allocation10 + $0x40] sm:$0xff] }
 0x14d   :  { %v300_v11 = vpop.f32.mrf.mxu0  ;;  %v2995_v12 = vpop.f32.mrf.mxu1  ;;  %2189 = vmatpush3.msra.mxu1 %v1044_v5 }
 0x14e   :  { %v301_v13 = vadd.f32 %v2955_v22, %v300_v11  ;;  %2131 = vmatmul.mubr.f32.gmra.mxu1 %v391_v10  ;;  %v366_v58 = vadd.f32 %v2955_v22, %v2995_v12  ;;  %2190 = vmatprep.subr.mxu1 %v2755_v0  ;;  %v1038_v10 = vld [vmem:[#allocation10 + $0x38] sm:$0xff]  ;;  %v1037_v11 = vld [vmem:[#allocation10 + $0x30] sm:$0xff]  ;;  %v1036_v12 = vld [vmem:[#allocation10 + $0x28] sm:$0xff] }
 0x14f   :  { %v2028_v14 = vpop.f32.mrf.mxu0  ;;  %2133 = vmatprep.mubr.msk.f32.mxu1 %vm2756_vm0, %v2755_v0  ;;  %v2067_v15 = vpop.f32.mrf.mxu1 }
 0x150   :  { %v392_v16 = vmax.f32 %v301_v13, 0.0  ;;  %v405_v59 = vmax.f32 %v366_v58, 0.0  ;;  %v1035_v13 = vld [vmem:[#allocation10 + $0x20] sm:$0xff]  ;;  %v3081_v14 = vld [vmem:[%s3464_s4] ss:$0 sm:$0xff] }
 0x151   :  { %v305_v17 = vpop.f32.mrf.mxu0  ;;  %v3000_v18 = vpop.f32.mrf.mxu1 }
 0x152   :  { %v306_v19 = vadd.f32 %v2955_v22, %v305_v17  ;;  %2134 = vmatmul.mubr.f32.gmra.mxu1 %v392_v16  ;;  %v371_v60 = vadd.f32 %v2955_v22, %v3000_v18 }
 0x153   :  { %v2031_v20 = vpop.f32.mrf.mxu0  ;;  %2136 = vmatprep.mubr.msk.f32.mxu1 %vm2756_vm0, %v2755_v0  ;;  %v2070_v21 = vpop.f32.mrf.mxu1 }
 0x154   :  { %v393_v23 = vmax.f32 %v306_v19, 0.0  ;;  %v406_v61 = vmax.f32 %v371_v60, 0.0 }
 0x155   :  { %v310_v24 = vpop.f32.mrf.mxu0  ;;  %v3005_v25 = vpop.f32.mrf.mxu1 }
 0x156   :  { %v311_v27 = vadd.f32 %v2955_v22, %v310_v24  ;;  %2137 = vmatmul.mubr.f32.gmra.mxu1 %v393_v23  ;;  %v376_v62 = vadd.f32 %v2955_v22, %v3005_v25 }
 0x157   :  { %v2034_v28 = vpop.f32.mrf.mxu0  ;;  %2139 = vmatprep.mubr.msk.f32.mxu1 %vm2756_vm0, %v2755_v0  ;;  %v2073_v29 = vpop.f32.mrf.mxu1 }
 0x158   :  { %v394_v30 = vmax.f32 %v311_v27, 0.0  ;;  %v407_v63 = vmax.f32 %v376_v62, 0.0 }
 0x159   :  { %v315_v31 = vpop.f32.mrf.mxu0  ;;  %v380_v32 = vpop.f32.mrf.mxu1 }
 0x15a   :  { %v316_v34 = vadd.f32 %v2955_v22, %v315_v31  ;;  %2140 = vmatmul.mubr.f32.gmra.mxu1 %v394_v30  ;;  %v381_v1 = vadd.f32 %v2955_v22, %v380_v32 }
 0x15b   :  { %v2037_v35 = vpop.f32.mrf.mxu0  ;;  %2142 = vmatprep.mubr.msk.f32.mxu1 %vm2756_vm0, %v2755_v0  ;;  %v2076_v36 = vpop.f32.mrf.mxu1 }
 0x15c   :  { %v395_v37 = vmax.f32 %v316_v34, 0.0  ;;  %v408_v2 = vmax.f32 %v381_v1, 0.0 }
 0x15d   :  { %v320_v38 = vpop.f32.mrf.mxu0 }
 0x15e   :  { %v321_v40 = vadd.f32 %v2955_v22, %v320_v38  ;;  %2143 = vmatmul.mubr.f32.gmra.mxu1 %v395_v37  ;;  %v1043_v22 = vld [vmem:[#allocation10 + $0x60] sm:$0xff] }
 0x15f   :  { %v2040_v42 = vpop.f32.mrf.mxu0  ;;  %2145 = vmatprep.mubr.msk.f32.mxu1 %vm2756_vm0, %v2755_v0  ;;  %2191 = vmatpush3.msra.mxu1 %v1043_v22 }
 0x160   :  { %v396_v43 = vmax.f32 %v321_v40, 0.0  ;;  %2192 = vmatprep.subr.mxu1 %v2755_v0 }
 0x161   :  { %2193 = vmatpush3.msra.mxu1 %v1042_v6 }
 0x162   :  { %2146 = vmatmul.mubr.f32.gmra.mxu1 %v396_v43  ;;  %2194 = vmatprep.subr.mxu1 %v2755_v0 }
 0x163   :  { %2148 = vmatprep.mubr.msk.f32.mxu1 %vm2756_vm0, %v2755_v0  ;;  %2195 = vmatpush3.msra.mxu1 %v1041_v7 }
 0x164   :  { %2196 = vmatprep.subr.mxu1 %v2755_v0 }
 0x165   :  { %2197 = vmatpush3.msra.mxu1 %v1040_v8 }
 0x166   :  { %2149 = vmatmul.mubr.f32.gmra.mxu1 %v397_v44  ;;  %2198 = vmatprep.subr.mxu1 %v2755_v0 }
 0x167   :  { %2151 = vmatprep.mubr.msk.f32.mxu1 %vm2756_vm0, %v2755_v0  ;;  %2199 = vmatpush3.msra.mxu1 %v1039_v9 }
 0x168   :  { %2200 = vmatprep.subr.mxu1 %v2755_v0 }
 0x169   :  { %2201 = vmatpush3.msra.mxu1 %v1038_v10 }
 0x16a   :  { %2152 = vmatmul.mubr.f32.gmra.mxu1 %v398_v47  ;;  %2202 = vmatprep.subr.mxu1 %v2755_v0 }
 0x16b   :  { %2154 = vmatprep.mubr.msk.f32.mxu1 %vm2756_vm0, %v2755_v0  ;;  %2203 = vmatpush3.msra.mxu1 %v1037_v11 }
 0x16c   :  { %2204 = vmatprep.subr.mxu1 %v2755_v0 }
 0x16d   :  { %2205 = vmatpush3.msra.mxu1 %v1036_v12 }
 0x16e   :  { %2155 = vmatmul.mubr.f32.gmra.mxu1 %v399_v26  ;;  %2206 = vmatprep.subr.mxu1 %v2755_v0 }
 0x16f   :  { %2157 = vmatprep.mubr.msk.f32.mxu1 %vm2756_vm0, %v2755_v0  ;;  %2207 = vmatpush3.msra.mxu1 %v1035_v13 }
 0x170   :  { %2208 = vmatprep.subr.mxu1 %v2755_v0 }
 0x172   :  { %2158 = vmatmul.mubr.f32.gmra.mxu1 %v400_v33 }
 0x173   :  { %2160 = vmatprep.mubr.msk.f32.mxu1 %vm2756_vm0, %v2755_v0 }
 0x176   :  { %2161 = vmatmul.mubr.f32.gmra.mxu1 %v401_v39 }
 0x177   :  { %2163 = vmatprep.mubr.msk.f32.mxu1 %vm2756_vm0, %v2755_v0 }
 0x17a   :  { %2164 = vmatmul.mubr.f32.gmra.mxu1 %v402_v54 }
 0x17b   :  { %2166 = vmatprep.mubr.msk.f32.mxu1 %vm2756_vm0, %v2755_v0 }
 0x17e   :  { %2167 = vmatmul.mubr.f32.gmra.mxu1 %v403_v51 }
 0x17f   :  { %2169 = vmatprep.mubr.msk.f32.mxu1 %vm2756_vm0, %v2755_v0 }
 0x182   :  { %2170 = vmatmul.mubr.f32.gmra.mxu1 %v404_v57 }
 0x183   :  { %2172 = vmatprep.mubr.msk.f32.mxu1 %vm2756_vm0, %v2755_v0 }
 0x186   :  { %2173 = vmatmul.mubr.f32.gmra.mxu1 %v405_v59 }
 0x187   :  { %2175 = vmatprep.mubr.msk.f32.mxu1 %vm2756_vm0, %v2755_v0 }
 0x18a   :  { %2176 = vmatmul.mubr.f32.gmra.mxu1 %v406_v61 }
 0x18b   :  { %2178 = vmatprep.mubr.msk.f32.mxu1 %vm2756_vm0, %v2755_v0 }
 0x18e   :  { %2179 = vmatmul.mubr.f32.gmra.mxu1 %v407_v63 }
 0x18f   :  { %2181 = vmatprep.mubr.msk.f32.mxu1 %vm2756_vm0, %v2755_v0 }
 0x192   :  { %2182 = vmatmul.mubr.f32.gmra.mxu1 %v408_v2 }
 0x193   :  { %2216 = vmatprep.mubr.msk.f32.mxu1 %vm2756_vm0, %v2755_v0 }
 0x1f2   :  { %v498_v15 = vpop.f32.mrf.mxu1 }
 0x1f3   :  { %v499_v16 = vadd.f32 %v3081_v14, %v498_v15 }
 0x1f4   :  { %v2111_v17 = vpop.f32.mrf.mxu1 }
 0x1f5   :  { %v622_v18 = vmax.f32 %v499_v16, 0.0 }
 0x1f6   :  { %v503_v19 = vpop.f32.mrf.mxu1 }
 0x1f7   :  { %1632 = vst [vmem:[#allocation13] sm:$0xff] %v622_v18  ;;  %v504_v20 = vadd.f32 %v3081_v14, %v503_v19  ;;  %756 = vmatmul.mubr.f32.vlgmr.msra.gmra.mxu0 %v622_v18 }
 0x1f8   :  { %v2114_v21 = vpop.f32.mrf.mxu1  ;;  %761 = vmatprep.mubr.f32.mxu0 %v2755_v0 }
 0x1f9   :  { %v623_v23 = vmax.f32 %v504_v20, 0.0 }
 0x1fa   :  { %v508_v24 = vpop.f32.mrf.mxu1 }
 0x1fb   :  { %1633 = vst [vmem:[#allocation13 + $0x28] sm:$0xff] %v623_v23  ;;  %v509_v25 = vadd.f32 %v3081_v14, %v508_v24  ;;  %762 = vmatmul.mubr.f32.gmra.mxu0 %v623_v23 }
 0x1fc   :  { %v2117_v27 = vpop.f32.mrf.mxu1  ;;  %767 = vmatprep.mubr.f32.mxu0 %v2755_v0 }
 0x1fd   :  { %v624_v28 = vmax.f32 %v509_v25, 0.0 }
 0x1fe   :  { %v513_v29 = vpop.f32.mrf.mxu1 }
 0x1ff   :  { %1634 = vst [vmem:[#allocation13 + $0x50] sm:$0xff] %v624_v28  ;;  %v514_v30 = vadd.f32 %v3081_v14, %v513_v29  ;;  %768 = vmatmul.mubr.f32.gmra.mxu0 %v624_v28 }
 0x200   :  { %v2120_v31 = vpop.f32.mrf.mxu1  ;;  %773 = vmatprep.mubr.f32.mxu0 %v2755_v0 }
 0x201   :  { %v625_v32 = vmax.f32 %v514_v30, 0.0 }
 0x202   :  { %v518_v34 = vpop.f32.mrf.mxu1 }
 0x203   :  { %1635 = vst [vmem:[#allocation13 + $0x78] sm:$0xff] %v625_v32  ;;  %v519_v35 = vadd.f32 %v3081_v14, %v518_v34  ;;  %774 = vmatmul.mubr.f32.gmra.mxu0 %v625_v32 }
 0x204   :  { %v2123_v36 = vpop.f32.mrf.mxu1  ;;  %779 = vmatprep.mubr.f32.mxu0 %v2755_v0 }
 0x205   :  { %v626_v37 = vmax.f32 %v519_v35, 0.0  ;;  %v1034_v35 = vld [vmem:[#allocation10 + $0x18] sm:$0xff] }
 0x206   :  { %v523_v38 = vpop.f32.mrf.mxu1  ;;  %2209 = vmatpush3.msra.mxu1 %v1034_v35 }
 0x207   :  { %1636 = vst [vmem:[#allocation13 + $0xa0] sm:$0xff] %v626_v37  ;;  %v524_v40 = vadd.f32 %v3081_v14, %v523_v38  ;;  %780 = vmatmul.mubr.f32.gmra.mxu0 %v626_v37  ;;  %2210 = vmatprep.subr.mxu1 %v2755_v0 }
 0x208   :  { %v2126_v41 = vpop.f32.mrf.mxu1  ;;  %785 = vmatprep.mubr.f32.mxu0 %v2755_v0 }
 0x209   :  { %v627_v42 = vmax.f32 %v524_v40, 0.0  ;;  %v1033_v41 = vld [vmem:[#allocation10 + $0x10] sm:$0xff] }
 0x20a   :  { %v528_v43 = vpop.f32.mrf.mxu1  ;;  %2211 = vmatpush3.msra.mxu1 %v1033_v41 }
 0x20b   :  { %1637 = vst [vmem:[#allocation13 + $0xc8] sm:$0xff] %v627_v42  ;;  %v529_v44 = vadd.f32 %v3081_v14, %v528_v43  ;;  %786 = vmatmul.mubr.f32.gmra.mxu0 %v627_v42  ;;  %2212 = vmatprep.subr.mxu1 %v2755_v0 }
 0x20c   :  { %v2129_v46 = vpop.f32.mrf.mxu1  ;;  %791 = vmatprep.mubr.f32.mxu0 %v2755_v0 }
 0x20d   :  { %v628_v47 = vmax.f32 %v529_v44, 0.0 }
 0x20e   :  { %v533_v48 = vpop.f32.mrf.mxu1 }
 0x20f   :  { %1638 = vst [vmem:[#allocation13 + $0xf0] sm:$0xff] %v628_v47  ;;  %v534_v26 = vadd.f32 %v3081_v14, %v533_v48  ;;  %792 = vmatmul.mubr.f32.gmra.mxu0 %v628_v47 }
 0x210   :  { %v2132_v49 = vpop.f32.mrf.mxu1  ;;  %797 = vmatprep.mubr.f32.mxu0 %v2755_v0 }
 0x211   :  { %v629_v33 = vmax.f32 %v534_v26, 0.0 }
 0x212   :  { %v538_v50 = vpop.f32.mrf.mxu1 }
 0x213   :  { %1639 = vst [vmem:[#allocation13 + $0x118] sm:$0xff] %v629_v33  ;;  %v539_v39 = vadd.f32 %v3081_v14, %v538_v50  ;;  %798 = vmatmul.mubr.f32.gmra.mxu0 %v629_v33  ;;  %v1032_v33 = vld [vmem:[#allocation10 + $0x8] sm:$0xff] }
 0x214   :  { %v2135_v52 = vpop.f32.mrf.mxu1  ;;  %803 = vmatprep.mubr.f32.mxu0 %v2755_v0  ;;  %2213 = vmatpush3.msra.mxu1 %v1032_v33 }
 0x215   :  { %v630_v45 = vmax.f32 %v539_v39, 0.0  ;;  %2214 = vmatprep.subr.mxu1 %v2755_v0 }
 0x216   :  { %v543_v53 = vpop.f32.mrf.mxu1 }
 0x217   :  { %1640 = vst [vmem:[#allocation13 + $0x140] sm:$0xff] %v630_v45  ;;  %v544_v54 = vadd.f32 %v3081_v14, %v543_v53  ;;  %804 = vmatmul.mubr.f32.gmra.mxu0 %v630_v45  ;;  %v1031_v53 = vld [vmem:[#allocation10] sm:$0xff] }
 0x218   :  { %v2138_v55 = vpop.f32.mrf.mxu1  ;;  %809 = vmatprep.mubr.f32.mxu0 %v2755_v0  ;;  %2215 = vmatpush3.msra.mxu1 %v1031_v53 }
 0x219   :  { %v631_v51 = vmax.f32 %v544_v54, 0.0 }
 0x21a   :  { %v548_v56 = vpop.f32.mrf.mxu1 }
 0x21b   :  { %1641 = vst [vmem:[#allocation13 + $0x168] sm:$0xff] %v631_v51  ;;  %v549_v57 = vadd.f32 %v3081_v14, %v548_v56  ;;  %810 = vmatmul.mubr.f32.gmra.mxu0 %v631_v51 }
 0x21c   :  { %v2141_v58 = vpop.f32.mrf.mxu1  ;;  %815 = vmatprep.mubr.f32.mxu0 %v2755_v0 }
 0x21d   :  { %v632_v59 = vmax.f32 %v549_v57, 0.0  ;;  %v681_v58 = vlaneseq }
 0x21e   :  { %v553_v60 = vpop.f32.mrf.mxu1 }
 0x21f   :  { %1642 = vst [vmem:[#allocation13 + $0x190] sm:$0xff] %v632_v59  ;;  %v554_v61 = vadd.f32 %v3081_v14, %v553_v60  ;;  %816 = vmatmul.mubr.f32.gmra.mxu0 %v632_v59  ;;  %v682_v59 = vshrl.u32 %v681_v58, 7 }
 0x220   :  { %v2144_v62 = vpop.f32.mrf.mxu1  ;;  %821 = vmatprep.mubr.f32.mxu0 %v2755_v0 }
 0x221   :  { %v633_v63 = vmax.f32 %v554_v61, 0.0  ;;  %v683_v60 = vsub.s32 0, %v682_v59  ;;  %v679_v61 = vld [vmem:[%s3466_s6] sm:$0x3]  ;;  %v687_v62 = vsub.s32 1, %v682_v59 }
 0x222   :  { %v558_v1 = vpop.f32.mrf.mxu1 }
 0x223   :  { %1643 = vst [vmem:[#allocation13 + $0x1b8] sm:$0xff] %v633_v63  ;;  %v559_v2 = vadd.f32 %v3081_v14, %v558_v1  ;;  %822 = vmatmul.mubr.f32.gmra.mxu0 %v633_v63  ;;  %v1284_v63 = vld [vmem:[#allocation11 + $0x78] sm:$0xff]  ;;  %v3140_v1 = vrot.slane %v679_v61, %v683_v60 }
 0x224   :  { %v2147_v3 = vpop.f32.mrf.mxu1  ;;  %827 = vmatprep.mubr.f32.mxu0 %v2755_v0  ;;  %2292 = vmatpush3.msra.mxu0 %v1284_v63 }
 0x225   :  { %v634_v4 = vmax.f32 %v559_v2, 0.0  ;;  %2293 = vmatprep.subr.mxu0 %v2755_v0  ;;  %v1282_v2 = vld [vmem:[#allocation11 + $0x68] sm:$0xff]  ;;  %v3143_v3 = vrot.slane %v679_v61, %v687_v62 }
 0x226   :  { %v563_v5 = vpop.f32.mrf.mxu1 }
 0x227   :  { %1644 = vst [vmem:[#allocation13 + $0x1e0] sm:$0xff] %v634_v4  ;;  %v564_v22 = vadd.f32 %v3081_v14, %v563_v5  ;;  %828 = vmatmul.mubr.f32.gmra.mxu0 %v634_v4  ;;  %v1281_v4 = vld [vmem:[#allocation11 + $0x60] sm:$0xff] }
 0x228   :  { %v2150_v6 = vpop.f32.mrf.mxu1  ;;  %833 = vmatprep.mubr.f32.mxu0 %v2755_v0 }
 0x229   :  { %v635_v7 = vmax.f32 %v564_v22, 0.0  ;;  %v1280_v6 = vld [vmem:[#allocation11 + $0x58] sm:$0xff] }
 0x22a   :  { %v568_v8 = vpop.f32.mrf.mxu1 }
 0x22b   :  { %1645 = vst [vmem:[#allocation13 + $0x208] sm:$0xff] %v635_v7  ;;  %v569_v9 = vadd.f32 %v3081_v14, %v568_v8  ;;  %834 = vmatmul.mubr.f32.gmra.mxu0 %v635_v7 }
 0x22c   :  { %v2153_v10 = vpop.f32.mrf.mxu1  ;;  %839 = vmatprep.mubr.f32.mxu0 %v2755_v0 }
 0x22d   :  { %v636_v11 = vmax.f32 %v569_v9, 0.0  ;;  %v1279_v9 = vld [vmem:[#allocation11 + $0x50] sm:$0xff] }
 0x22e   :  { %v573_v12 = vpop.f32.mrf.mxu1 }
 0x22f   :  { %1646 = vst [vmem:[#allocation13 + $0x230] sm:$0xff] %v636_v11  ;;  %v574_v13 = vadd.f32 %v3081_v14, %v573_v12  ;;  %840 = vmatmul.mubr.f32.gmra.mxu0 %v636_v11 }
 0x230   :  { %v2156_v15 = vpop.f32.mrf.mxu1  ;;  %845 = vmatprep.mubr.f32.mxu0 %v2755_v0 }
 0x231   :  { %v637_v16 = vmax.f32 %v574_v13, 0.0  ;;  %v1278_v13 = vld [vmem:[#allocation11 + $0x48] sm:$0xff] }
 0x232   :  { %v578_v17 = vpop.f32.mrf.mxu1 }
 0x233   :  { %1647 = vst [vmem:[#allocation13 + $0x258] sm:$0xff] %v637_v16  ;;  %v579_v18 = vadd.f32 %v3081_v14, %v578_v17  ;;  %846 = vmatmul.mubr.f32.gmra.mxu0 %v637_v16 }
 0x234   :  { %v2159_v19 = vpop.f32.mrf.mxu1  ;;  %851 = vmatprep.mubr.f32.mxu0 %v2755_v0 }
 0x235   :  { %v638_v20 = vmax.f32 %v579_v18, 0.0  ;;  %v1277_v18 = vld [vmem:[#allocation11 + $0x40] sm:$0xff] }
 0x236   :  { %v583_v21 = vpop.f32.mrf.mxu1 }
 0x237   :  { %1648 = vst [vmem:[#allocation13 + $0x280] sm:$0xff] %v638_v20  ;;  %v584_v23 = vadd.f32 %v3081_v14, %v583_v21  ;;  %852 = vmatmul.mubr.f32.gmra.mxu0 %v638_v20 }
 0x238   :  { %v2162_v24 = vpop.f32.mrf.mxu1  ;;  %857 = vmatprep.mubr.f32.mxu0 %v2755_v0 }
 0x239   :  { %v639_v25 = vmax.f32 %v584_v23, 0.0  ;;  %v1276_v23 = vld [vmem:[#allocation11 + $0x38] sm:$0xff] }
 0x23a   :  { %v588_v27 = vpop.f32.mrf.mxu1 }
 0x23b   :  { %1649 = vst [vmem:[#allocation13 + $0x2a8] sm:$0xff] %v639_v25  ;;  %v589_v28 = vadd.f32 %v3081_v14, %v588_v27  ;;  %858 = vmatmul.mubr.f32.gmra.mxu0 %v639_v25 }
 0x23c   :  { %v2165_v29 = vpop.f32.mrf.mxu1  ;;  %863 = vmatprep.mubr.f32.mxu0 %v2755_v0 }
 0x23d   :  { %v640_v30 = vmax.f32 %v589_v28, 0.0  ;;  %v1275_v28 = vld [vmem:[#allocation11 + $0x30] sm:$0xff] }
 0x23e   :  { %v593_v31 = vpop.f32.mrf.mxu1 }
 0x23f   :  { %1650 = vst [vmem:[#allocation13 + $0x2d0] sm:$0xff] %v640_v30  ;;  %v594_v32 = vadd.f32 %v3081_v14, %v593_v31  ;;  %864 = vmatmul.mubr.f32.gmra.mxu0 %v640_v30 }
 0x240   :  { %v2168_v34 = vpop.f32.mrf.mxu1  ;;  %869 = vmatprep.mubr.f32.mxu0 %v2755_v0 }
 0x241   :  { %v641_v36 = vmax.f32 %v594_v32, 0.0  ;;  %v1274_v32 = vld [vmem:[#allocation11 + $0x28] sm:$0xff] }
 0x242   :  { %v598_v37 = vpop.f32.mrf.mxu1 }
 0x243   :  { %1651 = vst [vmem:[#allocation13 + $0x2f8] sm:$0xff] %v641_v36  ;;  %v599_v38 = vadd.f32 %v3081_v14, %v598_v37  ;;  %870 = vmatmul.mubr.f32.gmra.mxu0 %v641_v36  ;;  %v1273_v37 = vld [vmem:[#allocation11 + $0x20] sm:$0xff] }
 0x244   :  { %v2171_v40 = vpop.f32.mrf.mxu1  ;;  %875 = vmatprep.mubr.f32.mxu0 %v2755_v0 }
 0x245   :  { %v642_v42 = vmax.f32 %v599_v38, 0.0 }
 0x246   :  { %v603_v43 = vpop.f32.mrf.mxu1 }
 0x247   :  { %1652 = vst [vmem:[#allocation13 + $0x320] sm:$0xff] %v642_v42  ;;  %v604_v44 = vadd.f32 %v3081_v14, %v603_v43  ;;  %876 = vmatmul.mubr.f32.gmra.mxu0 %v642_v42  ;;  %v1272_v42 = vld [vmem:[#allocation11 + $0x18] sm:$0xff] }
 0x248   :  { %v2174_v46 = vpop.f32.mrf.mxu1  ;;  %881 = vmatprep.mubr.f32.mxu0 %v2755_v0 }
 0x249   :  { %v643_v47 = vmax.f32 %v604_v44, 0.0 }
 0x24a   :  { %v608_v48 = vpop.f32.mrf.mxu1 }
 0x24b   :  { %1653 = vst [vmem:[#allocation13 + $0x348] sm:$0xff] %v643_v47  ;;  %v609_v26 = vadd.f32 %v3081_v14, %v608_v48  ;;  %882 = vmatmul.mubr.f32.gmra.mxu0 %v643_v47  ;;  %v1271_v47 = vld [vmem:[#allocation11 + $0x10] sm:$0xff] }
 0x24c   :  { %v2177_v49 = vpop.f32.mrf.mxu1  ;;  %887 = vmatprep.mubr.f32.mxu0 %v2755_v0 }
 0x24d   :  { %v644_v50 = vmax.f32 %v609_v26, 0.0  ;;  %v146_v26 = vld [vmem:[#allocation2 + $0x8] sm:$0xff] }
 0x24e   :  { %v613_v39 = vpop.f32.mrf.mxu1 }
 0x24f   :  { %1654 = vst [vmem:[#allocation13 + $0x370] sm:$0xff] %v644_v50  ;;  %v614_v52 = vadd.f32 %v3081_v14, %v613_v39  ;;  %888 = vmatmul.mubr.f32.gmra.mxu0 %v644_v50  ;;  %v1270_v50 = vld [vmem:[#allocation11 + $0x8] sm:$0xff] }
 0x250   :  { %v2180_v45 = vpop.f32.mrf.mxu1  ;;  %893 = vmatprep.mubr.f32.mxu0 %v2755_v0 }
 0x251   :  { %v645_v54 = vmax.f32 %v614_v52, 0.0 }
 0x252   :  { %v618_v55 = vpop.f32.mrf.mxu1 }
 0x253   :  { %1655 = vst [vmem:[#allocation13 + $0x398] sm:$0xff] %v645_v54  ;;  %v619_v51 = vadd.f32 %v3081_v14, %v618_v55  ;;  %894 = vmatmul.mubr.f32.gmra.mxu0 %v645_v54  ;;  %v1283_v14 = vld [vmem:[#allocation11 + $0x70] sm:$0xff]  ;;  %v1269_v55 = vld [vmem:[#allocation11] sm:$0xff] }
 0x254   :  { %v2183_v56 = vpop.f32.mrf.mxu1  ;;  %899 = vmatprep.mubr.f32.mxu0 %v2755_v0  ;;  %2294 = vmatpush3.msra.mxu0 %v1283_v14 }
 0x255   :  { %v646_v57 = vmax.f32 %v619_v51, 0.0  ;;  %2295 = vmatprep.subr.mxu0 %v2755_v0  ;;  %v147_v56 = vld [vmem:[#allocation2 + $0x18] sm:$0xff] }
 0x256   :  { %2296 = vmatpush3.msra.mxu0 %v1282_v2 }
 0x257   :  { %1656 = vst [vmem:[#allocation13 + $0x3c0] sm:$0xff] %v646_v57  ;;  %900 = vmatmul.mubr.f32.gmra.mxu0 %v646_v57  ;;  %2297 = vmatprep.subr.mxu0 %v2755_v0 }
 0x258   :  { %2323 = vmatprep.mubr.msk.f32.mxu0 %vm2756_vm0, %v2755_v0  ;;  %2298 = vmatpush3.msra.mxu0 %v1281_v4  ;;  %v148_v4 = vld [vmem:[#allocation2 + $0x28] sm:$0xff] }
 0x259   :  { %2299 = vmatprep.subr.mxu0 %v2755_v0 }
 0x25a   :  { %2300 = vmatpush3.msra.mxu0 %v1280_v6 }
 0x25b   :  { %2301 = vmatprep.subr.mxu0 %v2755_v0 }
 0x25c   :  { %2302 = vmatpush3.msra.mxu0 %v1279_v9 }
 0x25d   :  { %2303 = vmatprep.subr.mxu0 %v2755_v0 }
 0x25e   :  { %2304 = vmatpush3.msra.mxu0 %v1278_v13 }
 0x25f   :  { %2305 = vmatprep.subr.mxu0 %v2755_v0 }
 0x260   :  { %2306 = vmatpush3.msra.mxu0 %v1277_v18 }
 0x261   :  { %2307 = vmatprep.subr.mxu0 %v2755_v0 }
 0x262   :  { %2308 = vmatpush3.msra.mxu0 %v1276_v23 }
 0x263   :  { %2309 = vmatprep.subr.mxu0 %v2755_v0 }
 0x264   :  { %2310 = vmatpush3.msra.mxu0 %v1275_v28 }
 0x265   :  { %2311 = vmatprep.subr.mxu0 %v2755_v0 }
 0x266   :  { %2312 = vmatpush3.msra.mxu0 %v1274_v32 }
 0x267   :  { %2313 = vmatprep.subr.mxu0 %v2755_v0 }
 0x268   :  { %2314 = vmatpush3.msra.mxu0 %v1273_v37 }
 0x269   :  { %2315 = vmatprep.subr.mxu0 %v2755_v0 }
 0x26a   :  { %2316 = vmatpush3.msra.mxu0 %v1272_v42 }
 0x26b   :  { %2317 = vmatprep.subr.mxu0 %v2755_v0 }
 0x26c   :  { %2318 = vmatpush3.msra.mxu0 %v1271_v47 }
 0x26d   :  { %2319 = vmatprep.subr.mxu0 %v2755_v0 }
 0x26e   :  { %2320 = vmatpush3.msra.mxu0 %v1270_v50 }
 0x26f   :  { %2321 = vmatprep.subr.mxu0 %v2755_v0 }
 0x270   :  { %2322 = vmatpush3.msra.mxu0 %v1269_v55 }
 0x2b7   :  { %v757_v5 = vpop.f32.mrf.mxu0 }
 0x2b8   :  { %v3147_v22 = vadd.f32 %v757_v5, %v3140_v1 }
 0x2b9   :  { %v759_v7 = vpop.f32.mrf.mxu0 }
 0x2ba   :  { %1657 = vst [vmem:[#allocation13 + $0x8] sm:$0xff] %v3147_v22  ;;  %v760_v8 = vadd.f32 %v759_v7, %v3143_v3 }
 0x2bb   :  { %v763_v10 = vpop.f32.mrf.mxu0 }
 0x2bc   :  { %v906_v11 = vmul.f32 0.5, %v760_v8  ;;  %1658 = vst [vmem:[#allocation13 + $0x10] sm:$0xff] %v760_v8  ;;  %v3154_v12 = vadd.f32 %v763_v10, %v3140_v1 }
 0x2bd   :  { %v765_v15 = vpop.f32.mrf.mxu0 }
 0x2be   :  { %v931_v16 = vmul.f32 1.442695, %v906_v11  ;;  %1659 = vst [vmem:[#allocation13 + $0x30] sm:$0xff] %v3154_v12  ;;  %v766_v17 = vadd.f32 %v765_v15, %v3143_v3  ;;  %v149_v15 = vld [vmem:[#allocation2 + $0x38] sm:$0xff] }
 0x2bf   :  { %v769_v19 = vpop.f32.mrf.mxu0 }
 0x2c0   :  { %2445 = vpow2.f32 %v931_v16  ;;  %v907_v20 = vmul.f32 0.5, %v766_v17  ;;  %1660 = vst [vmem:[#allocation13 + $0x38] sm:$0xff] %v766_v17  ;;  %v3161_v21 = vadd.f32 %v769_v19, %v3140_v1 }
 0x2c1   :  { %v771_v24 = vpop.f32.mrf.mxu0 }
 0x2c2   :  { %v933_v25 = vmul.f32 1.442695, %v907_v20  ;;  %1661 = vst [vmem:[#allocation13 + $0x58] sm:$0xff] %v3161_v21  ;;  %v772_v27 = vadd.f32 %v771_v24, %v3143_v3 }
 0x2c3   :  { %v775_v29 = vpop.f32.mrf.mxu0 }
 0x2c4   :  { %2447 = vpow2.f32 %v933_v25  ;;  %v908_v30 = vmul.f32 0.5, %v772_v27  ;;  %1662 = vst [vmem:[#allocation13 + $0x60] sm:$0xff] %v772_v27  ;;  %v3168_v31 = vadd.f32 %v775_v29, %v3140_v1  ;;  %v150_v27 = vld [vmem:[#allocation2 + $0x48] sm:$0xff] }
 0x2c5   :  { %v777_v34 = vpop.f32.mrf.mxu0 }
 0x2c6   :  { %v935_v35 = vmul.f32 1.442695, %v908_v30  ;;  %1663 = vst [vmem:[#allocation13 + $0x80] sm:$0xff] %v3168_v31  ;;  %v778_v36 = vadd.f32 %v777_v34, %v3143_v3 }
 0x2c7   :  { %v781_v38 = vpop.f32.mrf.mxu0 }
 0x2c8   :  { %2449 = vpow2.f32 %v935_v35  ;;  %v909_v40 = vmul.f32 0.5, %v778_v36  ;;  %1664 = vst [vmem:[#allocation13 + $0x88] sm:$0xff] %v778_v36  ;;  %v3175_v41 = vadd.f32 %v781_v38, %v3140_v1  ;;  %v151_v38 = vld [vmem:[#allocation2 + $0x58] sm:$0xff] }
 0x2c9   :  { %v783_v43 = vpop.f32.mrf.mxu0 }
 0x2ca   :  { %v937_v44 = vmul.f32 1.442695, %v909_v40  ;;  %1665 = vst [vmem:[#allocation13 + $0xa8] sm:$0xff] %v3175_v41  ;;  %v784_v46 = vadd.f32 %v783_v43, %v3143_v3 }
 0x2cb   :  { %v787_v48 = vpop.f32.mrf.mxu0 }
 0x2cc   :  { %2451 = vpow2.f32 %v937_v44  ;;  %v910_v49 = vmul.f32 0.5, %v784_v46  ;;  %1666 = vst [vmem:[#allocation13 + $0xb0] sm:$0xff] %v784_v46  ;;  %v3182_v33 = vadd.f32 %v787_v48, %v3140_v1 }
 0x2cd   :  { %v2446_v39 = vpop.eup %2445  ;;  %v789_v52 = vpop.f32.mrf.mxu0 }
 0x2ce   :  { %v939_v45 = vmul.f32 1.442695, %v910_v49  ;;  %1667 = vst [vmem:[#allocation13 + $0xd0] sm:$0xff] %v3182_v33  ;;  %v790_v53 = vadd.f32 %v789_v52, %v3143_v3  ;;  %v981_v54 = vmul.f32 %v2446_v39, %v146_v26  ;;  %v152_v49 = vld [vmem:[#allocation2 + $0x68] sm:$0xff] }
 0x2cf   :  { %v793_v51 = vpop.f32.mrf.mxu0 }
 0x2d0   :  { %2453 = vpow2.f32 %v939_v45  ;;  %v911_v57 = vmul.f32 0.5, %v790_v53  ;;  %1668 = vst [vmem:[#allocation13 + $0xd8] sm:$0xff] %v790_v53  ;;  %v3189_v58 = vadd.f32 %v793_v51, %v3140_v1  ;;  %v1006_v59 = vadd.f32 %v981_v54, %v3147_v22 }
 0x2d1   :  { %v2448_v60 = vpop.eup %2447  ;;  %v795_v61 = vpop.f32.mrf.mxu0 }
 0x2d2   :  { %v941_v62 = vmul.f32 1.442695, %v911_v57  ;;  %1669 = vst [vmem:[#allocation13 + $0xf8] sm:$0xff] %v3189_v58  ;;  %v796_v63 = vadd.f32 %v795_v61, %v3143_v3  ;;  %2217 = vmatmul.mubr.f32.vlgmr.msra.gmra.mxu1 %v1006_v59  ;;  %1707 = vst [vmem:[#allocation13 + $0x18] sm:$0xff] %v1006_v59  ;;  %v982_v14 = vmul.f32 %v2448_v60, %v147_v56  ;;  %v153_v56 = vld [vmem:[#allocation2 + $0x78] sm:$0xff] }
 0x2d3   :  { %v799_v2 = vpop.f32.mrf.mxu0  ;;  %2219 = vmatprep.mubr.msk.f32.mxu1 %vm2756_vm0, %v2755_v0 }
 0x2d4   :  { %2455 = vpow2.f32 %v941_v62  ;;  %v912_v5 = vmul.f32 0.5, %v796_v63  ;;  %1670 = vst [vmem:[#allocation13 + $0x100] sm:$0xff] %v796_v63  ;;  %v3198_v22 = vadd.f32 %v799_v2, %v3140_v1  ;;  %v1007_v6 = vadd.f32 %v982_v14, %v3154_v12 }
 0x2d5   :  { %v2450_v7 = vpop.eup %2449  ;;  %v801_v8 = vpop.f32.mrf.mxu0 }
 0x2d6   :  { %v943_v9 = vmul.f32 1.442695, %v912_v5  ;;  %1671 = vst [vmem:[#allocation13 + $0x120] sm:$0xff] %v3198_v22  ;;  %v802_v10 = vadd.f32 %v801_v8, %v3143_v3  ;;  %2220 = vmatmul.mubr.f32.gmra.mxu1 %v1007_v6  ;;  %1708 = vst [vmem:[#allocation13 + $0x40] sm:$0xff] %v1007_v6  ;;  %v983_v11 = vmul.f32 %v2450_v7, %v148_v4  ;;  %v154_v4 = vld [vmem:[#allocation2 + $0x88] sm:$0xff] }
 0x2d7   :  { %v805_v13 = vpop.f32.mrf.mxu0  ;;  %2222 = vmatprep.mubr.msk.f32.mxu1 %vm2756_vm0, %v2755_v0 }
 0x2d8   :  { %2457 = vpow2.f32 %v943_v9  ;;  %v913_v16 = vmul.f32 0.5, %v802_v10  ;;  %1672 = vst [vmem:[#allocation13 + $0x128] sm:$0xff] %v802_v10  ;;  %v3206_v12 = vadd.f32 %v805_v13, %v3140_v1  ;;  %v1008_v17 = vadd.f32 %v983_v11, %v3161_v21 }
 0x2d9   :  { %v2452_v18 = vpop.eup %2451  ;;  %v807_v19 = vpop.f32.mrf.mxu0 }
 0x2da   :  { %v945_v20 = vmul.f32 1.442695, %v913_v16  ;;  %1673 = vst [vmem:[#allocation13 + $0x148] sm:$0xff] %v3206_v12  ;;  %v808_v23 = vadd.f32 %v807_v19, %v3143_v3  ;;  %2223 = vmatmul.mubr.f32.gmra.mxu1 %v1008_v17  ;;  %1709 = vst [vmem:[#allocation13 + $0x68] sm:$0xff] %v1008_v17  ;;  %v984_v24 = vmul.f32 %v2452_v18, %v149_v15  ;;  %v155_v15 = vld [vmem:[#allocation2 + $0x98] sm:$0xff] }
 0x2db   :  { %v811_v25 = vpop.f32.mrf.mxu0  ;;  %2225 = vmatprep.mubr.msk.f32.mxu1 %vm2756_vm0, %v2755_v0 }
 0x2dc   :  { %2459 = vpow2.f32 %v945_v20  ;;  %v914_v28 = vmul.f32 0.5, %v808_v23  ;;  %1674 = vst [vmem:[#allocation13 + $0x150] sm:$0xff] %v808_v23  ;;  %v3214_v21 = vadd.f32 %v811_v25, %v3140_v1  ;;  %v1009_v29 = vadd.f32 %v984_v24, %v3168_v31 }
 0x2dd   :  { %v2454_v30 = vpop.eup %2453  ;;  %v813_v32 = vpop.f32.mrf.mxu0 }
 0x2de   :  { %v947_v34 = vmul.f32 1.442695, %v914_v28  ;;  %1675 = vst [vmem:[#allocation13 + $0x170] sm:$0xff] %v3214_v21  ;;  %v814_v35 = vadd.f32 %v813_v32, %v3143_v3  ;;  %2226 = vmatmul.mubr.f32.gmra.mxu1 %v1009_v29  ;;  %1710 = vst [vmem:[#allocation13 + $0x90] sm:$0xff] %v1009_v29  ;;  %v985_v36 = vmul.f32 %v2454_v30, %v150_v27  ;;  %v156_v27 = vld [vmem:[#allocation2 + $0xa8] sm:$0xff] }
 0x2df   :  { %v817_v37 = vpop.f32.mrf.mxu0  ;;  %2228 = vmatprep.mubr.msk.f32.mxu1 %vm2756_vm0, %v2755_v0 }
 0x2e0   :  { %2461 = vpow2.f32 %v947_v34  ;;  %v915_v40 = vmul.f32 0.5, %v814_v35  ;;  %1676 = vst [vmem:[#allocation13 + $0x178] sm:$0xff] %v814_v35  ;;  %v3222_v31 = vadd.f32 %v817_v37, %v3140_v1  ;;  %v1010_v42 = vadd.f32 %v985_v36, %v3175_v41 }
 0x2e1   :  { %v2456_v43 = vpop.eup %2455  ;;  %v819_v44 = vpop.f32.mrf.mxu0 }
 0x2e2   :  { %v949_v46 = vmul.f32 1.442695, %v915_v40  ;;  %1677 = vst [vmem:[#allocation13 + $0x198] sm:$0xff] %v3222_v31  ;;  %v820_v47 = vadd.f32 %v819_v44, %v3143_v3  ;;  %2229 = vmatmul.mubr.f32.gmra.mxu1 %v1010_v42  ;;  %1711 = vst [vmem:[#allocation13 + $0xb8] sm:$0xff] %v1010_v42  ;;  %v986_v48 = vmul.f32 %v2456_v43, %v151_v38  ;;  %v157_v38 = vld [vmem:[#allocation2 + $0xb8] sm:$0xff] }
 0x2e3   :  { %v823_v26 = vpop.f32.mrf.mxu0  ;;  %2231 = vmatprep.mubr.msk.f32.mxu1 %vm2756_vm0, %v2755_v0 }
 0x2e4   :  { %2463 = vpow2.f32 %v949_v46  ;;  %v916_v50 = vmul.f32 0.5, %v820_v47  ;;  %1678 = vst [vmem:[#allocation13 + $0x1a0] sm:$0xff] %v820_v47  ;;  %v3230_v41 = vadd.f32 %v823_v26, %v3140_v1  ;;  %v1011_v39 = vadd.f32 %v986_v48, %v3182_v33 }
 0x2e5   :  { %v2458_v52 = vpop.eup %2457  ;;  %v825_v45 = vpop.f32.mrf.mxu0 }
 0x2e6   :  { %v951_v53 = vmul.f32 1.442695, %v916_v50  ;;  %1679 = vst [vmem:[#allocation13 + $0x1c0] sm:$0xff] %v3230_v41  ;;  %v826_v54 = vadd.f32 %v825_v45, %v3143_v3  ;;  %2232 = vmatmul.mubr.f32.gmra.mxu1 %v1011_v39  ;;  %1712 = vst [vmem:[#allocation13 + $0xe0] sm:$0xff] %v1011_v39  ;;  %v987_v55 = vmul.f32 %v2458_v52, %v152_v49  ;;  %v158_v49 = vld [vmem:[#allocation2 + $0xc8] sm:$0xff] }
 0x2e7   :  { %v829_v51 = vpop.f32.mrf.mxu0  ;;  %2234 = vmatprep.mubr.msk.f32.mxu1 %vm2756_vm0, %v2755_v0 }
 0x2e8   :  { %2465 = vpow2.f32 %v951_v53  ;;  %v917_v57 = vmul.f32 0.5, %v826_v54  ;;  %1680 = vst [vmem:[#allocation13 + $0x1c8] sm:$0xff] %v826_v54  ;;  %v3238_v33 = vadd.f32 %v829_v51, %v3140_v1  ;;  %v1012_v59 = vadd.f32 %v987_v55, %v3189_v58 }
 0x2e9   :  { %v2460_v60 = vpop.eup %2459  ;;  %v831_v61 = vpop.f32.mrf.mxu0 }
 0x2ea   :  { %v953_v62 = vmul.f32 1.442695, %v917_v57  ;;  %1681 = vst [vmem:[#allocation13 + $0x1e8] sm:$0xff] %v3238_v33  ;;  %v832_v63 = vadd.f32 %v831_v61, %v3143_v3  ;;  %2235 = vmatmul.mubr.f32.gmra.mxu1 %v1012_v59  ;;  %1713 = vst [vmem:[#allocation13 + $0x108] sm:$0xff] %v1012_v59  ;;  %v988_v14 = vmul.f32 %v2460_v60, %v153_v56  ;;  %v159_v56 = vld [vmem:[#allocation2 + $0xd8] sm:$0xff] }
 0x2eb   :  { %v835_v2 = vpop.f32.mrf.mxu0  ;;  %2237 = vmatprep.mubr.msk.f32.mxu1 %vm2756_vm0, %v2755_v0 }
 0x2ec   :  { %2467 = vpow2.f32 %v953_v62  ;;  %v918_v5 = vmul.f32 0.5, %v832_v63  ;;  %1682 = vst [vmem:[#allocation13 + $0x1f0] sm:$0xff] %v832_v63  ;;  %v3246_v58 = vadd.f32 %v835_v2, %v3140_v1  ;;  %v1013_v6 = vadd.f32 %v988_v14, %v3198_v22 }
 0x2ed   :  { %v2462_v7 = vpop.eup %2461  ;;  %v837_v8 = vpop.f32.mrf.mxu0 }
 0x2ee   :  { %v955_v9 = vmul.f32 1.442695, %v918_v5  ;;  %1683 = vst [vmem:[#allocation13 + $0x210] sm:$0xff] %v3246_v58  ;;  %v838_v10 = vadd.f32 %v837_v8, %v3143_v3  ;;  %2238 = vmatmul.mubr.f32.gmra.mxu1 %v1013_v6  ;;  %1714 = vst [vmem:[#allocation13 + $0x130] sm:$0xff] %v1013_v6  ;;  %v989_v11 = vmul.f32 %v2462_v7, %v154_v4  ;;  %v160_v4 = vld [vmem:[#allocation2 + $0xe8] sm:$0xff] }
 0x2ef   :  { %v841_v13 = vpop.f32.mrf.mxu0  ;;  %2240 = vmatprep.mubr.msk.f32.mxu1 %vm2756_vm0, %v2755_v0 }
 0x2f0   :  { %2469 = vpow2.f32 %v955_v9  ;;  %v919_v16 = vmul.f32 0.5, %v838_v10  ;;  %1684 = vst [vmem:[#allocation13 + $0x218] sm:$0xff] %v838_v10  ;;  %v3254_v22 = vadd.f32 %v841_v13, %v3140_v1  ;;  %v1014_v17 = vadd.f32 %v989_v11, %v3206_v12 }
 0x2f1   :  { %v2464_v18 = vpop.eup %2463  ;;  %v843_v19 = vpop.f32.mrf.mxu0 }
 0x2f2   :  { %v957_v20 = vmul.f32 1.442695, %v919_v16  ;;  %1685 = vst [vmem:[#allocation13 + $0x238] sm:$0xff] %v3254_v22  ;;  %v844_v23 = vadd.f32 %v843_v19, %v3143_v3  ;;  %2241 = vmatmul.mubr.f32.gmra.mxu1 %v1014_v17  ;;  %1715 = vst [vmem:[#allocation13 + $0x158] sm:$0xff] %v1014_v17  ;;  %v990_v24 = vmul.f32 %v2464_v18, %v155_v15  ;;  %v161_v15 = vld [vmem:[#allocation2 + $0xf8] sm:$0xff] }
 0x2f3   :  { %v847_v25 = vpop.f32.mrf.mxu0  ;;  %2243 = vmatprep.mubr.msk.f32.mxu1 %vm2756_vm0, %v2755_v0 }
 0x2f4   :  { %2471 = vpow2.f32 %v957_v20  ;;  %v920_v28 = vmul.f32 0.5, %v844_v23  ;;  %1686 = vst [vmem:[#allocation13 + $0x240] sm:$0xff] %v844_v23  ;;  %v3262_v12 = vadd.f32 %v847_v25, %v3140_v1  ;;  %v1015_v29 = vadd.f32 %v990_v24, %v3214_v21 }
 0x2f5   :  { %v2466_v30 = vpop.eup %2465  ;;  %v849_v32 = vpop.f32.mrf.mxu0 }
 0x2f6   :  { %v959_v34 = vmul.f32 1.442695, %v920_v28  ;;  %1687 = vst [vmem:[#allocation13 + $0x260] sm:$0xff] %v3262_v12  ;;  %v850_v35 = vadd.f32 %v849_v32, %v3143_v3  ;;  %2244 = vmatmul.mubr.f32.gmra.mxu1 %v1015_v29  ;;  %1716 = vst [vmem:[#allocation13 + $0x180] sm:$0xff] %v1015_v29  ;;  %v991_v36 = vmul.f32 %v2466_v30, %v156_v27  ;;  %v162_v27 = vld [vmem:[#allocation2 + $0x108] sm:$0xff] }
 0x2f7   :  { %v853_v37 = vpop.f32.mrf.mxu0  ;;  %2246 = vmatprep.mubr.msk.f32.mxu1 %vm2756_vm0, %v2755_v0 }
 0x2f8   :  { %2473 = vpow2.f32 %v959_v34  ;;  %v921_v40 = vmul.f32 0.5, %v850_v35  ;;  %1688 = vst [vmem:[#allocation13 + $0x268] sm:$0xff] %v850_v35  ;;  %v3270_v21 = vadd.f32 %v853_v37, %v3140_v1  ;;  %v1016_v42 = vadd.f32 %v991_v36, %v3222_v31 }
 0x2f9   :  { %v2468_v43 = vpop.eup %2467  ;;  %v855_v44 = vpop.f32.mrf.mxu0 }
 0x2fa   :  { %v961_v46 = vmul.f32 1.442695, %v921_v40  ;;  %1689 = vst [vmem:[#allocation13 + $0x288] sm:$0xff] %v3270_v21  ;;  %v856_v47 = vadd.f32 %v855_v44, %v3143_v3  ;;  %2247 = vmatmul.mubr.f32.gmra.mxu1 %v1016_v42  ;;  %1717 = vst [vmem:[#allocation13 + $0x1a8] sm:$0xff] %v1016_v42  ;;  %v992_v48 = vmul.f32 %v2468_v43, %v157_v38  ;;  %v163_v38 = vld [vmem:[#allocation2 + $0x118] sm:$0xff] }
 0x2fb   :  { %v859_v26 = vpop.f32.mrf.mxu0  ;;  %2249 = vmatprep.mubr.msk.f32.mxu1 %vm2756_vm0, %v2755_v0 }
 0x2fc   :  { %2475 = vpow2.f32 %v961_v46  ;;  %v922_v50 = vmul.f32 0.5, %v856_v47  ;;  %1690 = vst [vmem:[#allocation13 + $0x290] sm:$0xff] %v856_v47  ;;  %v3278_v31 = vadd.f32 %v859_v26, %v3140_v1  ;;  %v1017_v39 = vadd.f32 %v992_v48, %v3230_v41 }
 0x2fd   :  { %v2470_v52 = vpop.eup %2469  ;;  %v861_v45 = vpop.f32.mrf.mxu0 }
 0x2fe   :  { %v963_v53 = vmul.f32 1.442695, %v922_v50  ;;  %1691 = vst [vmem:[#allocation13 + $0x2b0] sm:$0xff] %v3278_v31  ;;  %v862_v54 = vadd.f32 %v861_v45, %v3143_v3  ;;  %2250 = vmatmul.mubr.f32.gmra.mxu1 %v1017_v39  ;;  %1718 = vst [vmem:[#allocation13 + $0x1d0] sm:$0xff] %v1017_v39  ;;  %v993_v55 = vmul.f32 %v2470_v52, %v158_v49  ;;  %v164_v49 = vld [vmem:[#allocation2 + $0x128] sm:$0xff] }
 0x2ff   :  { %v865_v51 = vpop.f32.mrf.mxu0  ;;  %2252 = vmatprep.mubr.msk.f32.mxu1 %vm2756_vm0, %v2755_v0 }
 0x300   :  { %2477 = vpow2.f32 %v963_v53  ;;  %v923_v57 = vmul.f32 0.5, %v862_v54  ;;  %1692 = vst [vmem:[#allocation13 + $0x2b8] sm:$0xff] %v862_v54  ;;  %v3286_v41 = vadd.f32 %v865_v51, %v3140_v1  ;;  %v1018_v59 = vadd.f32 %v993_v55, %v3238_v33 }
 0x301   :  { %v2472_v60 = vpop.eup %2471  ;;  %v867_v61 = vpop.f32.mrf.mxu0 }
 0x302   :  { %v965_v62 = vmul.f32 1.442695, %v923_v57  ;;  %1693 = vst [vmem:[#allocation13 + $0x2d8] sm:$0xff] %v3286_v41  ;;  %v868_v63 = vadd.f32 %v867_v61, %v3143_v3  ;;  %2253 = vmatmul.mubr.f32.gmra.mxu1 %v1018_v59  ;;  %1719 = vst [vmem:[#allocation13 + $0x1f8] sm:$0xff] %v1018_v59  ;;  %v994_v14 = vmul.f32 %v2472_v60, %v159_v56  ;;  %v165_v56 = vld [vmem:[#allocation2 + $0x138] sm:$0xff] }
 0x303   :  { %v871_v2 = vpop.f32.mrf.mxu0  ;;  %2255 = vmatprep.mubr.msk.f32.mxu1 %vm2756_vm0, %v2755_v0 }
 0x304   :  { %2479 = vpow2.f32 %v965_v62  ;;  %v924_v5 = vmul.f32 0.5, %v868_v63  ;;  %1694 = vst [vmem:[#allocation13 + $0x2e0] sm:$0xff] %v868_v63  ;;  %v3294_v33 = vadd.f32 %v871_v2, %v3140_v1  ;;  %v1019_v6 = vadd.f32 %v994_v14, %v3246_v58  ;;  %v166_v2 = vld [vmem:[#allocation2 + $0x148] sm:$0xff] }
 0x305   :  { %v2474_v7 = vpop.eup %2473  ;;  %v873_v8 = vpop.f32.mrf.mxu0 }
 0x306   :  { %v967_v9 = vmul.f32 1.442695, %v924_v5  ;;  %1695 = vst [vmem:[#allocation13 + $0x300] sm:$0xff] %v3294_v33  ;;  %v874_v10 = vadd.f32 %v873_v8, %v3143_v3  ;;  %2256 = vmatmul.mubr.f32.gmra.mxu1 %v1019_v6  ;;  %1720 = vst [vmem:[#allocation13 + $0x220] sm:$0xff] %v1019_v6  ;;  %v995_v11 = vmul.f32 %v2474_v7, %v160_v4 }
 0x307   :  { %v877_v13 = vpop.f32.mrf.mxu0  ;;  %2258 = vmatprep.mubr.msk.f32.mxu1 %vm2756_vm0, %v2755_v0 }
 0x308   :  { %2481 = vpow2.f32 %v967_v9  ;;  %v925_v16 = vmul.f32 0.5, %v874_v10  ;;  %1696 = vst [vmem:[#allocation13 + $0x308] sm:$0xff] %v874_v10  ;;  %v3302_v58 = vadd.f32 %v877_v13, %v3140_v1  ;;  %v1020_v17 = vadd.f32 %v995_v11, %v3254_v22 }
 0x309   :  { %v2476_v18 = vpop.eup %2475  ;;  %v879_v19 = vpop.f32.mrf.mxu0 }
 0x30a   :  { %v969_v20 = vmul.f32 1.442695, %v925_v16  ;;  %1697 = vst [vmem:[#allocation13 + $0x328] sm:$0xff] %v3302_v58  ;;  %v880_v23 = vadd.f32 %v879_v19, %v3143_v3  ;;  %2259 = vmatmul.mubr.f32.gmra.mxu1 %v1020_v17  ;;  %1721 = vst [vmem:[#allocation13 + $0x248] sm:$0xff] %v1020_v17  ;;  %v996_v24 = vmul.f32 %v2476_v18, %v161_v15  ;;  %v169_v15 = vld [vmem:[#allocation2 + $0x178] sm:$0xff]  ;;  %v170_v18 = vld [vmem:[#allocation2 + $0x188] sm:$0xff] }
 0x30b   :  { %v883_v25 = vpop.f32.mrf.mxu0  ;;  %2261 = vmatprep.mubr.msk.f32.mxu1 %vm2756_vm0, %v2755_v0 }
 0x30c   :  { %2483 = vpow2.f32 %v969_v20  ;;  %v926_v28 = vmul.f32 0.5, %v880_v23  ;;  %1698 = vst [vmem:[#allocation13 + $0x330] sm:$0xff] %v880_v23  ;;  %v3310_v22 = vadd.f32 %v883_v25, %v3140_v1  ;;  %v1021_v29 = vadd.f32 %v996_v24, %v3262_v12  ;;  %v3352_v25 = vld [vmem:[%s3468_s8] ss:$0 sm:$0xff] }
 0x30d   :  { %v2478_v30 = vpop.eup %2477  ;;  %v885_v32 = vpop.f32.mrf.mxu0 }
 0x30e   :  { %v971_v34 = vmul.f32 1.442695, %v926_v28  ;;  %1699 = vst [vmem:[#allocation13 + $0x350] sm:$0xff] %v3310_v22  ;;  %v886_v35 = vadd.f32 %v885_v32, %v3143_v3  ;;  %2262 = vmatmul.mubr.f32.gmra.mxu1 %v1021_v29  ;;  %1722 = vst [vmem:[#allocation13 + $0x270] sm:$0xff] %v1021_v29  ;;  %v997_v36 = vmul.f32 %v2478_v30, %v162_v27 }
 0x30f   :  { %v889_v37 = vpop.f32.mrf.mxu0  ;;  %2264 = vmatprep.mubr.msk.f32.mxu1 %vm2756_vm0, %v2755_v0 }
 0x310   :  { %2485 = vpow2.f32 %v971_v34  ;;  %v927_v40 = vmul.f32 0.5, %v886_v35  ;;  %1700 = vst [vmem:[#allocation13 + $0x358] sm:$0xff] %v886_v35  ;;  %v3318_v12 = vadd.f32 %v889_v37, %v3140_v1  ;;  %v1022_v42 = vadd.f32 %v997_v36, %v3270_v21 }
 0x311   :  { %v2480_v43 = vpop.eup %2479  ;;  %v891_v44 = vpop.f32.mrf.mxu0 }
 0x312   :  { %v973_v46 = vmul.f32 1.442695, %v927_v40  ;;  %1701 = vst [vmem:[#allocation13 + $0x378] sm:$0xff] %v3318_v12  ;;  %v892_v47 = vadd.f32 %v891_v44, %v3143_v3  ;;  %2265 = vmatmul.mubr.f32.gmra.mxu1 %v1022_v42  ;;  %1723 = vst [vmem:[#allocation13 + $0x298] sm:$0xff] %v1022_v42  ;;  %v998_v48 = vmul.f32 %v2480_v43, %v163_v38 }
 0x313   :  { %v895_v26 = vpop.f32.mrf.mxu0  ;;  %2267 = vmatprep.mubr.msk.f32.mxu1 %vm2756_vm0, %v2755_v0 }
 0x314   :  { %2487 = vpow2.f32 %v973_v46  ;;  %v928_v50 = vmul.f32 0.5, %v892_v47  ;;  %1702 = vst [vmem:[#allocation13 + $0x380] sm:$0xff] %v892_v47  ;;  %v896_v21 = vadd.f32 %v895_v26, %v3140_v1  ;;  %v1023_v39 = vadd.f32 %v998_v48, %v3278_v31 }
 0x315   :  { %v2482_v52 = vpop.eup %2481  ;;  %v897_v45 = vpop.f32.mrf.mxu0 }
 0x316   :  { %v975_v53 = vmul.f32 1.442695, %v928_v50  ;;  %1703 = vst [vmem:[#allocation13 + $0x3a0] sm:$0xff] %v896_v21  ;;  %v898_v54 = vadd.f32 %v897_v45, %v3143_v3  ;;  %2268 = vmatmul.mubr.f32.gmra.mxu1 %v1023_v39  ;;  %1724 = vst [vmem:[#allocation13 + $0x2c0] sm:$0xff] %v1023_v39  ;;  %v999_v55 = vmul.f32 %v2482_v52, %v164_v49 }
 0x317   :  { %v901_v51 = vpop.f32.mrf.mxu0  ;;  %2270 = vmatprep.mubr.msk.f32.mxu1 %vm2756_vm0, %v2755_v0 }
 0x318   :  { %2489 = vpow2.f32 %v975_v53  ;;  %v929_v57 = vmul.f32 0.5, %v898_v54  ;;  %1704 = vst [vmem:[#allocation13 + $0x3a8] sm:$0xff] %v898_v54  ;;  %v902_v59 = vadd.f32 %v901_v51, %v3140_v1  ;;  %v1024_v31 = vadd.f32 %v999_v55, %v3286_v41 }
 0x319   :  { %v2484_v60 = vpop.eup %2483  ;;  %v903_v61 = vpop.f32.mrf.mxu0 }
 0x31a   :  { %v977_v62 = vmul.f32 1.442695, %v929_v57  ;;  %1705 = vst [vmem:[#allocation13 + $0x3c8] sm:$0xff] %v902_v59  ;;  %v904_v63 = vadd.f32 %v903_v61, %v3143_v3  ;;  %2271 = vmatmul.mubr.f32.gmra.mxu1 %v1024_v31  ;;  %1725 = vst [vmem:[#allocation13 + $0x2e8] sm:$0xff] %v1024_v31  ;;  %v1000_v14 = vmul.f32 %v2484_v60, %v165_v56  ;;  %v167_v3 = vld [vmem:[#allocation2 + $0x158] sm:$0xff] }
 0x31b   :  { %2273 = vmatprep.mubr.msk.f32.mxu1 %vm2756_vm0, %v2755_v0 }
 0x31c   :  { %2491 = vpow2.f32 %v977_v62  ;;  %v930_v4 = vmul.f32 0.5, %v904_v63  ;;  %1706 = vst [vmem:[#allocation13 + $0x3d0] sm:$0xff] %v904_v63  ;;  %v1025_v1 = vadd.f32 %v1000_v14, %v3294_v33  ;;  %v168_v33 = vld [vmem:[#allocation2 + $0x168] sm:$0xff] }
 0x31d   :  { %v2486_v5 = vpop.eup %2485 }
 0x31e   :  { %v979_v41 = vmul.f32 1.442695, %v930_v4  ;;  %2274 = vmatmul.mubr.f32.gmra.mxu1 %v1025_v1  ;;  %1726 = vst [vmem:[#allocation13 + $0x310] sm:$0xff] %v1025_v1  ;;  %v1001_v6 = vmul.f32 %v2486_v5, %v166_v2 }
 0x31f   :  { %2276 = vmatprep.mubr.msk.f32.mxu1 %vm2756_vm0, %v2755_v0 }
 0x320   :  { %2493 = vpow2.f32 %v979_v41  ;;  %v1026_v7 = vadd.f32 %v1001_v6, %v3302_v58 }
 0x321   :  { %v2488_v8 = vpop.eup %2487 }
 0x322   :  { %2277 = vmatmul.mubr.f32.gmra.mxu1 %v1026_v7  ;;  %1727 = vst [vmem:[#allocation13 + $0x338] sm:$0xff] %v1026_v7  ;;  %v1002_v9 = vmul.f32 %v2488_v8, %v167_v3 }
 0x323   :  { %2279 = vmatprep.mubr.msk.f32.mxu1 %vm2756_vm0, %v2755_v0 }
 0x324   :  { %v1027_v10 = vadd.f32 %v1002_v9, %v3310_v22 }
 0x325   :  { %v2490_v11 = vpop.eup %2489 }
 0x326   :  { %2280 = vmatmul.mubr.f32.gmra.mxu1 %v1027_v10  ;;  %1728 = vst [vmem:[#allocation13 + $0x360] sm:$0xff] %v1027_v10  ;;  %v1003_v13 = vmul.f32 %v2490_v11, %v168_v33 }
 0x327   :  { %2282 = vmatprep.mubr.msk.f32.mxu1 %vm2756_vm0, %v2755_v0 }
 0x328   :  { %v1028_v16 = vadd.f32 %v1003_v13, %v3318_v12 }
 0x329   :  { %v2492_v58 = vpop.eup %2491 }
 0x32a   :  { %2283 = vmatmul.mubr.f32.gmra.mxu1 %v1028_v16  ;;  %1729 = vst [vmem:[#allocation13 + $0x388] sm:$0xff] %v1028_v16  ;;  %v1004_v17 = vmul.f32 %v2492_v58, %v169_v15 }
 0x32b   :  { %2285 = vmatprep.mubr.msk.f32.mxu1 %vm2756_vm0, %v2755_v0 }
 0x32c   :  { %v1029_v19 = vadd.f32 %v1004_v17, %v896_v21 }
 0x32d   :  { %v2494_v20 = vpop.eup %2493 }
 0x32e   :  { %2286 = vmatmul.mubr.f32.gmra.mxu1 %v1029_v19  ;;  %1730 = vst [vmem:[#allocation13 + $0x3b0] sm:$0xff] %v1029_v19  ;;  %v1005_v23 = vmul.f32 %v2494_v20, %v170_v18 }
 0x32f   :  { %2288 = vmatprep.mubr.msk.f32.mxu1 %vm2756_vm0, %v2755_v0 }
 0x330   :  { %v1030_v24 = vadd.f32 %v1005_v23, %v902_v59 }
 0x332   :  { %2289 = vmatmul.mubr.f32.gmra.mxu1 %v1030_v24  ;;  %1731 = vst [vmem:[#allocation13 + $0x3d8] sm:$0xff] %v1030_v24 }
 0x392   :  { %v1120_v27 = vpop.f32.mrf.mxu1 }
 0x393   :  { %v1121_v28 = vadd.f32 %v3352_v25, %v1120_v27 }
 0x394   :  { %v2218_v22 = vpop.f32.mrf.mxu1 }
 0x395   :  { %v1244_v29 = vmax.f32 %v1121_v28, 0.0 }
 0x396   :  { %v1125_v30 = vpop.f32.mrf.mxu1 }
 0x397   :  { %v1126_v32 = vadd.f32 %v3352_v25, %v1125_v30  ;;  %2324 = vmatmul.mubr.f32.vlgmr.msra.gmra.mxu0 %v1244_v29 }
 0x398   :  { %v2221_v34 = vpop.f32.mrf.mxu1  ;;  %2326 = vmatprep.mubr.msk.f32.mxu0 %vm2756_vm0, %v2755_v0 }
 0x399   :  { %v1245_v35 = vmax.f32 %v1126_v32, 0.0 }
 0x39a   :  { %v1130_v36 = vpop.f32.mrf.mxu1 }
 0x39b   :  { %v1131_v37 = vadd.f32 %v3352_v25, %v1130_v36  ;;  %2327 = vmatmul.mubr.f32.gmra.mxu0 %v1245_v35 }
 0x39c   :  { %v2224_v38 = vpop.f32.mrf.mxu1  ;;  %2329 = vmatprep.mubr.msk.f32.mxu0 %vm2756_vm0, %v2755_v0 }
 0x39d   :  { %v1246_v40 = vmax.f32 %v1131_v37, 0.0 }
 0x39e   :  { %v1135_v12 = vpop.f32.mrf.mxu1 }
 0x39f   :  { %v1136_v42 = vadd.f32 %v3352_v25, %v1135_v12  ;;  %2330 = vmatmul.mubr.f32.gmra.mxu0 %v1246_v40 }
 0x3a0   :  { %v2227_v43 = vpop.f32.mrf.mxu1  ;;  %2332 = vmatprep.mubr.msk.f32.mxu0 %vm2756_vm0, %v2755_v0 }
 0x3a1   :  { %v1247_v44 = vmax.f32 %v1136_v42, 0.0 }
 0x3a2   :  { %v1140_v46 = vpop.f32.mrf.mxu1 }
 0x3a3   :  { %v1141_v47 = vadd.f32 %v3352_v25, %v1140_v46  ;;  %2333 = vmatmul.mubr.f32.gmra.mxu0 %v1247_v44 }
 0x3a4   :  { %v2230_v48 = vpop.f32.mrf.mxu1  ;;  %2335 = vmatprep.mubr.msk.f32.mxu0 %vm2756_vm0, %v2755_v0 }
 0x3a5   :  { %v1248_v26 = vmax.f32 %v1141_v47, 0.0 }
 0x3a6   :  { %v1145_v49 = vpop.f32.mrf.mxu1 }
 0x3a7   :  { %v1146_v50 = vadd.f32 %v3352_v25, %v1145_v49  ;;  %2336 = vmatmul.mubr.f32.gmra.mxu0 %v1248_v26 }
 0x3a8   :  { %v2233_v21 = vpop.f32.mrf.mxu1  ;;  %2338 = vmatprep.mubr.msk.f32.mxu0 %vm2756_vm0, %v2755_v0 }
 0x3a9   :  { %v1249_v39 = vmax.f32 %v1146_v50, 0.0 }
 0x3aa   :  { %v1150_v52 = vpop.f32.mrf.mxu1 }
 0x3ab   :  { %v1151_v45 = vadd.f32 %v3352_v25, %v1150_v52  ;;  %2339 = vmatmul.mubr.f32.gmra.mxu0 %v1249_v39 }
 0x3ac   :  { %v2236_v53 = vpop.f32.mrf.mxu1  ;;  %2341 = vmatprep.mubr.msk.f32.mxu0 %vm2756_vm0, %v2755_v0 }
 0x3ad   :  { %v1250_v54 = vmax.f32 %v1151_v45, 0.0 }
 0x3ae   :  { %v1155_v55 = vpop.f32.mrf.mxu1 }
 0x3af   :  { %v1156_v51 = vadd.f32 %v3352_v25, %v1155_v55  ;;  %2342 = vmatmul.mubr.f32.gmra.mxu0 %v1250_v54 }
 0x3b0   :  { %v2239_v56 = vpop.f32.mrf.mxu1  ;;  %2344 = vmatprep.mubr.msk.f32.mxu0 %vm2756_vm0, %v2755_v0 }
 0x3b1   :  { %v1251_v57 = vmax.f32 %v1156_v51, 0.0 }
 0x3b2   :  { %v1160_v59 = vpop.f32.mrf.mxu1 }
 0x3b3   :  { %v1161_v31 = vadd.f32 %v3352_v25, %v1160_v59  ;;  %2345 = vmatmul.mubr.f32.gmra.mxu0 %v1251_v57 }
 0x3b4   :  { %v2242_v60 = vpop.f32.mrf.mxu1  ;;  %2347 = vmatprep.mubr.msk.f32.mxu0 %vm2756_vm0, %v2755_v0 }
 0x3b5   :  { %v1252_v61 = vmax.f32 %v1161_v31, 0.0 }
 0x3b6   :  { %v1165_v62 = vpop.f32.mrf.mxu1 }
 0x3b7   :  { %v1166_v63 = vadd.f32 %v3352_v25, %v1165_v62  ;;  %2348 = vmatmul.mubr.f32.gmra.mxu0 %v1252_v61 }
 0x3b8   :  { %v2245_v14 = vpop.f32.mrf.mxu1  ;;  %2350 = vmatprep.mubr.msk.f32.mxu0 %vm2756_vm0, %v2755_v0 }
 0x3b9   :  { %v1253_v2 = vmax.f32 %v1166_v63, 0.0  ;;  %v3430_v14 = vld [vmem:[%s3470_s10] ss:$0 sm:$0xff]  ;;  %s2757_s10 = smov [#allocation13]  }
 0x3ba   :  { %v1170_v4 = vpop.f32.mrf.mxu1  ;;  %s1762_s13 = sshll.u32 %s2757_s10, 4  ;;  %s1763_s13 = int_to_ptr.vmem [resolvable:$true] %s1762_s13 }
 0x3bb   :  { %v1171_v1 = vadd.f32 %v3352_v25, %v1170_v4  ;;  %2351 = vmatmul.mubr.f32.gmra.mxu0 %v1253_v2  ;;  %s2715_s1 = scalar_lea.vmem %s1763_s13, 16000  ;;  %p2720_p3 = scmp.lt.s32.totalorder %s1763_s13, %s1763_s13 }
 0x3bc   :  { %v2248_v5 = vpop.f32.mrf.mxu1  ;;  %2353 = vmatprep.mubr.msk.f32.mxu0 %vm2756_vm0, %v2755_v0  ;;  %p2716_p2 = scmp.ne.s32.totalorder %s1763_s13, %s2715_s1  ;;  %p2721_p4 = scmp.lt.s32.totalorder %s2715_s1, %s2715_s1 }
 0x3bd   :  { %v1254_v41 = vmax.f32 %v1171_v1, 0.0 }
 0x3be   :  { %v1175_v6 = vpop.f32.mrf.mxu1  ;;  %p2722_p5 = por %p2721_p4, %p2720_p3 }
 0x3bf   :  { %v1176_v3 = vadd.f32 %v3352_v25, %v1175_v6  ;;  %2354 = vmatmul.mubr.f32.gmra.mxu0 %v1254_v41 }
 0x3c0   :  { %v2251_v7 = vpop.f32.mrf.mxu1  ;;  %2356 = vmatprep.mubr.msk.f32.mxu0 %vm2756_vm0, %v2755_v0  ;;  %p2723_p6 = pnand %p2722_p5, %p2716_p2 }
 0x3c1   :  { %v1255_v8 = vmax.f32 %v1176_v3, 0.0 }
 0x3c2   :  { %v1180_v9 = vpop.f32.mrf.mxu1 }
 0x3c3   :  { %v1181_v33 = vadd.f32 %v3352_v25, %v1180_v9  ;;  %2357 = vmatmul.mubr.f32.gmra.mxu0 %v1255_v8 }
 0x3c4   :  { %v2254_v10 = vpop.f32.mrf.mxu1  ;;  %2359 = vmatprep.mubr.msk.f32.mxu0 %vm2756_vm0, %v2755_v0 }
 0x3c5   :  { %v1256_v11 = vmax.f32 %v1181_v33, 0.0 }
 0x3c6   :  { %v1185_v13 = vpop.f32.mrf.mxu1 }
 0x3c7   :  { %v1186_v15 = vadd.f32 %v3352_v25, %v1185_v13  ;;  %2360 = vmatmul.mubr.f32.gmra.mxu0 %v1256_v11 }
 0x3c8   :  { %v2257_v16 = vpop.f32.mrf.mxu1  ;;  %2362 = vmatprep.mubr.msk.f32.mxu0 %vm2756_vm0, %v2755_v0 }
 0x3c9   :  { %v1257_v58 = vmax.f32 %v1186_v15, 0.0 }
 0x3ca   :  { %v1190_v17 = vpop.f32.mrf.mxu1 }
 0x3cb   :  { %v1191_v18 = vadd.f32 %v3352_v25, %v1190_v17  ;;  %2363 = vmatmul.mubr.f32.gmra.mxu0 %v1257_v58 }
 0x3cc   :  { %v2260_v19 = vpop.f32.mrf.mxu1  ;;  %2365 = vmatprep.mubr.msk.f32.mxu0 %vm2756_vm0, %v2755_v0 }
 0x3cd   :  { %v1258_v20 = vmax.f32 %v1191_v18, 0.0 }
 0x3ce   :  { %v1195_v23 = vpop.f32.mrf.mxu1 }
 0x3cf   :  { %v1196_v24 = vadd.f32 %v3352_v25, %v1195_v23  ;;  %2366 = vmatmul.mubr.f32.gmra.mxu0 %v1258_v20 }
 0x3d0   :  { %v2263_v27 = vpop.f32.mrf.mxu1  ;;  %2368 = vmatprep.mubr.msk.f32.mxu0 %vm2756_vm0, %v2755_v0 }
 0x3d1   :  { %v1259_v28 = vmax.f32 %v1196_v24, 0.0 }
 0x3d2   :  { %v1200_v22 = vpop.f32.mrf.mxu1 }
 0x3d3   :  { %v1201_v29 = vadd.f32 %v3352_v25, %v1200_v22  ;;  %2369 = vmatmul.mubr.f32.gmra.mxu0 %v1259_v28 }
 0x3d4   :  { %v2266_v30 = vpop.f32.mrf.mxu1  ;;  %2371 = vmatprep.mubr.msk.f32.mxu0 %vm2756_vm0, %v2755_v0 }
 0x3d5   :  { %v1260_v32 = vmax.f32 %v1201_v29, 0.0 }
 0x3d6   :  { %v1205_v34 = vpop.f32.mrf.mxu1 }
 0x3d7   :  { %v1206_v35 = vadd.f32 %v3352_v25, %v1205_v34  ;;  %2372 = vmatmul.mubr.f32.gmra.mxu0 %v1260_v32 }
 0x3d8   :  { %v2269_v36 = vpop.f32.mrf.mxu1  ;;  %2374 = vmatprep.mubr.msk.f32.mxu0 %vm2756_vm0, %v2755_v0 }
 0x3d9   :  { %v1261_v37 = vmax.f32 %v1206_v35, 0.0 }
 0x3da   :  { %v1210_v38 = vpop.f32.mrf.mxu1 }
 0x3db   :  { %v1211_v40 = vadd.f32 %v3352_v25, %v1210_v38  ;;  %2375 = vmatmul.mubr.f32.gmra.mxu0 %v1261_v37 }
 0x3dc   :  { %v2272_v12 = vpop.f32.mrf.mxu1  ;;  %2377 = vmatprep.mubr.msk.f32.mxu0 %vm2756_vm0, %v2755_v0 }
 0x3dd   :  { %v1262_v42 = vmax.f32 %v1211_v40, 0.0 }
 0x3de   :  { %v1215_v43 = vpop.f32.mrf.mxu1 }
 0x3df   :  { %v1216_v44 = vadd.f32 %v3352_v25, %v1215_v43  ;;  %2378 = vmatmul.mubr.f32.gmra.mxu0 %v1262_v42 }
 0x3e0   :  { %v2275_v46 = vpop.f32.mrf.mxu1  ;;  %2380 = vmatprep.mubr.msk.f32.mxu0 %vm2756_vm0, %v2755_v0 }
 0x3e1   :  { %v1263_v47 = vmax.f32 %v1216_v44, 0.0 }
 0x3e2   :  { %v1220_v48 = vpop.f32.mrf.mxu1 }
 0x3e3   :  { %v1221_v26 = vadd.f32 %v3352_v25, %v1220_v48  ;;  %2381 = vmatmul.mubr.f32.gmra.mxu0 %v1263_v47 }
 0x3e4   :  { %v2278_v49 = vpop.f32.mrf.mxu1  ;;  %2383 = vmatprep.mubr.msk.f32.mxu0 %vm2756_vm0, %v2755_v0 }
 0x3e5   :  { %v1264_v50 = vmax.f32 %v1221_v26, 0.0 }
 0x3e6   :  { %v1225_v21 = vpop.f32.mrf.mxu1 }
 0x3e7   :  { %v1226_v39 = vadd.f32 %v3352_v25, %v1225_v21  ;;  %2384 = vmatmul.mubr.f32.gmra.mxu0 %v1264_v50 }
 0x3e8   :  { %v2281_v52 = vpop.f32.mrf.mxu1  ;;  %2386 = vmatprep.mubr.msk.f32.mxu0 %vm2756_vm0, %v2755_v0 }
 0x3e9   :  { %v1265_v45 = vmax.f32 %v1226_v39, 0.0 }
 0x3ea   :  { %v1230_v53 = vpop.f32.mrf.mxu1 }
 0x3eb   :  { %v1231_v54 = vadd.f32 %v3352_v25, %v1230_v53  ;;  %2387 = vmatmul.mubr.f32.gmra.mxu0 %v1265_v45 }
 0x3ec   :  { %v2284_v55 = vpop.f32.mrf.mxu1  ;;  %2389 = vmatprep.mubr.msk.f32.mxu0 %vm2756_vm0, %v2755_v0 }
 0x3ed   :  { %v1266_v51 = vmax.f32 %v1231_v54, 0.0 }
 0x3ee   :  { %v1235_v56 = vpop.f32.mrf.mxu1 }
 0x3ef   :  { %v1236_v57 = vadd.f32 %v3352_v25, %v1235_v56  ;;  %2390 = vmatmul.mubr.f32.gmra.mxu0 %v1266_v51 }
 0x3f0   :  { %v2287_v59 = vpop.f32.mrf.mxu1  ;;  %2392 = vmatprep.mubr.msk.f32.mxu0 %vm2756_vm0, %v2755_v0 }
 0x3f1   :  { %v1267_v31 = vmax.f32 %v1236_v57, 0.0 }
 0x3f2   :  { %v1240_v60 = vpop.f32.mrf.mxu1 }
 0x3f3   :  { %v1241_v61 = vadd.f32 %v3352_v25, %v1240_v60  ;;  %2393 = vmatmul.mubr.f32.gmra.mxu0 %v1267_v31 }
 0x3f4   :  { %v2290_v62 = vpop.f32.mrf.mxu1  ;;  %2395 = vmatprep.mubr.msk.f32.mxu0 %vm2756_vm0, %v2755_v0 }
 0x3f5   :  { %v1268_v63 = vmax.f32 %v1241_v61, 0.0 }
 0x3f7   :  { %2396 = vmatmul.mubr.f32.gmra.mxu0 %v1268_v63 }
 0x457   :  { %v1358_v2 = vpop.f32.mrf.mxu0 }
 0x458   :  { %v1359_v4 = vadd.f32 %v3430_v14, %v1358_v2 }
 0x459   :  { %v2325_v1 = vpop.f32.mrf.mxu0 }
 0x45a   :  { %v1781_v5 = vmul.f32 -1.442695, %v1359_v4 }
 0x45b   :  { %v1363_v41 = vpop.f32.mrf.mxu0 }
 0x45c   :  { %2495 = vpow2.f32 %v1781_v5  ;;  %v1364_v25 = vadd.f32 %v3430_v14, %v1363_v41 }
 0x45d   :  { %v2328_v6 = vpop.f32.mrf.mxu0 }
 0x45e   :  { %v1782_v3 = vmul.f32 -1.442695, %v1364_v25 }
 0x45f   :  { %v1368_v7 = vpop.f32.mrf.mxu0 }
 0x460   :  { %2497 = vpow2.f32 %v1782_v3  ;;  %v1369_v0 = vadd.f32 %v3430_v14, %v1368_v7 }
 0x461   :  { %v2331_v8 = vpop.f32.mrf.mxu0 }
 0x462   :  { %v1783_v9 = vmul.f32 -1.442695, %v1369_v0 }
 0x463   :  { %v1373_v33 = vpop.f32.mrf.mxu0 }
 0x464   :  { %2499 = vpow2.f32 %v1783_v9  ;;  %v1374_v10 = vadd.f32 %v3430_v14, %v1373_v33 }
 0x465   :  { %v2334_v11 = vpop.f32.mrf.mxu0 }
 0x466   :  { %v1784_v13 = vmul.f32 -1.442695, %v1374_v10 }
 0x467   :  { %v1378_v15 = vpop.f32.mrf.mxu0 }
 0x468   :  { %2501 = vpow2.f32 %v1784_v13  ;;  %v1379_v16 = vadd.f32 %v3430_v14, %v1378_v15 }
 0x469   :  { %v2496_v58 = vpop.eup %2495  ;;  %v2337_v17 = vpop.f32.mrf.mxu0 }
 0x46a   :  { %v1557_v18 = vadd.f32 1.0, %v2496_v58  ;;  %v1785_v19 = vmul.f32 -1.442695, %v1379_v16 }
 0x46b   :  { %v1383_v20 = vpop.f32.mrf.mxu0 }
 0x46c   :  { %2503 = vrcp.f32 %v1557_v18  ;;  %v1384_v23 = vadd.f32 %v3430_v14, %v1383_v20 }
 0x46d   :  { %v2498_v24 = vpop.eup %2497  ;;  %2505 = vpow2.f32 %v1785_v19  ;;  %v2340_v27 = vpop.f32.mrf.mxu0 }
 0x46e   :  { %v1558_v28 = vadd.f32 1.0, %v2498_v24  ;;  %v1786_v22 = vmul.f32 -1.442695, %v1384_v23 }
 0x46f   :  { %v1388_v29 = vpop.f32.mrf.mxu0 }
 0x470   :  { %2507 = vrcp.f32 %v1558_v28  ;;  %v1389_v30 = vadd.f32 %v3430_v14, %v1388_v29 }
 0x471   :  { %v2500_v32 = vpop.eup %2499  ;;  %2509 = vpow2.f32 %v1786_v22  ;;  %v2343_v34 = vpop.f32.mrf.mxu0 }
 0x472   :  { %v1559_v35 = vadd.f32 1.0, %v2500_v32  ;;  %v1787_v36 = vmul.f32 -1.442695, %v1389_v30 }
 0x473   :  { %v1393_v37 = vpop.f32.mrf.mxu0 }
 0x474   :  { %2511 = vrcp.f32 %v1559_v35  ;;  %v1394_v38 = vadd.f32 %v3430_v14, %v1393_v37 }
 0x475   :  { %v2502_v40 = vpop.eup %2501  ;;  %2513 = vpow2.f32 %v1787_v36  ;;  %v2346_v12 = vpop.f32.mrf.mxu0 }
 0x476   :  { %v1560_v42 = vadd.f32 1.0, %v2502_v40  ;;  %v1788_v43 = vmul.f32 -1.442695, %v1394_v38 }
 0x477   :  { %v1398_v44 = vpop.f32.mrf.mxu0 }
 0x478   :  { %2515 = vrcp.f32 %v1560_v42  ;;  %v1399_v46 = vadd.f32 %v3430_v14, %v1398_v44 }
 0x479   :  { %v2504_v47 = vpop.eup %2503  ;;  %2517 = vpow2.f32 %v1788_v43  ;;  %v2349_v48 = vpop.f32.mrf.mxu0 }
 0x47a   :  { %v2506_v26 = vpop.eup %2505  ;;  %1732 = vst [vmem:[#allocation13 + $0x20] sm:$0xff] %v2504_v47  ;;  %v1789_v49 = vmul.f32 -1.442695, %v1399_v46 }
 0x47b   :  { %v1561_v50 = vadd.f32 1.0, %v2506_v26  ;;  %v1403_v21 = vpop.f32.mrf.mxu0 }
 0x47c   :  { %2519 = vpow2.f32 %v1789_v49  ;;  %v1404_v39 = vadd.f32 %v3430_v14, %v1403_v21 }
 0x47d   :  { %v2508_v52 = vpop.eup %2507  ;;  %2521 = vrcp.f32 %v1561_v50  ;;  %v2352_v45 = vpop.f32.mrf.mxu0 }
 0x47e   :  { %v2510_v53 = vpop.eup %2509  ;;  %1733 = vst [vmem:[#allocation13 + $0x48] sm:$0xff] %v2508_v52  ;;  %v1790_v54 = vmul.f32 -1.442695, %v1404_v39 }
 0x47f   :  { %v1562_v55 = vadd.f32 1.0, %v2510_v53  ;;  %v1408_v51 = vpop.f32.mrf.mxu0 }
 0x480   :  { %2523 = vpow2.f32 %v1790_v54  ;;  %v1409_v56 = vadd.f32 %v3430_v14, %v1408_v51 }
 0x481   :  { %v2512_v57 = vpop.eup %2511  ;;  %2525 = vrcp.f32 %v1562_v55  ;;  %v2355_v59 = vpop.f32.mrf.mxu0 }
 0x482   :  { %v2514_v31 = vpop.eup %2513  ;;  %1734 = vst [vmem:[#allocation13 + $0x70] sm:$0xff] %v2512_v57  ;;  %v1791_v60 = vmul.f32 -1.442695, %v1409_v56 }
 0x483   :  { %v1563_v61 = vadd.f32 1.0, %v2514_v31  ;;  %v1413_v62 = vpop.f32.mrf.mxu0 }
 0x484   :  { %2527 = vpow2.f32 %v1791_v60  ;;  %v1414_v63 = vadd.f32 %v3430_v14, %v1413_v62 }
 0x485   :  { %v2516_v2 = vpop.eup %2515  ;;  %2529 = vrcp.f32 %v1563_v61  ;;  %v2358_v4 = vpop.f32.mrf.mxu0 }
 0x486   :  { %v2518_v1 = vpop.eup %2517  ;;  %1735 = vst [vmem:[#allocation13 + $0x98] sm:$0xff] %v2516_v2  ;;  %v1792_v5 = vmul.f32 -1.442695, %v1414_v63 }
 0x487   :  { %v1564_v41 = vadd.f32 1.0, %v2518_v1  ;;  %v1418_v25 = vpop.f32.mrf.mxu0 }
 0x488   :  { %2531 = vpow2.f32 %v1792_v5  ;;  %v1419_v6 = vadd.f32 %v3430_v14, %v1418_v25 }
 0x489   :  { %v2520_v3 = vpop.eup %2519  ;;  %2533 = vrcp.f32 %v1564_v41  ;;  %v2361_v7 = vpop.f32.mrf.mxu0 }
 0x48a   :  { %v2522_v0 = vpop.eup %2521  ;;  %v1565_v8 = vadd.f32 1.0, %v2520_v3  ;;  %v1793_v9 = vmul.f32 -1.442695, %v1419_v6 }
 0x48b   :  { %1736 = vst [vmem:[#allocation13 + $0xc0] sm:$0xff] %v2522_v0  ;;  %v1423_v33 = vpop.f32.mrf.mxu0 }
 0x48c   :  { %2535 = vrcp.f32 %v1565_v8  ;;  %v1424_v10 = vadd.f32 %v3430_v14, %v1423_v33 }
 0x48d   :  { %v2524_v11 = vpop.eup %2523  ;;  %2537 = vpow2.f32 %v1793_v9  ;;  %v2364_v13 = vpop.f32.mrf.mxu0 }
 0x48e   :  { %v2526_v15 = vpop.eup %2525  ;;  %v1566_v16 = vadd.f32 1.0, %v2524_v11  ;;  %v1794_v58 = vmul.f32 -1.442695, %v1424_v10 }
 0x48f   :  { %1737 = vst [vmem:[#allocation13 + $0xe8] sm:$0xff] %v2526_v15  ;;  %v1428_v17 = vpop.f32.mrf.mxu0 }
 0x490   :  { %2539 = vrcp.f32 %v1566_v16  ;;  %v1429_v18 = vadd.f32 %v3430_v14, %v1428_v17 }
 0x491   :  { %v2528_v19 = vpop.eup %2527  ;;  %2541 = vpow2.f32 %v1794_v58  ;;  %v2367_v20 = vpop.f32.mrf.mxu0 }
 0x492   :  { %v2530_v23 = vpop.eup %2529  ;;  %v1567_v24 = vadd.f32 1.0, %v2528_v19  ;;  %v1795_v27 = vmul.f32 -1.442695, %v1429_v18 }
 0x493   :  { %1738 = vst [vmem:[#allocation13 + $0x110] sm:$0xff] %v2530_v23  ;;  %v1433_v28 = vpop.f32.mrf.mxu0 }
 0x494   :  { %2543 = vrcp.f32 %v1567_v24  ;;  %v1434_v22 = vadd.f32 %v3430_v14, %v1433_v28 }
 0x495   :  { %v2532_v29 = vpop.eup %2531  ;;  %2545 = vpow2.f32 %v1795_v27  ;;  %v2370_v30 = vpop.f32.mrf.mxu0 }
 0x496   :  { %v2534_v32 = vpop.eup %2533  ;;  %v1568_v34 = vadd.f32 1.0, %v2532_v29  ;;  %v1796_v35 = vmul.f32 -1.442695, %v1434_v22 }
 0x497   :  { %1739 = vst [vmem:[#allocation13 + $0x138] sm:$0xff] %v2534_v32  ;;  %v1438_v36 = vpop.f32.mrf.mxu0 }
 0x498   :  { %2547 = vrcp.f32 %v1568_v34  ;;  %v1439_v37 = vadd.f32 %v3430_v14, %v1438_v36 }
 0x499   :  { %v2536_v38 = vpop.eup %2535  ;;  %2549 = vpow2.f32 %v1796_v35  ;;  %v2373_v40 = vpop.f32.mrf.mxu0 }
 0x49a   :  { %v2538_v12 = vpop.eup %2537  ;;  %1740 = vst [vmem:[#allocation13 + $0x160] sm:$0xff] %v2536_v38  ;;  %v1797_v42 = vmul.f32 -1.442695, %v1439_v37 }
 0x49b   :  { %v1569_v43 = vadd.f32 1.0, %v2538_v12  ;;  %v1443_v44 = vpop.f32.mrf.mxu0 }
 0x49c   :  { %2551 = vpow2.f32 %v1797_v42  ;;  %v1444_v46 = vadd.f32 %v3430_v14, %v1443_v44 }
 0x49d   :  { %v2540_v47 = vpop.eup %2539  ;;  %2553 = vrcp.f32 %v1569_v43  ;;  %v2376_v48 = vpop.f32.mrf.mxu0 }
 0x49e   :  { %v2542_v26 = vpop.eup %2541  ;;  %1741 = vst [vmem:[#allocation13 + $0x188] sm:$0xff] %v2540_v47  ;;  %v1798_v49 = vmul.f32 -1.442695, %v1444_v46 }
 0x49f   :  { %v1570_v50 = vadd.f32 1.0, %v2542_v26  ;;  %v1448_v21 = vpop.f32.mrf.mxu0 }
 0x4a0   :  { %2555 = vpow2.f32 %v1798_v49  ;;  %v1449_v39 = vadd.f32 %v3430_v14, %v1448_v21 }
 0x4a1   :  { %v2544_v52 = vpop.eup %2543  ;;  %2557 = vrcp.f32 %v1570_v50  ;;  %v2379_v45 = vpop.f32.mrf.mxu0 }
 0x4a2   :  { %v2546_v53 = vpop.eup %2545  ;;  %1742 = vst [vmem:[#allocation13 + $0x1b0] sm:$0xff] %v2544_v52  ;;  %v1799_v54 = vmul.f32 -1.442695, %v1449_v39 }
 0x4a3   :  { %v1571_v55 = vadd.f32 1.0, %v2546_v53  ;;  %v1453_v51 = vpop.f32.mrf.mxu0 }
 0x4a4   :  { %2559 = vpow2.f32 %v1799_v54  ;;  %v1454_v56 = vadd.f32 %v3430_v14, %v1453_v51 }
 0x4a5   :  { %v2548_v57 = vpop.eup %2547  ;;  %2561 = vrcp.f32 %v1571_v55  ;;  %v2382_v59 = vpop.f32.mrf.mxu0 }
 0x4a6   :  { %v2550_v31 = vpop.eup %2549  ;;  %1743 = vst [vmem:[#allocation13 + $0x1d8] sm:$0xff] %v2548_v57  ;;  %v1800_v60 = vmul.f32 -1.442695, %v1454_v56 }
 0x4a7   :  { %v1572_v61 = vadd.f32 1.0, %v2550_v31  ;;  %v1458_v62 = vpop.f32.mrf.mxu0 }
 0x4a8   :  { %2563 = vpow2.f32 %v1800_v60  ;;  %v1459_v63 = vadd.f32 %v3430_v14, %v1458_v62 }
 0x4a9   :  { %v2552_v2 = vpop.eup %2551  ;;  %2565 = vrcp.f32 %v1572_v61  ;;  %v2385_v4 = vpop.f32.mrf.mxu0 }
 0x4aa   :  { %v2554_v1 = vpop.eup %2553  ;;  %v1573_v5 = vadd.f32 1.0, %v2552_v2  ;;  %v1801_v41 = vmul.f32 -1.442695, %v1459_v63 }
 0x4ab   :  { %1744 = vst [vmem:[#allocation13 + $0x200] sm:$0xff] %v2554_v1  ;;  %v1463_v25 = vpop.f32.mrf.mxu0 }
 0x4ac   :  { %2567 = vrcp.f32 %v1573_v5  ;;  %v1464_v6 = vadd.f32 %v3430_v14, %v1463_v25 }
 0x4ad   :  { %v2556_v3 = vpop.eup %2555  ;;  %2569 = vpow2.f32 %v1801_v41  ;;  %v2388_v7 = vpop.f32.mrf.mxu0 }
 0x4ae   :  { %v2558_v0 = vpop.eup %2557  ;;  %v1574_v8 = vadd.f32 1.0, %v2556_v3  ;;  %v1802_v9 = vmul.f32 -1.442695, %v1464_v6 }
 0x4af   :  { %1745 = vst [vmem:[#allocation13 + $0x228] sm:$0xff] %v2558_v0  ;;  %v1468_v33 = vpop.f32.mrf.mxu0 }
 0x4b0   :  { %2571 = vrcp.f32 %v1574_v8  ;;  %v1469_v10 = vadd.f32 %v3430_v14, %v1468_v33 }
 0x4b1   :  { %v2560_v11 = vpop.eup %2559  ;;  %2573 = vpow2.f32 %v1802_v9  ;;  %v2391_v13 = vpop.f32.mrf.mxu0 }
 0x4b2   :  { %v2562_v15 = vpop.eup %2561  ;;  %v1575_v16 = vadd.f32 1.0, %v2560_v11  ;;  %v1803_v58 = vmul.f32 -1.442695, %v1469_v10 }
 0x4b3   :  { %1746 = vst [vmem:[#allocation13 + $0x250] sm:$0xff] %v2562_v15  ;;  %v1473_v17 = vpop.f32.mrf.mxu0 }
 0x4b4   :  { %2575 = vrcp.f32 %v1575_v16  ;;  %v1474_v18 = vadd.f32 %v3430_v14, %v1473_v17 }
 0x4b5   :  { %v2564_v19 = vpop.eup %2563  ;;  %2577 = vpow2.f32 %v1803_v58  ;;  %v2394_v20 = vpop.f32.mrf.mxu0 }
 0x4b6   :  { %v2566_v23 = vpop.eup %2565  ;;  %v1576_v24 = vadd.f32 1.0, %v2564_v19  ;;  %v1804_v27 = vmul.f32 -1.442695, %v1474_v18 }
 0x4b7   :  { %1747 = vst [vmem:[#allocation13 + $0x278] sm:$0xff] %v2566_v23  ;;  %v1478_v28 = vpop.f32.mrf.mxu0 }
 0x4b8   :  { %2579 = vrcp.f32 %v1576_v24  ;;  %v1479_v22 = vadd.f32 %v3430_v14, %v1478_v28 }
 0x4b9   :  { %v2568_v29 = vpop.eup %2567  ;;  %2581 = vpow2.f32 %v1804_v27  ;;  %v2397_v30 = vpop.f32.mrf.mxu0 }
 0x4ba   :  { %v2570_v32 = vpop.eup %2569  ;;  %1748 = vst [vmem:[#allocation13 + $0x2a0] sm:$0xff] %v2568_v29  ;;  %v1805_v34 = vmul.f32 -1.442695, %v1479_v22 }
 0x4bb   :  { %v1577_v35 = vadd.f32 1.0, %v2570_v32 }
 0x4bc   :  { %2583 = vpow2.f32 %v1805_v34 }
 0x4bd   :  { %v2572_v36 = vpop.eup %2571  ;;  %2585 = vrcp.f32 %v1577_v35 }
 0x4be   :  { %v2574_v37 = vpop.eup %2573  ;;  %1749 = vst [vmem:[#allocation13 + $0x2c8] sm:$0xff] %v2572_v36 }
 0x4bf   :  { %v1578_v38 = vadd.f32 1.0, %v2574_v37 }
 0x4c1   :  { %v2576_v40 = vpop.eup %2575  ;;  %2587 = vrcp.f32 %v1578_v38 }
 0x4c2   :  { %v2578_v12 = vpop.eup %2577  ;;  %1750 = vst [vmem:[#allocation13 + $0x2f0] sm:$0xff] %v2576_v40 }
 0x4c3   :  { %v1579_v42 = vadd.f32 1.0, %v2578_v12 }
 0x4c5   :  { %v2580_v43 = vpop.eup %2579  ;;  %2589 = vrcp.f32 %v1579_v42 }
 0x4c6   :  { %v2582_v14 = vpop.eup %2581  ;;  %1751 = vst [vmem:[#allocation13 + $0x318] sm:$0xff] %v2580_v43 }
 0x4c7   :  { %v1580_v44 = vadd.f32 1.0, %v2582_v14 }
 0x4c9   :  { %v2584_v46 = vpop.eup %2583  ;;  %2591 = vrcp.f32 %v1580_v44 }
 0x4ca   :  { %v2586_v47 = vpop.eup %2585  ;;  %v1581_v48 = vadd.f32 1.0, %v2584_v46 }
 0x4cb   :  { %1752 = vst [vmem:[#allocation13 + $0x340] sm:$0xff] %v2586_v47 }
 0x4cc   :  { %2593 = vrcp.f32 %v1581_v48 }
 0x4ce   :  { %v2588_v26 = vpop.eup %2587 }
 0x4cf   :  { %1753 = vst [vmem:[#allocation13 + $0x368] sm:$0xff] %v2588_v26 }
 0x4d2   :  { %v2590_v49 = vpop.eup %2589 }
 0x4d3   :  { %1754 = vst [vmem:[#allocation13 + $0x390] sm:$0xff] %v2590_v49 }
 0x4d6   :  { %v2592_v50 = vpop.eup %2591 }
 0x4d7   :  { %1755 = vst [vmem:[#allocation13 + $0x3b8] sm:$0xff] %v2592_v50 }
 0x4d9   :  { %v2594_v21 = vpop.eup %2593 }
 0x4da   :  { %1756 = vst [vmem:[#allocation13 + $0x3e0] sm:$0xff] %v2594_v21 }
 0x4db   :  { %2726 = shalt.err (!%p2723_p6)
}
 0x4dc   :  { %s2758_s14 = smov 640   ;;  %s2759_s15 = smov 40  }
 0x4dd   :  { %1768 = dma.vmem_to_hbm [thread:$0]  %s1763_s13, 16000, %s3471_s11, [#allocation4], %s2758_s14, %s2758_s14, %s2759_s15  }
 0x4de   :  { %2743 = dma.done.wait [#allocation4], 16000  }
 0x4df   :  { %2744 = vsyncadd [#allocation4], 4294951296 }
 0x4e0   :  { %1772 = vsyncpa [#allocation3], 1 }
 0x4e1   :  { %1773 = vsyncpa [#allocation6], 1 }
 0x4e2   :  { %1774 = vsyncpa [#allocation9], 1 }
 0x4e3   :  { %1775 = vsyncpa [#allocation12], 1 }
 0x4e4   :  { %1776 = vsyncpa [#allocation4], 1 }

// kernel: tpu_custom_call.1
= control target key start
LH: loop header
LB: loop body
LE: loop exit
PB: predicated region body
PF: predicated region fallthrough
CT: control target
= control target key end

     0   :  { %16 = vsyncpa [#allocation3], 0  ;;  %s3460_s0 = inlined_call_operand.hbm [shape: f32[200,256], index: 0, kind: input, shape index: {}]   ;;  %s3461_s1 = inlined_call_operand.hbm [shape: f32[128,128], index: 1, kind: input, shape index: {}]   ;;  %s3462_s2 = inlined_call_operand.vmem [shape: f32[1,128], index: 2, kind: input, shape index: {}]   ;;  %s3463_s3 = inlined_call_operand.hbm [shape: f32[128,128], index: 3, kind: input, shape index: {}]   ;;  %s3464_s4 = inlined_call_operand.vmem [shape: f32[1,128], index: 4, kind: input, shape index: {}]   ;;  %s3465_s5 = inlined_call_operand.hbm [shape: f32[128,256], index: 5, kind: input, shape index: {}]   ;;  %s3466_s6 = inlined_call_operand.vmem [shape: f32[1,256], index: 6, kind: input, shape index: {}]   ;;  %s3467_s7 = inlined_call_operand.hbm [shape: f32[128,128], index: 7, kind: input, shape index: {}]   ;;  %s3468_s8 = inlined_call_operand.vmem [shape: f32[1,128], index: 8, kind: input, shape index: {}]   ;;  %s3469_s9 = inlined_call_operand.hbm [shape: f32[128,128], index: 9, kind: input, shape index: {}]   ;;  %s3470_s10 = inlined_call_operand.vmem [shape: f32[1,128], index: 10, kind: input, shape index: {}]   ;;  %s3471_s11 = inlined_call_operand.hbm [shape: f32[200,640], index: 11, kind: output, shape index: {}]  }
   0x1   :  { %17 = vsyncpa [#allocation6], 0 }
   0x2   :  { %18 = vsyncpa [#allocation9], 0 }
   0x3   :  { %19 = vsyncpa [#allocation12], 0 }
   0x4   :  { %20 = vsyncpa [#allocation4], 0  ;;  %s2745_s17 = smov [#allocation5]  }
   0x5   :  { %s38_s18 = sshll.u32 %s2745_s17, 4  ;;  %s39_s18 = int_to_ptr.vmem [resolvable:$true] %s38_s18 }
   0x6   :  { %s2603_s19 = scalar_lea.vmem %s39_s18, 2048  ;;  %p2608_p1 = scmp.lt.s32.totalorder %s39_s18, %s39_s18 }
   0x7   :  { %p2604_p0 = scmp.ne.s32.totalorder %s39_s18, %s2603_s19  ;;  %p2609_p2 = scmp.lt.s32.totalorder %s2603_s19, %s2603_s19 }
   0x9   :  { %p2610_p3 = por %p2609_p2, %p2608_p1 }
   0xb   :  { %p2611_p4 = pnand %p2610_p3, %p2604_p0 }
   0xd   :  { %2614 = shalt.err (!%p2611_p4)
}
   0xe   :  { %s2746_s20 = smov 128   ;;  %s2747_s21 = smov 8  }
   0xf   :  { %44 = dma.hbm_to_vmem [thread:$0]  %s3461_s1, 2048, %s39_s18, [#allocation6], %s2746_s20, %s2746_s20, %s2747_s21  }
  0x10   :  { %s2748_s24 = smov [#allocation8]   ;;  %s2749_s26 = smov [#allocation2]  }
  0x11   :  { %s66_s25 = sshll.u32 %s2748_s24, 4  ;;  %s26_s27 = sshll.u32 %s2749_s26, 4  ;;  %s67_s25 = int_to_ptr.vmem [resolvable:$true] %s66_s25  ;;  %s27_s27 = int_to_ptr.vmem [resolvable:$true] %s26_s27 }
  0x12   :  { %s2623_s28 = scalar_lea.vmem %s67_s25, 4096  ;;  %p2628_p6 = scmp.lt.s32.totalorder %s67_s25, %s67_s25 }
  0x13   :  { %p2624_p5 = scmp.ne.s32.totalorder %s67_s25, %s2623_s28  ;;  %p2629_p7 = scmp.lt.s32.totalorder %s2623_s28, %s2623_s28 }
  0x15   :  { %p2630_p8 = por %p2629_p7, %p2628_p6 }
  0x17   :  { %p2631_p9 = pnand %p2630_p8, %p2624_p5 }
  0x19   :  { %2634 = shalt.err (!%p2631_p9)
}
  0x1a   :  { %s2750_s29 = smov 256   ;;  %s2751_s30 = smov 16  }
  0x1b   :  { %72 = dma.hbm_to_vmem [thread:$0]  %s3465_s5, 4096, %s67_s25, [#allocation9], %s2750_s29, %s2750_s29, %s2751_s30  }
  0x1c   :  { %s2643_s1 = scalar_lea.vmem %s27_s27, 6400  ;;  %p2648_p11 = scmp.lt.s32.totalorder %s27_s27, %s27_s27 }
  0x1d   :  { %p2644_p10 = scmp.ne.s32.totalorder %s27_s27, %s2643_s1  ;;  %p2649_p12 = scmp.lt.s32.totalorder %s2643_s1, %s2643_s1 }
  0x1f   :  { %p2650_p13 = por %p2649_p12, %p2648_p11 }
  0x21   :  { %p2651_p0 = pnand %p2650_p13, %p2644_p10 }
  0x23   :  { %2654 = shalt.err (!%p2651_p0)
}
  0x24   :  { %32 = dma.hbm_to_vmem [thread:$0]  %s3460_s0, 6400, %s27_s27, [#allocation3], %s2750_s29, %s2750_s29, %s2751_s30  }
  0x25   :  { %s2752_s16 = smov [#allocation7]   ;;  %s2753_s18 = smov [#allocation10]  }
  0x26   :  { %s52_s17 = sshll.u32 %s2752_s16, 4  ;;  %s80_s19 = sshll.u32 %s2753_s18, 4  ;;  %s53_s17 = int_to_ptr.vmem [resolvable:$true] %s52_s17  ;;  %s81_s19 = int_to_ptr.vmem [resolvable:$true] %s80_s19 }
  0x27   :  { %s2663_s22 = scalar_lea.vmem %s53_s17, 2048  ;;  %p2668_p2 = scmp.lt.s32.totalorder %s53_s17, %s53_s17 }
  0x28   :  { %p2664_p1 = scmp.ne.s32.totalorder %s53_s17, %s2663_s22  ;;  %p2669_p3 = scmp.lt.s32.totalorder %s2663_s22, %s2663_s22 }
  0x2a   :  { %p2670_p4 = por %p2669_p3, %p2668_p2 }
  0x2c   :  { %p2671_p5 = pnand %p2670_p4, %p2664_p1 }
  0x2e   :  { %2674 = shalt.err (!%p2671_p5)
}
  0x2f   :  { %58 = dma.hbm_to_vmem [thread:$0]  %s3463_s3, 2048, %s53_s17, [#allocation6], %s2746_s20, %s2746_s20, %s2747_s21  }
  0x30   :  { %s2683_s0 = scalar_lea.vmem %s81_s19, 2048  ;;  %p2688_p7 = scmp.lt.s32.totalorder %s81_s19, %s81_s19 }
  0x31   :  { %p2684_p6 = scmp.ne.s32.totalorder %s81_s19, %s2683_s0  ;;  %p2689_p8 = scmp.lt.s32.totalorder %s2683_s0, %s2683_s0 }
  0x33   :  { %p2690_p9 = por %p2689_p8, %p2688_p7 }
  0x35   :  { %p2691_p10 = pnand %p2690_p9, %p2684_p6 }
  0x37   :  { %2694 = shalt.err (!%p2691_p10)
}
  0x38   :  { %86 = dma.hbm_to_vmem [thread:$0]  %s3467_s7, 2048, %s81_s19, [#allocation9], %s2746_s20, %s2746_s20, %s2747_s21  }
  0x39   :  { %s2754_s26 = smov [#allocation11]  }
  0x3a   :  { %s94_s27 = sshll.u32 %s2754_s26, 4  ;;  %s95_s27 = int_to_ptr.vmem [resolvable:$true] %s94_s27 }
  0x3b   :  { %s2703_s28 = scalar_lea.vmem %s95_s27, 2048  ;;  %p2708_p12 = scmp.lt.s32.totalorder %s95_s27, %s95_s27 }
  0x3c   :  { %p2704_p11 = scmp.ne.s32.totalorder %s95_s27, %s2703_s28  ;;  %p2709_p13 = scmp.lt.s32.totalorder %s2703_s28, %s2703_s28 }
  0x3e   :  { %p2710_p0 = por %p2709_p13, %p2708_p12 }
  0x40   :  { %p2711_p1 = pnand %p2710_p0, %p2704_p11 }
  0x42   :  { %2714 = shalt.err (!%p2711_p1)
}
  0x43   :  { %100 = dma.hbm_to_vmem [thread:$0]  %s3469_s9, 2048, %s95_s27, [#allocation12], %s2746_s20, %s2746_s20, %s2747_s21  }
  0x44   :  { %2735 = dma.done.wait [#allocation3], 6400  }
  0x45   :  { %2736 = vsyncadd [#allocation3], 4294960896 }
  0x46   :  { %2737 = dma.done.wait [#allocation6], 4096  }
  0x47   :  { %2738 = vsyncadd [#allocation6], 4294963200 }
  0x48   :  { %2739 = dma.done.wait [#allocation9], 6144  }
  0x49   :  { %2740 = vsyncadd [#allocation9], 4294961152 }
  0x4a   :  { %2741 = dma.done.wait [#allocation12], 2048  }
  0x4b   :  { %2742 = vsyncadd [#allocation12], 4294965248  ;;  %v2755_v0 = vmov 0.0   ;;  %vm2756_vm0 = vmmov 0   ;;  %v186_v1 = vld [vmem:[#allocation5 + $0x78] sm:$0xff]  ;;  %v185_v2 = vld [vmem:[#allocation5 + $0x70] sm:$0xff] }
  0x4c   :  { %1970 = vmatprep.subr.mxu0 %v2755_v0  ;;  %2002 = vmatprep.mubr.msk.f32.mxu0 %vm2756_vm0, %v2755_v0  ;;  %v184_v3 = vld [vmem:[#allocation5 + $0x68] sm:$0xff]  ;;  %v183_v4 = vld [vmem:[#allocation5 + $0x60] sm:$0xff]  ;;  %v182_v5 = vld [vmem:[#allocation5 + $0x58] sm:$0xff] }
  0x4d   :  { %2398 = vmatprep.subr.mxu1 %v2755_v0  ;;  %2041 = vmatprep.mubr.msk.f32.mxu1 %vm2756_vm0, %v2755_v0  ;;  %v181_v6 = vld [vmem:[#allocation5 + $0x50] sm:$0xff]  ;;  %v180_v7 = vld [vmem:[#allocation5 + $0x48] sm:$0xff]  ;;  %v179_v8 = vld [vmem:[#allocation5 + $0x40] sm:$0xff] }
  0x4e   :  { %1971 = vmatpush3.msra.mxu0 %v186_v1  ;;  %2414 = vmatpush3.msra.mxu1 %v186_v1  ;;  %v178_v9 = vld [vmem:[#allocation5 + $0x38] sm:$0xff]  ;;  %v177_v10 = vld [vmem:[#allocation5 + $0x30] sm:$0xff]  ;;  %v176_v11 = vld [vmem:[#allocation5 + $0x28] sm:$0xff] }
  0x4f   :  { %1972 = vmatprep.subr.mxu0 %v2755_v0  ;;  %2399 = vmatprep.subr.mxu1 %v2755_v0  ;;  %v175_v12 = vld [vmem:[#allocation5 + $0x20] sm:$0xff]  ;;  %v174_v13 = vld [vmem:[#allocation5 + $0x18] sm:$0xff]  ;;  %v173_v14 = vld [vmem:[#allocation5 + $0x10] sm:$0xff] }
  0x50   :  { %1973 = vmatpush3.msra.mxu0 %v185_v2  ;;  %2415 = vmatpush3.msra.mxu1 %v185_v2  ;;  %v172_v15 = vld [vmem:[#allocation5 + $0x8] sm:$0xff]  ;;  %v171_v16 = vld [vmem:[#allocation5] sm:$0xff]  ;;  %v121_v17 = vld [vmem:[#allocation2] sm:$0xff] }
  0x51   :  { %1974 = vmatprep.subr.mxu0 %v2755_v0  ;;  %2400 = vmatprep.subr.mxu1 %v2755_v0  ;;  %v134_v18 = vld [vmem:[#allocation2 + $0xd0] sm:$0xff]  ;;  %v424_v19 = vld [vmem:[#allocation7 + $0x78] sm:$0xff]  ;;  %v135_v21 = vld [vmem:[#allocation2 + $0xe0] sm:$0xff] }
  0x52   :  { %1975 = vmatpush3.msra.mxu0 %v184_v3  ;;  %2416 = vmatpush3.msra.mxu1 %v184_v3  ;;  %v122_v20 = vld [vmem:[#allocation2 + $0x10] sm:$0xff]  ;;  %v423_v22 = vld [vmem:[#allocation7 + $0x70] sm:$0xff]  ;;  %v422_v25 = vld [vmem:[#allocation7 + $0x68] sm:$0xff] }
  0x53   :  { %1976 = vmatprep.subr.mxu0 %v2755_v0  ;;  %2401 = vmatprep.subr.mxu1 %v2755_v0  ;;  %v123_v23 = vld [vmem:[#allocation2 + $0x20] sm:$0xff]  ;;  %v136_v24 = vld [vmem:[#allocation2 + $0xf0] sm:$0xff]  ;;  %v420_v31 = vld [vmem:[#allocation7 + $0x58] sm:$0xff] }
  0x54   :  { %1977 = vmatpush3.msra.mxu0 %v183_v4  ;;  %2417 = vmatpush3.msra.mxu1 %v183_v4  ;;  %v124_v26 = vld [vmem:[#allocation2 + $0x30] sm:$0xff]  ;;  %v137_v27 = vld [vmem:[#allocation2 + $0x100] sm:$0xff]  ;;  %v418_v37 = vld [vmem:[#allocation7 + $0x48] sm:$0xff] }
  0x55   :  { %1978 = vmatprep.subr.mxu0 %v2755_v0  ;;  %2402 = vmatprep.subr.mxu1 %v2755_v0  ;;  %v421_v28 = vld [vmem:[#allocation7 + $0x60] sm:$0xff]  ;;  %v125_v29 = vld [vmem:[#allocation2 + $0x40] sm:$0xff]  ;;  %v416_v43 = vld [vmem:[#allocation7 + $0x38] sm:$0xff] }
  0x56   :  { %1979 = vmatpush3.msra.mxu0 %v182_v5  ;;  %2418 = vmatpush3.msra.mxu1 %v182_v5  ;;  %v138_v30 = vld [vmem:[#allocation2 + $0x110] sm:$0xff]  ;;  %v139_v33 = vld [vmem:[#allocation2 + $0x120] sm:$0xff]  ;;  %v414_v49 = vld [vmem:[#allocation7 + $0x28] sm:$0xff] }
  0x57   :  { %1980 = vmatprep.subr.mxu0 %v2755_v0  ;;  %2403 = vmatprep.subr.mxu1 %v2755_v0  ;;  %v126_v32 = vld [vmem:[#allocation2 + $0x50] sm:$0xff]  ;;  %v419_v34 = vld [vmem:[#allocation7 + $0x50] sm:$0xff]  ;;  %v412_v54 = vld [vmem:[#allocation7 + $0x18] sm:$0xff] }
  0x58   :  { %1981 = vmatpush3.msra.mxu0 %v181_v6  ;;  %2419 = vmatpush3.msra.mxu1 %v181_v6  ;;  %v127_v35 = vld [vmem:[#allocation2 + $0x60] sm:$0xff]  ;;  %v140_v36 = vld [vmem:[#allocation2 + $0x130] sm:$0xff]  ;;  %v410_v56 = vld [vmem:[#allocation7 + $0x8] sm:$0xff] }
  0x59   :  { %1982 = vmatprep.subr.mxu0 %v2755_v0  ;;  %2404 = vmatprep.subr.mxu1 %v2755_v0  ;;  %v128_v38 = vld [vmem:[#allocation2 + $0x70] sm:$0xff]  ;;  %v141_v39 = vld [vmem:[#allocation2 + $0x140] sm:$0xff]  ;;  %v678_v58 = vld [vmem:[#allocation8 + $0xf8] sm:$0xff] }
  0x5a   :  { %1983 = vmatpush3.msra.mxu0 %v180_v7  ;;  %2420 = vmatpush3.msra.mxu1 %v180_v7  ;;  %v417_v40 = vld [vmem:[#allocation7 + $0x40] sm:$0xff]  ;;  %v129_v41 = vld [vmem:[#allocation2 + $0x80] sm:$0xff]  ;;  %v676_v60 = vld [vmem:[#allocation8 + $0xe8] sm:$0xff] }
  0x5b   :  { %1984 = vmatprep.subr.mxu0 %v2755_v0  ;;  %2405 = vmatprep.subr.mxu1 %v2755_v0  ;;  %v142_v42 = vld [vmem:[#allocation2 + $0x150] sm:$0xff]  ;;  %v143_v45 = vld [vmem:[#allocation2 + $0x160] sm:$0xff]  ;;  %v674_v62 = vld [vmem:[#allocation8 + $0xd8] sm:$0xff] }
  0x5c   :  { %1985 = vmatpush3.msra.mxu0 %v179_v8  ;;  %2421 = vmatpush3.msra.mxu1 %v179_v8  ;;  %v130_v44 = vld [vmem:[#allocation2 + $0x90] sm:$0xff]  ;;  %v415_v46 = vld [vmem:[#allocation7 + $0x30] sm:$0xff]  ;;  %v672_v1 = vld [vmem:[#allocation8 + $0xc8] sm:$0xff] }
  0x5d   :  { %1986 = vmatprep.subr.mxu0 %v2755_v0  ;;  %2406 = vmatprep.subr.mxu1 %v2755_v0  ;;  %v131_v47 = vld [vmem:[#allocation2 + $0xa0] sm:$0xff]  ;;  %v144_v48 = vld [vmem:[#allocation2 + $0x170] sm:$0xff]  ;;  %v670_v3 = vld [vmem:[#allocation8 + $0xb8] sm:$0xff] }
  0x5e   :  { %1987 = vmatpush3.msra.mxu0 %v178_v9  ;;  %2422 = vmatpush3.msra.mxu1 %v178_v9  ;;  %v132_v50 = vld [vmem:[#allocation2 + $0xb0] sm:$0xff]  ;;  %v145_v51 = vld [vmem:[#allocation2 + $0x180] sm:$0xff]  ;;  %v668_v5 = vld [vmem:[#allocation8 + $0xa8] sm:$0xff] }
  0x5f   :  { %1988 = vmatprep.subr.mxu0 %v2755_v0  ;;  %2407 = vmatprep.subr.mxu1 %v2755_v0  ;;  %v413_v52 = vld [vmem:[#allocation7 + $0x20] sm:$0xff]  ;;  %v133_v53 = vld [vmem:[#allocation2 + $0xc0] sm:$0xff]  ;;  %v666_v7 = vld [vmem:[#allocation8 + $0x98] sm:$0xff] }
  0x60   :  { %1989 = vmatpush3.msra.mxu0 %v177_v10  ;;  %2423 = vmatpush3.msra.mxu1 %v177_v10  ;;  %v411_v55 = vld [vmem:[#allocation7 + $0x10] sm:$0xff]  ;;  %v409_v57 = vld [vmem:[#allocation7] sm:$0xff]  ;;  %v664_v9 = vld [vmem:[#allocation8 + $0x88] sm:$0xff] }
  0x61   :  { %1990 = vmatprep.subr.mxu0 %v2755_v0  ;;  %2408 = vmatprep.subr.mxu1 %v2755_v0  ;;  %v677_v59 = vld [vmem:[#allocation8 + $0xf0] sm:$0xff]  ;;  %v675_v61 = vld [vmem:[#allocation8 + $0xe0] sm:$0xff] }
  0x62   :  { %1991 = vmatpush3.msra.mxu0 %v176_v11  ;;  %2424 = vmatpush3.msra.mxu1 %v176_v11  ;;  %v673_v63 = vld [vmem:[#allocation8 + $0xd0] sm:$0xff]  ;;  %v671_v2 = vld [vmem:[#allocation8 + $0xc0] sm:$0xff]  ;;  %v662_v11 = vld [vmem:[#allocation8 + $0x78] sm:$0xff] }
  0x63   :  { %1992 = vmatprep.subr.mxu0 %v2755_v0  ;;  %2409 = vmatprep.subr.mxu1 %v2755_v0  ;;  %v669_v4 = vld [vmem:[#allocation8 + $0xb0] sm:$0xff]  ;;  %v667_v6 = vld [vmem:[#allocation8 + $0xa0] sm:$0xff] }
  0x64   :  { %1993 = vmatpush3.msra.mxu0 %v175_v12  ;;  %2425 = vmatpush3.msra.mxu1 %v175_v12  ;;  %v665_v8 = vld [vmem:[#allocation8 + $0x90] sm:$0xff]  ;;  %v663_v10 = vld [vmem:[#allocation8 + $0x80] sm:$0xff] }
  0x65   :  { %1994 = vmatprep.subr.mxu0 %v2755_v0  ;;  %2410 = vmatprep.subr.mxu1 %v2755_v0  ;;  %v661_v12 = vld [vmem:[#allocation8 + $0x70] sm:$0xff] }
  0x66   :  { %1995 = vmatpush3.msra.mxu0 %v174_v13  ;;  %2426 = vmatpush3.msra.mxu1 %v174_v13  ;;  %v660_v13 = vld [vmem:[#allocation8 + $0x68] sm:$0xff] }
  0x67   :  { %1996 = vmatprep.subr.mxu0 %v2755_v0  ;;  %2411 = vmatprep.subr.mxu1 %v2755_v0 }
  0x68   :  { %1997 = vmatpush3.msra.mxu0 %v173_v14  ;;  %2427 = vmatpush3.msra.mxu1 %v173_v14  ;;  %v659_v14 = vld [vmem:[#allocation8 + $0x60] sm:$0xff] }
  0x69   :  { %1998 = vmatprep.subr.mxu0 %v2755_v0  ;;  %2412 = vmatprep.subr.mxu1 %v2755_v0 }
  0x6a   :  { %1999 = vmatpush3.msra.mxu0 %v172_v15  ;;  %2428 = vmatpush3.msra.mxu1 %v172_v15  ;;  %v658_v15 = vld [vmem:[#allocation8 + $0x58] sm:$0xff] }
  0x6b   :  { %2000 = vmatprep.subr.mxu0 %v2755_v0  ;;  %2413 = vmatprep.subr.mxu1 %v2755_v0 }
  0x6c   :  { %2001 = vmatpush3.msra.mxu0 %v171_v16  ;;  %2429 = vmatpush3.msra.mxu1 %v171_v16  ;;  %v657_v16 = vld [vmem:[#allocation8 + $0x50] sm:$0xff] }
  0x6d   :  { %2003 = vmatmul.mubr.f32.vlgmr.msra.gmra.mxu0 %v121_v17  ;;  %2042 = vmatmul.mubr.f32.vlgmr.msra.gmra.mxu1 %v134_v18  ;;  %v656_v17 = vld [vmem:[#allocation8 + $0x48] sm:$0xff]  ;;  %v655_v18 = vld [vmem:[#allocation8 + $0x40] sm:$0xff] }
  0x6e   :  { %2005 = vmatprep.mubr.msk.f32.mxu0 %vm2756_vm0, %v2755_v0  ;;  %2044 = vmatprep.mubr.msk.f32.mxu1 %vm2756_vm0, %v2755_v0 }
  0x6f   :  { %2077 = vmatprep.subr.mxu1 %v2755_v0  ;;  %691 = vmatprep.subr.mxu0 %v678_v58 }
  0x70   :  { %2078 = vmatpush3.msra.mxu1 %v424_v19  ;;  %692 = vmatpush1.msra.mxu0 %v677_v59  ;;  %v654_v19 = vld [vmem:[#allocation8 + $0x38] sm:$0xff] }
  0x71   :  { %2006 = vmatmul.mubr.f32.gmra.mxu0 %v122_v20  ;;  %2045 = vmatmul.mubr.f32.gmra.mxu1 %v135_v21  ;;  %v653_v20 = vld [vmem:[#allocation8 + $0x30] sm:$0xff]  ;;  %v652_v21 = vld [vmem:[#allocation8 + $0x28] sm:$0xff] }
  0x72   :  { %2008 = vmatprep.mubr.msk.f32.mxu0 %vm2756_vm0, %v2755_v0  ;;  %2047 = vmatprep.mubr.msk.f32.mxu1 %vm2756_vm0, %v2755_v0 }
  0x73   :  { %2079 = vmatprep.subr.mxu1 %v2755_v0  ;;  %693 = vmatprep.subr.mxu0 %v676_v60 }
  0x74   :  { %2080 = vmatpush3.msra.mxu1 %v423_v22  ;;  %694 = vmatpush1.msra.mxu0 %v675_v61  ;;  %v2955_v22 = vld [vmem:[%s3462_s2] ss:$0 sm:$0xff] }
  0x75   :  { %2009 = vmatmul.mubr.f32.gmra.mxu0 %v123_v23  ;;  %2048 = vmatmul.mubr.f32.gmra.mxu1 %v136_v24  ;;  %v651_v23 = vld [vmem:[#allocation8 + $0x20] sm:$0xff]  ;;  %v650_v24 = vld [vmem:[#allocation8 + $0x18] sm:$0xff] }
  0x76   :  { %2011 = vmatprep.mubr.msk.f32.mxu0 %vm2756_vm0, %v2755_v0  ;;  %2050 = vmatprep.mubr.msk.f32.mxu1 %vm2756_vm0, %v2755_v0 }
  0x77   :  { %2081 = vmatprep.subr.mxu1 %v2755_v0  ;;  %695 = vmatprep.subr.mxu0 %v674_v62 }
  0x78   :  { %2082 = vmatpush3.msra.mxu1 %v422_v25  ;;  %696 = vmatpush1.msra.mxu0 %v673_v63 }
  0x79   :  { %2012 = vmatmul.mubr.f32.gmra.mxu0 %v124_v26  ;;  %2051 = vmatmul.mubr.f32.gmra.mxu1 %v137_v27  ;;  %v649_v27 = vld [vmem:[#allocation8 + $0x10] sm:$0xff] }
  0x7a   :  { %2014 = vmatprep.mubr.msk.f32.mxu0 %vm2756_vm0, %v2755_v0  ;;  %2053 = vmatprep.mubr.msk.f32.mxu1 %vm2756_vm0, %v2755_v0 }
  0x7b   :  { %2083 = vmatprep.subr.mxu1 %v2755_v0  ;;  %697 = vmatprep.subr.mxu0 %v672_v1 }
  0x7c   :  { %2084 = vmatpush3.msra.mxu1 %v421_v28  ;;  %698 = vmatpush1.msra.mxu0 %v671_v2 }
  0x7d   :  { %2015 = vmatmul.mubr.f32.gmra.mxu0 %v125_v29  ;;  %2054 = vmatmul.mubr.f32.gmra.mxu1 %v138_v30 }
  0x7e   :  { %2017 = vmatprep.mubr.msk.f32.mxu0 %vm2756_vm0, %v2755_v0  ;;  %2056 = vmatprep.mubr.msk.f32.mxu1 %vm2756_vm0, %v2755_v0 }
  0x7f   :  { %2085 = vmatprep.subr.mxu1 %v2755_v0  ;;  %699 = vmatprep.subr.mxu0 %v670_v3 }
  0x80   :  { %2086 = vmatpush3.msra.mxu1 %v420_v31  ;;  %700 = vmatpush1.msra.mxu0 %v669_v4 }
  0x81   :  { %2018 = vmatmul.mubr.f32.gmra.mxu0 %v126_v32  ;;  %2057 = vmatmul.mubr.f32.gmra.mxu1 %v139_v33 }
  0x82   :  { %2020 = vmatprep.mubr.msk.f32.mxu0 %vm2756_vm0, %v2755_v0  ;;  %2059 = vmatprep.mubr.msk.f32.mxu1 %vm2756_vm0, %v2755_v0 }
  0x83   :  { %2087 = vmatprep.subr.mxu1 %v2755_v0  ;;  %701 = vmatprep.subr.mxu0 %v668_v5 }
  0x84   :  { %2088 = vmatpush3.msra.mxu1 %v419_v34  ;;  %702 = vmatpush1.msra.mxu0 %v667_v6 }
  0x85   :  { %2021 = vmatmul.mubr.f32.gmra.mxu0 %v127_v35  ;;  %2060 = vmatmul.mubr.f32.gmra.mxu1 %v140_v36 }
  0x86   :  { %2023 = vmatprep.mubr.msk.f32.mxu0 %vm2756_vm0, %v2755_v0  ;;  %2062 = vmatprep.mubr.msk.f32.mxu1 %vm2756_vm0, %v2755_v0 }
  0x87   :  { %2089 = vmatprep.subr.mxu1 %v2755_v0  ;;  %703 = vmatprep.subr.mxu0 %v666_v7 }
  0x88   :  { %2090 = vmatpush3.msra.mxu1 %v418_v37  ;;  %704 = vmatpush1.msra.mxu0 %v665_v8 }
  0x89   :  { %2024 = vmatmul.mubr.f32.gmra.mxu0 %v128_v38  ;;  %2063 = vmatmul.mubr.f32.gmra.mxu1 %v141_v39 }
  0x8a   :  { %2026 = vmatprep.mubr.msk.f32.mxu0 %vm2756_vm0, %v2755_v0  ;;  %2065 = vmatprep.mubr.msk.f32.mxu1 %vm2756_vm0, %v2755_v0 }
  0x8b   :  { %2091 = vmatprep.subr.mxu1 %v2755_v0  ;;  %705 = vmatprep.subr.mxu0 %v664_v9 }
  0x8c   :  { %2092 = vmatpush3.msra.mxu1 %v417_v40  ;;  %706 = vmatpush1.msra.mxu0 %v663_v10 }
  0x8d   :  { %2027 = vmatmul.mubr.f32.gmra.mxu0 %v129_v41  ;;  %2066 = vmatmul.mubr.f32.gmra.mxu1 %v142_v42 }
  0x8e   :  { %2029 = vmatprep.mubr.msk.f32.mxu0 %vm2756_vm0, %v2755_v0  ;;  %2068 = vmatprep.mubr.msk.f32.mxu1 %vm2756_vm0, %v2755_v0 }
  0x8f   :  { %2093 = vmatprep.subr.mxu1 %v2755_v0  ;;  %707 = vmatprep.subr.mxu0 %v662_v11 }
  0x90   :  { %2094 = vmatpush3.msra.mxu1 %v416_v43  ;;  %708 = vmatpush1.msra.mxu0 %v661_v12 }
  0x91   :  { %2030 = vmatmul.mubr.f32.gmra.mxu0 %v130_v44  ;;  %2069 = vmatmul.mubr.f32.gmra.mxu1 %v143_v45 }
  0x92   :  { %2032 = vmatprep.mubr.msk.f32.mxu0 %vm2756_vm0, %v2755_v0  ;;  %2071 = vmatprep.mubr.msk.f32.mxu1 %vm2756_vm0, %v2755_v0 }
  0x93   :  { %2095 = vmatprep.subr.mxu1 %v2755_v0  ;;  %709 = vmatprep.subr.mxu0 %v660_v13 }
  0x94   :  { %2096 = vmatpush3.msra.mxu1 %v415_v46  ;;  %710 = vmatpush1.msra.mxu0 %v659_v14 }
  0x95   :  { %2033 = vmatmul.mubr.f32.gmra.mxu0 %v131_v47  ;;  %2072 = vmatmul.mubr.f32.gmra.mxu1 %v144_v48 }
  0x96   :  { %2035 = vmatprep.mubr.msk.f32.mxu0 %vm2756_vm0, %v2755_v0  ;;  %2074 = vmatprep.mubr.msk.f32.mxu1 %vm2756_vm0, %v2755_v0 }
  0x97   :  { %2097 = vmatprep.subr.mxu1 %v2755_v0  ;;  %711 = vmatprep.subr.mxu0 %v658_v15 }
  0x98   :  { %2098 = vmatpush3.msra.mxu1 %v414_v49  ;;  %712 = vmatpush1.msra.mxu0 %v657_v16 }
  0x99   :  { %2036 = vmatmul.mubr.f32.gmra.mxu0 %v132_v50  ;;  %2075 = vmatmul.mubr.f32.gmra.mxu1 %v145_v51 }
  0x9a   :  { %2038 = vmatprep.mubr.msk.f32.mxu0 %vm2756_vm0, %v2755_v0  ;;  %2099 = vmatprep.subr.mxu1 %v2755_v0 }
  0x9b   :  { %2100 = vmatpush3.msra.mxu1 %v413_v52  ;;  %2109 = vmatprep.mubr.msk.f32.mxu1 %vm2756_vm0, %v2755_v0 }
  0x9c   :  { %2101 = vmatprep.subr.mxu1 %v2755_v0  ;;  %713 = vmatprep.subr.mxu0 %v656_v17 }
  0x9d   :  { %2039 = vmatmul.mubr.f32.gmra.mxu0 %v133_v53  ;;  %2102 = vmatpush3.msra.mxu1 %v412_v54 }
  0x9e   :  { %2103 = vmatprep.subr.mxu1 %v2755_v0  ;;  %755 = vmatprep.mubr.f32.mxu0 %v2755_v0 }
  0x9f   :  { %2104 = vmatpush3.msra.mxu1 %v411_v55  ;;  %714 = vmatpush1.msra.mxu0 %v655_v18 }
  0xa0   :  { %2105 = vmatprep.subr.mxu1 %v2755_v0  ;;  %715 = vmatprep.subr.mxu0 %v654_v19 }
  0xa1   :  { %2106 = vmatpush3.msra.mxu1 %v410_v56  ;;  %716 = vmatpush1.msra.mxu0 %v653_v20 }
  0xa2   :  { %2107 = vmatprep.subr.mxu1 %v2755_v0  ;;  %717 = vmatprep.subr.mxu0 %v652_v21 }
  0xa3   :  { %2108 = vmatpush3.msra.mxu1 %v409_v57  ;;  %718 = vmatpush1.msra.mxu0 %v651_v23 }
  0xa4   :  { %2184 = vmatprep.subr.mxu1 %v2755_v0  ;;  %719 = vmatprep.subr.mxu0 %v650_v24 }
  0xa5   :  { %720 = vmatpush1.msra.mxu0 %v649_v27 }
 0x12d   :  { %v260_v25 = vpop.f32.mrf.mxu0  ;;  %v2957_v26 = vpop.f32.mrf.mxu1 }
 0x12e   :  { %v261_v28 = vadd.f32 %v2955_v22, %v260_v25 }
 0x12f   :  { %v2004_v29 = vpop.f32.mrf.mxu0  ;;  %v2043_v30 = vpop.f32.mrf.mxu1 }
 0x130   :  { %v384_v31 = vmax.f32 %v261_v28, 0.0 }
 0x131   :  { %v265_v32 = vpop.f32.mrf.mxu0  ;;  %v2960_v33 = vpop.f32.mrf.mxu1 }
 0x132   :  { %v266_v34 = vadd.f32 %v2955_v22, %v265_v32  ;;  %2110 = vmatmul.mubr.f32.vlgmr.msra.gmra.mxu1 %v384_v31 }
 0x133   :  { %v2007_v35 = vpop.f32.mrf.mxu0  ;;  %2112 = vmatprep.mubr.msk.f32.mxu1 %vm2756_vm0, %v2755_v0  ;;  %v2046_v36 = vpop.f32.mrf.mxu1 }
 0x134   :  { %v385_v37 = vmax.f32 %v266_v34, 0.0 }
 0x135   :  { %v270_v38 = vpop.f32.mrf.mxu0  ;;  %v2965_v39 = vpop.f32.mrf.mxu1 }
 0x136   :  { %v271_v40 = vadd.f32 %v2955_v22, %v270_v38  ;;  %2113 = vmatmul.mubr.f32.gmra.mxu1 %v385_v37 }
 0x137   :  { %v2010_v41 = vpop.f32.mrf.mxu0  ;;  %2115 = vmatprep.mubr.msk.f32.mxu1 %vm2756_vm0, %v2755_v0  ;;  %v2049_v42 = vpop.f32.mrf.mxu1 }
 0x138   :  { %v386_v43 = vmax.f32 %v271_v40, 0.0  ;;  %v326_v41 = vadd.f32 %v2955_v22, %v2957_v26 }
 0x139   :  { %v275_v44 = vpop.f32.mrf.mxu0  ;;  %v2970_v45 = vpop.f32.mrf.mxu1 }
 0x13a   :  { %v276_v46 = vadd.f32 %v2955_v22, %v275_v44  ;;  %2116 = vmatmul.mubr.f32.gmra.mxu1 %v386_v43  ;;  %v397_v44 = vmax.f32 %v326_v41, 0.0 }
 0x13b   :  { %v2013_v47 = vpop.f32.mrf.mxu0  ;;  %2118 = vmatprep.mubr.msk.f32.mxu1 %vm2756_vm0, %v2755_v0  ;;  %v2052_v48 = vpop.f32.mrf.mxu1 }
 0x13c   :  { %v387_v49 = vmax.f32 %v276_v46, 0.0  ;;  %v331_v46 = vadd.f32 %v2955_v22, %v2960_v33  ;;  %v336_v48 = vadd.f32 %v2955_v22, %v2965_v39 }
 0x13d   :  { %v280_v50 = vpop.f32.mrf.mxu0  ;;  %v2975_v51 = vpop.f32.mrf.mxu1 }
 0x13e   :  { %v281_v52 = vadd.f32 %v2955_v22, %v280_v50  ;;  %2119 = vmatmul.mubr.f32.gmra.mxu1 %v387_v49  ;;  %v398_v47 = vmax.f32 %v331_v46, 0.0  ;;  %v399_v26 = vmax.f32 %v336_v48, 0.0  ;;  %v341_v49 = vadd.f32 %v2955_v22, %v2970_v45  ;;  %v648_v45 = vld [vmem:[#allocation8 + $0x8] sm:$0xff] }
 0x13f   :  { %v2016_v53 = vpop.f32.mrf.mxu0  ;;  %2121 = vmatprep.mubr.msk.f32.mxu1 %vm2756_vm0, %v2755_v0  ;;  %v2055_v54 = vpop.f32.mrf.mxu1  ;;  %v346_v50 = vadd.f32 %v2955_v22, %v2975_v51  ;;  %721 = vmatprep.subr.mxu0 %v648_v45 }
 0x140   :  { %v388_v55 = vmax.f32 %v281_v52, 0.0  ;;  %v400_v33 = vmax.f32 %v341_v49, 0.0  ;;  %v647_v53 = vld [vmem:[#allocation8] sm:$0xff] }
 0x141   :  { %v285_v56 = vpop.f32.mrf.mxu0  ;;  %v2980_v57 = vpop.f32.mrf.mxu1  ;;  %v401_v39 = vmax.f32 %v346_v50, 0.0  ;;  %722 = vmatpush1.msra.mxu0 %v647_v53 }
 0x142   :  { %v286_v58 = vadd.f32 %v2955_v22, %v285_v56  ;;  %2122 = vmatmul.mubr.f32.gmra.mxu1 %v388_v55  ;;  %v351_v52 = vadd.f32 %v2955_v22, %v2980_v57  ;;  %2291 = vmatprep.subr.mxu0 %v2755_v0 }
 0x143   :  { %v2019_v59 = vpop.f32.mrf.mxu0  ;;  %2124 = vmatprep.mubr.msk.f32.mxu1 %vm2756_vm0, %v2755_v0  ;;  %v2058_v60 = vpop.f32.mrf.mxu1 }
 0x144   :  { %v389_v61 = vmax.f32 %v286_v58, 0.0  ;;  %v402_v54 = vmax.f32 %v351_v52, 0.0 }
 0x145   :  { %v290_v62 = vpop.f32.mrf.mxu0  ;;  %v2985_v63 = vpop.f32.mrf.mxu1 }
 0x146   :  { %v291_v1 = vadd.f32 %v2955_v22, %v290_v62  ;;  %2125 = vmatmul.mubr.f32.gmra.mxu1 %v389_v61  ;;  %v356_v55 = vadd.f32 %v2955_v22, %v2985_v63 }
 0x147   :  { %v2022_v2 = vpop.f32.mrf.mxu0  ;;  %2127 = vmatprep.mubr.msk.f32.mxu1 %vm2756_vm0, %v2755_v0  ;;  %v2061_v3 = vpop.f32.mrf.mxu1 }
 0x148   :  { %v390_v4 = vmax.f32 %v291_v1, 0.0  ;;  %v403_v51 = vmax.f32 %v356_v55, 0.0  ;;  %v1046_v3 = vld [vmem:[#allocation10 + $0x78] sm:$0xff] }
 0x149   :  { %v295_v5 = vpop.f32.mrf.mxu0  ;;  %v2990_v6 = vpop.f32.mrf.mxu1  ;;  %2185 = vmatpush3.msra.mxu1 %v1046_v3 }
 0x14a   :  { %v296_v7 = vadd.f32 %v2955_v22, %v295_v5  ;;  %2128 = vmatmul.mubr.f32.gmra.mxu1 %v390_v4  ;;  %v361_v56 = vadd.f32 %v2955_v22, %v2990_v6  ;;  %v1045_v4 = vld [vmem:[#allocation10 + $0x70] sm:$0xff]  ;;  %2186 = vmatprep.subr.mxu1 %v2755_v0  ;;  %v1044_v5 = vld [vmem:[#allocation10 + $0x68] sm:$0xff]  ;;  %v1042_v6 = vld [vmem:[#allocation10 + $0x58] sm:$0xff] }
 0x14b   :  { %v2025_v8 = vpop.f32.mrf.mxu0  ;;  %2130 = vmatprep.mubr.msk.f32.mxu1 %vm2756_vm0, %v2755_v0  ;;  %v2064_v9 = vpop.f32.mrf.mxu1  ;;  %2187 = vmatpush3.msra.mxu1 %v1045_v4 }
 0x14c   :  { %v391_v10 = vmax.f32 %v296_v7, 0.0  ;;  %v404_v57 = vmax.f32 %v361_v56, 0.0  ;;  %2188 = vmatprep.subr.mxu1 %v2755_v0  ;;  %v1041_v7 = vld [vmem:[#allocation10 + $0x50] sm:$0xff]  ;;  %v1040_v8 = vld [vmem:[#allocation10 + $0x48] sm:$0xff]  ;;  %v1039_v9 = vld [vmem:[#allocation10 + $0x40] sm:$0xff] }
 0x14d   :  { %v300_v11 = vpop.f32.mrf.mxu0  ;;  %v2995_v12 = vpop.f32.mrf.mxu1  ;;  %2189 = vmatpush3.msra.mxu1 %v1044_v5 }
 0x14e   :  { %v301_v13 = vadd.f32 %v2955_v22, %v300_v11  ;;  %2131 = vmatmul.mubr.f32.gmra.mxu1 %v391_v10  ;;  %v366_v58 = vadd.f32 %v2955_v22, %v2995_v12  ;;  %2190 = vmatprep.subr.mxu1 %v2755_v0  ;;  %v1038_v10 = vld [vmem:[#allocation10 + $0x38] sm:$0xff]  ;;  %v1037_v11 = vld [vmem:[#allocation10 + $0x30] sm:$0xff]  ;;  %v1036_v12 = vld [vmem:[#allocation10 + $0x28] sm:$0xff] }
 0x14f   :  { %v2028_v14 = vpop.f32.mrf.mxu0  ;;  %2133 = vmatprep.mubr.msk.f32.mxu1 %vm2756_vm0, %v2755_v0  ;;  %v2067_v15 = vpop.f32.mrf.mxu1 }
 0x150   :  { %v392_v16 = vmax.f32 %v301_v13, 0.0  ;;  %v405_v59 = vmax.f32 %v366_v58, 0.0  ;;  %v1035_v13 = vld [vmem:[#allocation10 + $0x20] sm:$0xff]  ;;  %v3081_v14 = vld [vmem:[%s3464_s4] ss:$0 sm:$0xff] }
 0x151   :  { %v305_v17 = vpop.f32.mrf.mxu0  ;;  %v3000_v18 = vpop.f32.mrf.mxu1 }
 0x152   :  { %v306_v19 = vadd.f32 %v2955_v22, %v305_v17  ;;  %2134 = vmatmul.mubr.f32.gmra.mxu1 %v392_v16  ;;  %v371_v60 = vadd.f32 %v2955_v22, %v3000_v18 }
 0x153   :  { %v2031_v20 = vpop.f32.mrf.mxu0  ;;  %2136 = vmatprep.mubr.msk.f32.mxu1 %vm2756_vm0, %v2755_v0  ;;  %v2070_v21 = vpop.f32.mrf.mxu1 }
 0x154   :  { %v393_v23 = vmax.f32 %v306_v19, 0.0  ;;  %v406_v61 = vmax.f32 %v371_v60, 0.0 }
 0x155   :  { %v310_v24 = vpop.f32.mrf.mxu0  ;;  %v3005_v25 = vpop.f32.mrf.mxu1 }
 0x156   :  { %v311_v27 = vadd.f32 %v2955_v22, %v310_v24  ;;  %2137 = vmatmul.mubr.f32.gmra.mxu1 %v393_v23  ;;  %v376_v62 = vadd.f32 %v2955_v22, %v3005_v25 }
 0x157   :  { %v2034_v28 = vpop.f32.mrf.mxu0  ;;  %2139 = vmatprep.mubr.msk.f32.mxu1 %vm2756_vm0, %v2755_v0  ;;  %v2073_v29 = vpop.f32.mrf.mxu1 }
 0x158   :  { %v394_v30 = vmax.f32 %v311_v27, 0.0  ;;  %v407_v63 = vmax.f32 %v376_v62, 0.0 }
 0x159   :  { %v315_v31 = vpop.f32.mrf.mxu0  ;;  %v380_v32 = vpop.f32.mrf.mxu1 }
 0x15a   :  { %v316_v34 = vadd.f32 %v2955_v22, %v315_v31  ;;  %2140 = vmatmul.mubr.f32.gmra.mxu1 %v394_v30  ;;  %v381_v1 = vadd.f32 %v2955_v22, %v380_v32 }
 0x15b   :  { %v2037_v35 = vpop.f32.mrf.mxu0  ;;  %2142 = vmatprep.mubr.msk.f32.mxu1 %vm2756_vm0, %v2755_v0  ;;  %v2076_v36 = vpop.f32.mrf.mxu1 }
 0x15c   :  { %v395_v37 = vmax.f32 %v316_v34, 0.0  ;;  %v408_v2 = vmax.f32 %v381_v1, 0.0 }
 0x15d   :  { %v320_v38 = vpop.f32.mrf.mxu0 }
 0x15e   :  { %v321_v40 = vadd.f32 %v2955_v22, %v320_v38  ;;  %2143 = vmatmul.mubr.f32.gmra.mxu1 %v395_v37  ;;  %v1043_v22 = vld [vmem:[#allocation10 + $0x60] sm:$0xff] }
 0x15f   :  { %v2040_v42 = vpop.f32.mrf.mxu0  ;;  %2145 = vmatprep.mubr.msk.f32.mxu1 %vm2756_vm0, %v2755_v0  ;;  %2191 = vmatpush3.msra.mxu1 %v1043_v22 }
 0x160   :  { %v396_v43 = vmax.f32 %v321_v40, 0.0  ;;  %2192 = vmatprep.subr.mxu1 %v2755_v0 }
 0x161   :  { %2193 = vmatpush3.msra.mxu1 %v1042_v6 }
 0x162   :  { %2146 = vmatmul.mubr.f32.gmra.mxu1 %v396_v43  ;;  %2194 = vmatprep.subr.mxu1 %v2755_v0 }
 0x163   :  { %2148 = vmatprep.mubr.msk.f32.mxu1 %vm2756_vm0, %v2755_v0  ;;  %2195 = vmatpush3.msra.mxu1 %v1041_v7 }
 0x164   :  { %2196 = vmatprep.subr.mxu1 %v2755_v0 }
 0x165   :  { %2197 = vmatpush3.msra.mxu1 %v1040_v8 }
 0x166   :  { %2149 = vmatmul.mubr.f32.gmra.mxu1 %v397_v44  ;;  %2198 = vmatprep.subr.mxu1 %v2755_v0 }
 0x167   :  { %2151 = vmatprep.mubr.msk.f32.mxu1 %vm2756_vm0, %v2755_v0  ;;  %2199 = vmatpush3.msra.mxu1 %v1039_v9 }
 0x168   :  { %2200 = vmatprep.subr.mxu1 %v2755_v0 }
 0x169   :  { %2201 = vmatpush3.msra.mxu1 %v1038_v10 }
 0x16a   :  { %2152 = vmatmul.mubr.f32.gmra.mxu1 %v398_v47  ;;  %2202 = vmatprep.subr.mxu1 %v2755_v0 }
 0x16b   :  { %2154 = vmatprep.mubr.msk.f32.mxu1 %vm2756_vm0, %v2755_v0  ;;  %2203 = vmatpush3.msra.mxu1 %v1037_v11 }
 0x16c   :  { %2204 = vmatprep.subr.mxu1 %v2755_v0 }
 0x16d   :  { %2205 = vmatpush3.msra.mxu1 %v1036_v12 }
 0x16e   :  { %2155 = vmatmul.mubr.f32.gmra.mxu1 %v399_v26  ;;  %2206 = vmatprep.subr.mxu1 %v2755_v0 }
 0x16f   :  { %2157 = vmatprep.mubr.msk.f32.mxu1 %vm2756_vm0, %v2755_v0  ;;  %2207 = vmatpush3.msra.mxu1 %v1035_v13 }
 0x170   :  { %2208 = vmatprep.subr.mxu1 %v2755_v0 }
 0x172   :  { %2158 = vmatmul.mubr.f32.gmra.mxu1 %v400_v33 }
 0x173   :  { %2160 = vmatprep.mubr.msk.f32.mxu1 %vm2756_vm0, %v2755_v0 }
 0x176   :  { %2161 = vmatmul.mubr.f32.gmra.mxu1 %v401_v39 }
 0x177   :  { %2163 = vmatprep.mubr.msk.f32.mxu1 %vm2756_vm0, %v2755_v0 }
 0x17a   :  { %2164 = vmatmul.mubr.f32.gmra.mxu1 %v402_v54 }
 0x17b   :  { %2166 = vmatprep.mubr.msk.f32.mxu1 %vm2756_vm0, %v2755_v0 }
 0x17e   :  { %2167 = vmatmul.mubr.f32.gmra.mxu1 %v403_v51 }
 0x17f   :  { %2169 = vmatprep.mubr.msk.f32.mxu1 %vm2756_vm0, %v2755_v0 }
 0x182   :  { %2170 = vmatmul.mubr.f32.gmra.mxu1 %v404_v57 }
 0x183   :  { %2172 = vmatprep.mubr.msk.f32.mxu1 %vm2756_vm0, %v2755_v0 }
 0x186   :  { %2173 = vmatmul.mubr.f32.gmra.mxu1 %v405_v59 }
 0x187   :  { %2175 = vmatprep.mubr.msk.f32.mxu1 %vm2756_vm0, %v2755_v0 }
 0x18a   :  { %2176 = vmatmul.mubr.f32.gmra.mxu1 %v406_v61 }
 0x18b   :  { %2178 = vmatprep.mubr.msk.f32.mxu1 %vm2756_vm0, %v2755_v0 }
 0x18e   :  { %2179 = vmatmul.mubr.f32.gmra.mxu1 %v407_v63 }
 0x18f   :  { %2181 = vmatprep.mubr.msk.f32.mxu1 %vm2756_vm0, %v2755_v0 }
 0x192   :  { %2182 = vmatmul.mubr.f32.gmra.mxu1 %v408_v2 }
 0x193   :  { %2216 = vmatprep.mubr.msk.f32.mxu1 %vm2756_vm0, %v2755_v0 }
 0x1f2   :  { %v498_v15 = vpop.f32.mrf.mxu1 }
 0x1f3   :  { %v499_v16 = vadd.f32 %v3081_v14, %v498_v15 }
 0x1f4   :  { %v2111_v17 = vpop.f32.mrf.mxu1 }
 0x1f5   :  { %v622_v18 = vmax.f32 %v499_v16, 0.0 }
 0x1f6   :  { %v503_v19 = vpop.f32.mrf.mxu1 }
 0x1f7   :  { %1632 = vst [vmem:[#allocation13] sm:$0xff] %v622_v18  ;;  %v504_v20 = vadd.f32 %v3081_v14, %v503_v19  ;;  %756 = vmatmul.mubr.f32.vlgmr.msra.gmra.mxu0 %v622_v18 }
 0x1f8   :  { %v2114_v21 = vpop.f32.mrf.mxu1  ;;  %761 = vmatprep.mubr.f32.mxu0 %v2755_v0 }
 0x1f9   :  { %v623_v23 = vmax.f32 %v504_v20, 0.0 }
 0x1fa   :  { %v508_v24 = vpop.f32.mrf.mxu1 }
 0x1fb   :  { %1633 = vst [vmem:[#allocation13 + $0x28] sm:$0xff] %v623_v23  ;;  %v509_v25 = vadd.f32 %v3081_v14, %v508_v24  ;;  %762 = vmatmul.mubr.f32.gmra.mxu0 %v623_v23 }
 0x1fc   :  { %v2117_v27 = vpop.f32.mrf.mxu1  ;;  %767 = vmatprep.mubr.f32.mxu0 %v2755_v0 }
 0x1fd   :  { %v624_v28 = vmax.f32 %v509_v25, 0.0 }
 0x1fe   :  { %v513_v29 = vpop.f32.mrf.mxu1 }
 0x1ff   :  { %1634 = vst [vmem:[#allocation13 + $0x50] sm:$0xff] %v624_v28  ;;  %v514_v30 = vadd.f32 %v3081_v14, %v513_v29  ;;  %768 = vmatmul.mubr.f32.gmra.mxu0 %v624_v28 }
 0x200   :  { %v2120_v31 = vpop.f32.mrf.mxu1  ;;  %773 = vmatprep.mubr.f32.mxu0 %v2755_v0 }
 0x201   :  { %v625_v32 = vmax.f32 %v514_v30, 0.0 }
 0x202   :  { %v518_v34 = vpop.f32.mrf.mxu1 }
 0x203   :  { %1635 = vst [vmem:[#allocation13 + $0x78] sm:$0xff] %v625_v32  ;;  %v519_v35 = vadd.f32 %v3081_v14, %v518_v34  ;;  %774 = vmatmul.mubr.f32.gmra.mxu0 %v625_v32 }
 0x204   :  { %v2123_v36 = vpop.f32.mrf.mxu1  ;;  %779 = vmatprep.mubr.f32.mxu0 %v2755_v0 }
 0x205   :  { %v626_v37 = vmax.f32 %v519_v35, 0.0  ;;  %v1034_v35 = vld [vmem:[#allocation10 + $0x18] sm:$0xff] }
 0x206   :  { %v523_v38 = vpop.f32.mrf.mxu1  ;;  %2209 = vmatpush3.msra.mxu1 %v1034_v35 }
 0x207   :  { %1636 = vst [vmem:[#allocation13 + $0xa0] sm:$0xff] %v626_v37  ;;  %v524_v40 = vadd.f32 %v3081_v14, %v523_v38  ;;  %780 = vmatmul.mubr.f32.gmra.mxu0 %v626_v37  ;;  %2210 = vmatprep.subr.mxu1 %v2755_v0 }
 0x208   :  { %v2126_v41 = vpop.f32.mrf.mxu1  ;;  %785 = vmatprep.mubr.f32.mxu0 %v2755_v0 }
 0x209   :  { %v627_v42 = vmax.f32 %v524_v40, 0.0  ;;  %v1033_v41 = vld [vmem:[#allocation10 + $0x10] sm:$0xff] }
 0x20a   :  { %v528_v43 = vpop.f32.mrf.mxu1  ;;  %2211 = vmatpush3.msra.mxu1 %v1033_v41 }
 0x20b   :  { %1637 = vst [vmem:[#allocation13 + $0xc8] sm:$0xff] %v627_v42  ;;  %v529_v44 = vadd.f32 %v3081_v14, %v528_v43  ;;  %786 = vmatmul.mubr.f32.gmra.mxu0 %v627_v42  ;;  %2212 = vmatprep.subr.mxu1 %v2755_v0 }
 0x20c   :  { %v2129_v46 = vpop.f32.mrf.mxu1  ;;  %791 = vmatprep.mubr.f32.mxu0 %v2755_v0 }
 0x20d   :  { %v628_v47 = vmax.f32 %v529_v44, 0.0 }
 0x20e   :  { %v533_v48 = vpop.f32.mrf.mxu1 }
 0x20f   :  { %1638 = vst [vmem:[#allocation13 + $0xf0] sm:$0xff] %v628_v47  ;;  %v534_v26 = vadd.f32 %v3081_v14, %v533_v48  ;;  %792 = vmatmul.mubr.f32.gmra.mxu0 %v628_v47 }
 0x210   :  { %v2132_v49 = vpop.f32.mrf.mxu1  ;;  %797 = vmatprep.mubr.f32.mxu0 %v2755_v0 }
 0x211   :  { %v629_v33 = vmax.f32 %v534_v26, 0.0 }
 0x212   :  { %v538_v50 = vpop.f32.mrf.mxu1 }
 0x213   :  { %1639 = vst [vmem:[#allocation13 + $0x118] sm:$0xff] %v629_v33  ;;  %v539_v39 = vadd.f32 %v3081_v14, %v538_v50  ;;  %798 = vmatmul.mubr.f32.gmra.mxu0 %v629_v33  ;;  %v1032_v33 = vld [vmem:[#allocation10 + $0x8] sm:$0xff] }
 0x214   :  { %v2135_v52 = vpop.f32.mrf.mxu1  ;;  %803 = vmatprep.mubr.f32.mxu0 %v2755_v0  ;;  %2213 = vmatpush3.msra.mxu1 %v1032_v33 }
 0x215   :  { %v630_v45 = vmax.f32 %v539_v39, 0.0  ;;  %2214 = vmatprep.subr.mxu1 %v2755_v0 }
 0x216   :  { %v543_v53 = vpop.f32.mrf.mxu1 }
 0x217   :  { %1640 = vst [vmem:[#allocation13 + $0x140] sm:$0xff] %v630_v45  ;;  %v544_v54 = vadd.f32 %v3081_v14, %v543_v53  ;;  %804 = vmatmul.mubr.f32.gmra.mxu0 %v630_v45  ;;  %v1031_v53 = vld [vmem:[#allocation10] sm:$0xff] }
 0x218   :  { %v2138_v55 = vpop.f32.mrf.mxu1  ;;  %809 = vmatprep.mubr.f32.mxu0 %v2755_v0  ;;  %2215 = vmatpush3.msra.mxu1 %v1031_v53 }
 0x219   :  { %v631_v51 = vmax.f32 %v544_v54, 0.0 }
 0x21a   :  { %v548_v56 = vpop.f32.mrf.mxu1 }
 0x21b   :  { %1641 = vst [vmem:[#allocation13 + $0x168] sm:$0xff] %v631_v51  ;;  %v549_v57 = vadd.f32 %v3081_v14, %v548_v56  ;;  %810 = vmatmul.mubr.f32.gmra.mxu0 %v631_v51 }
 0x21c   :  { %v2141_v58 = vpop.f32.mrf.mxu1  ;;  %815 = vmatprep.mubr.f32.mxu0 %v2755_v0 }
 0x21d   :  { %v632_v59 = vmax.f32 %v549_v57, 0.0  ;;  %v681_v58 = vlaneseq }
 0x21e   :  { %v553_v60 = vpop.f32.mrf.mxu1 }
 0x21f   :  { %1642 = vst [vmem:[#allocation13 + $0x190] sm:$0xff] %v632_v59  ;;  %v554_v61 = vadd.f32 %v3081_v14, %v553_v60  ;;  %816 = vmatmul.mubr.f32.gmra.mxu0 %v632_v59  ;;  %v682_v59 = vshrl.u32 %v681_v58, 7 }
 0x220   :  { %v2144_v62 = vpop.f32.mrf.mxu1  ;;  %821 = vmatprep.mubr.f32.mxu0 %v2755_v0 }
 0x221   :  { %v633_v63 = vmax.f32 %v554_v61, 0.0  ;;  %v683_v60 = vsub.s32 0, %v682_v59  ;;  %v679_v61 = vld [vmem:[%s3466_s6] sm:$0x3]  ;;  %v687_v62 = vsub.s32 1, %v682_v59 }
 0x222   :  { %v558_v1 = vpop.f32.mrf.mxu1 }
 0x223   :  { %1643 = vst [vmem:[#allocation13 + $0x1b8] sm:$0xff] %v633_v63  ;;  %v559_v2 = vadd.f32 %v3081_v14, %v558_v1  ;;  %822 = vmatmul.mubr.f32.gmra.mxu0 %v633_v63  ;;  %v1284_v63 = vld [vmem:[#allocation11 + $0x78] sm:$0xff]  ;;  %v3140_v1 = vrot.slane %v679_v61, %v683_v60 }
 0x224   :  { %v2147_v3 = vpop.f32.mrf.mxu1  ;;  %827 = vmatprep.mubr.f32.mxu0 %v2755_v0  ;;  %2292 = vmatpush3.msra.mxu0 %v1284_v63 }
 0x225   :  { %v634_v4 = vmax.f32 %v559_v2, 0.0  ;;  %2293 = vmatprep.subr.mxu0 %v2755_v0  ;;  %v1282_v2 = vld [vmem:[#allocation11 + $0x68] sm:$0xff]  ;;  %v3143_v3 = vrot.slane %v679_v61, %v687_v62 }
 0x226   :  { %v563_v5 = vpop.f32.mrf.mxu1 }
 0x227   :  { %1644 = vst [vmem:[#allocation13 + $0x1e0] sm:$0xff] %v634_v4  ;;  %v564_v22 = vadd.f32 %v3081_v14, %v563_v5  ;;  %828 = vmatmul.mubr.f32.gmra.mxu0 %v634_v4  ;;  %v1281_v4 = vld [vmem:[#allocation11 + $0x60] sm:$0xff] }
 0x228   :  { %v2150_v6 = vpop.f32.mrf.mxu1  ;;  %833 = vmatprep.mubr.f32.mxu0 %v2755_v0 }
 0x229   :  { %v635_v7 = vmax.f32 %v564_v22, 0.0  ;;  %v1280_v6 = vld [vmem:[#allocation11 + $0x58] sm:$0xff] }
 0x22a   :  { %v568_v8 = vpop.f32.mrf.mxu1 }
 0x22b   :  { %1645 = vst [vmem:[#allocation13 + $0x208] sm:$0xff] %v635_v7  ;;  %v569_v9 = vadd.f32 %v3081_v14, %v568_v8  ;;  %834 = vmatmul.mubr.f32.gmra.mxu0 %v635_v7 }
 0x22c   :  { %v2153_v10 = vpop.f32.mrf.mxu1  ;;  %839 = vmatprep.mubr.f32.mxu0 %v2755_v0 }
 0x22d   :  { %v636_v11 = vmax.f32 %v569_v9, 0.0  ;;  %v1279_v9 = vld [vmem:[#allocation11 + $0x50] sm:$0xff] }
 0x22e   :  { %v573_v12 = vpop.f32.mrf.mxu1 }
 0x22f   :  { %1646 = vst [vmem:[#allocation13 + $0x230] sm:$0xff] %v636_v11  ;;  %v574_v13 = vadd.f32 %v3081_v14, %v573_v12  ;;  %840 = vmatmul.mubr.f32.gmra.mxu0 %v636_v11 }
 0x230   :  { %v2156_v15 = vpop.f32.mrf.mxu1  ;;  %845 = vmatprep.mubr.f32.mxu0 %v2755_v0 }
 0x231   :  { %v637_v16 = vmax.f32 %v574_v13, 0.0  ;;  %v1278_v13 = vld [vmem:[#allocation11 + $0x48] sm:$0xff] }
 0x232   :  { %v578_v17 = vpop.f32.mrf.mxu1 }
 0x233   :  { %1647 = vst [vmem:[#allocation13 + $0x258] sm:$0xff] %v637_v16  ;;  %v579_v18 = vadd.f32 %v3081_v14, %v578_v17  ;;  %846 = vmatmul.mubr.f32.gmra.mxu0 %v637_v16 }
 0x234   :  { %v2159_v19 = vpop.f32.mrf.mxu1  ;;  %851 = vmatprep.mubr.f32.mxu0 %v2755_v0 }
 0x235   :  { %v638_v20 = vmax.f32 %v579_v18, 0.0  ;;  %v1277_v18 = vld [vmem:[#allocation11 + $0x40] sm:$0xff] }
 0x236   :  { %v583_v21 = vpop.f32.mrf.mxu1 }
 0x237   :  { %1648 = vst [vmem:[#allocation13 + $0x280] sm:$0xff] %v638_v20  ;;  %v584_v23 = vadd.f32 %v3081_v14, %v583_v21  ;;  %852 = vmatmul.mubr.f32.gmra.mxu0 %v638_v20 }
 0x238   :  { %v2162_v24 = vpop.f32.mrf.mxu1  ;;  %857 = vmatprep.mubr.f32.mxu0 %v2755_v0 }
 0x239   :  { %v639_v25 = vmax.f32 %v584_v23, 0.0  ;;  %v1276_v23 = vld [vmem:[#allocation11 + $0x38] sm:$0xff] }
 0x23a   :  { %v588_v27 = vpop.f32.mrf.mxu1 }
 0x23b   :  { %1649 = vst [vmem:[#allocation13 + $0x2a8] sm:$0xff] %v639_v25  ;;  %v589_v28 = vadd.f32 %v3081_v14, %v588_v27  ;;  %858 = vmatmul.mubr.f32.gmra.mxu0 %v639_v25 }
 0x23c   :  { %v2165_v29 = vpop.f32.mrf.mxu1  ;;  %863 = vmatprep.mubr.f32.mxu0 %v2755_v0 }
 0x23d   :  { %v640_v30 = vmax.f32 %v589_v28, 0.0  ;;  %v1275_v28 = vld [vmem:[#allocation11 + $0x30] sm:$0xff] }
 0x23e   :  { %v593_v31 = vpop.f32.mrf.mxu1 }
 0x23f   :  { %1650 = vst [vmem:[#allocation13 + $0x2d0] sm:$0xff] %v640_v30  ;;  %v594_v32 = vadd.f32 %v3081_v14, %v593_v31  ;;  %864 = vmatmul.mubr.f32.gmra.mxu0 %v640_v30 }
 0x240   :  { %v2168_v34 = vpop.f32.mrf.mxu1  ;;  %869 = vmatprep.mubr.f32.mxu0 %v2755_v0 }
 0x241   :  { %v641_v36 = vmax.f32 %v594_v32, 0.0  ;;  %v1274_v32 = vld [vmem:[#allocation11 + $0x28] sm:$0xff] }
 0x242   :  { %v598_v37 = vpop.f32.mrf.mxu1 }
 0x243   :  { %1651 = vst [vmem:[#allocation13 + $0x2f8] sm:$0xff] %v641_v36  ;;  %v599_v38 = vadd.f32 %v3081_v14, %v598_v37  ;;  %870 = vmatmul.mubr.f32.gmra.mxu0 %v641_v36  ;;  %v1273_v37 = vld [vmem:[#allocation11 + $0x20] sm:$0xff] }
 0x244   :  { %v2171_v40 = vpop.f32.mrf.mxu1  ;;  %875 = vmatprep.mubr.f32.mxu0 %v2755_v0 }
 0x245   :  { %v642_v42 = vmax.f32 %v599_v38, 0.0 }
 0x246   :  { %v603_v43 = vpop.f32.mrf.mxu1 }
 0x247   :  { %1652 = vst [vmem:[#allocation13 + $0x320] sm:$0xff] %v642_v42  ;;  %v604_v44 = vadd.f32 %v3081_v14, %v603_v43  ;;  %876 = vmatmul.mubr.f32.gmra.mxu0 %v642_v42  ;;  %v1272_v42 = vld [vmem:[#allocation11 + $0x18] sm:$0xff] }
 0x248   :  { %v2174_v46 = vpop.f32.mrf.mxu1  ;;  %881 = vmatprep.mubr.f32.mxu0 %v2755_v0 }
 0x249   :  { %v643_v47 = vmax.f32 %v604_v44, 0.0 }
 0x24a   :  { %v608_v48 = vpop.f32.mrf.mxu1 }
 0x24b   :  { %1653 = vst [vmem:[#allocation13 + $0x348] sm:$0xff] %v643_v47  ;;  %v609_v26 = vadd.f32 %v3081_v14, %v608_v48  ;;  %882 = vmatmul.mubr.f32.gmra.mxu0 %v643_v47  ;;  %v1271_v47 = vld [vmem:[#allocation11 + $0x10] sm:$0xff] }
 0x24c   :  { %v2177_v49 = vpop.f32.mrf.mxu1  ;;  %887 = vmatprep.mubr.f32.mxu0 %v2755_v0 }
 0x24d   :  { %v644_v50 = vmax.f32 %v609_v26, 0.0  ;;  %v146_v26 = vld [vmem:[#allocation2 + $0x8] sm:$0xff] }
 0x24e   :  { %v613_v39 = vpop.f32.mrf.mxu1 }
 0x24f   :  { %1654 = vst [vmem:[#allocation13 + $0x370] sm:$0xff] %v644_v50  ;;  %v614_v52 = vadd.f32 %v3081_v14, %v613_v39  ;;  %888 = vmatmul.mubr.f32.gmra.mxu0 %v644_v50  ;;  %v1270_v50 = vld [vmem:[#allocation11 + $0x8] sm:$0xff] }
 0x250   :  { %v2180_v45 = vpop.f32.mrf.mxu1  ;;  %893 = vmatprep.mubr.f32.mxu0 %v2755_v0 }
 0x251   :  { %v645_v54 = vmax.f32 %v614_v52, 0.0 }
 0x252   :  { %v618_v55 = vpop.f32.mrf.mxu1 }
 0x253   :  { %1655 = vst [vmem:[#allocation13 + $0x398] sm:$0xff] %v645_v54  ;;  %v619_v51 = vadd.f32 %v3081_v14, %v618_v55  ;;  %894 = vmatmul.mubr.f32.gmra.mxu0 %v645_v54  ;;  %v1283_v14 = vld [vmem:[#allocation11 + $0x70] sm:$0xff]  ;;  %v1269_v55 = vld [vmem:[#allocation11] sm:$0xff] }
 0x254   :  { %v2183_v56 = vpop.f32.mrf.mxu1  ;;  %899 = vmatprep.mubr.f32.mxu0 %v2755_v0  ;;  %2294 = vmatpush3.msra.mxu0 %v1283_v14 }
 0x255   :  { %v646_v57 = vmax.f32 %v619_v51, 0.0  ;;  %2295 = vmatprep.subr.mxu0 %v2755_v0  ;;  %v147_v56 = vld [vmem:[#allocation2 + $0x18] sm:$0xff] }
 0x256   :  { %2296 = vmatpush3.msra.mxu0 %v1282_v2 }
 0x257   :  { %1656 = vst [vmem:[#allocation13 + $0x3c0] sm:$0xff] %v646_v57  ;;  %900 = vmatmul.mubr.f32.gmra.mxu0 %v646_v57  ;;  %2297 = vmatprep.subr.mxu0 %v2755_v0 }
 0x258   :  { %2323 = vmatprep.mubr.msk.f32.mxu0 %vm2756_vm0, %v2755_v0  ;;  %2298 = vmatpush3.msra.mxu0 %v1281_v4  ;;  %v148_v4 = vld [vmem:[#allocation2 + $0x28] sm:$0xff] }
 0x259   :  { %2299 = vmatprep.subr.mxu0 %v2755_v0 }
 0x25a   :  { %2300 = vmatpush3.msra.mxu0 %v1280_v6 }
 0x25b   :  { %2301 = vmatprep.subr.mxu0 %v2755_v0 }
 0x25c   :  { %2302 = vmatpush3.msra.mxu0 %v1279_v9 }
 0x25d   :  { %2303 = vmatprep.subr.mxu0 %v2755_v0 }
 0x25e   :  { %2304 = vmatpush3.msra.mxu0 %v1278_v13 }
 0x25f   :  { %2305 = vmatprep.subr.mxu0 %v2755_v0 }
 0x260   :  { %2306 = vmatpush3.msra.mxu0 %v1277_v18 }
 0x261   :  { %2307 = vmatprep.subr.mxu0 %v2755_v0 }
 0x262   :  { %2308 = vmatpush3.msra.mxu0 %v1276_v23 }
 0x263   :  { %2309 = vmatprep.subr.mxu0 %v2755_v0 }
 0x264   :  { %2310 = vmatpush3.msra.mxu0 %v1275_v28 }
 0x265   :  { %2311 = vmatprep.subr.mxu0 %v2755_v0 }
 0x266   :  { %2312 = vmatpush3.msra.mxu0 %v1274_v32 }
 0x267   :  { %2313 = vmatprep.subr.mxu0 %v2755_v0 }
 0x268   :  { %2314 = vmatpush3.msra.mxu0 %v1273_v37 }
 0x269   :  { %2315 = vmatprep.subr.mxu0 %v2755_v0 }
 0x26a   :  { %2316 = vmatpush3.msra.mxu0 %v1272_v42 }
 0x26b   :  { %2317 = vmatprep.subr.mxu0 %v2755_v0 }
 0x26c   :  { %2318 = vmatpush3.msra.mxu0 %v1271_v47 }
 0x26d   :  { %2319 = vmatprep.subr.mxu0 %v2755_v0 }
 0x26e   :  { %2320 = vmatpush3.msra.mxu0 %v1270_v50 }
 0x26f   :  { %2321 = vmatprep.subr.mxu0 %v2755_v0 }
 0x270   :  { %2322 = vmatpush3.msra.mxu0 %v1269_v55 }
 0x2b7   :  { %v757_v5 = vpop.f32.mrf.mxu0 }
 0x2b8   :  { %v3147_v22 = vadd.f32 %v757_v5, %v3140_v1 }
 0x2b9   :  { %v759_v7 = vpop.f32.mrf.mxu0 }
 0x2ba   :  { %1657 = vst [vmem:[#allocation13 + $0x8] sm:$0xff] %v3147_v22  ;;  %v760_v8 = vadd.f32 %v759_v7, %v3143_v3 }
 0x2bb   :  { %v763_v10 = vpop.f32.mrf.mxu0 }
 0x2bc   :  { %v906_v11 = vmul.f32 0.5, %v760_v8  ;;  %1658 = vst [vmem:[#allocation13 + $0x10] sm:$0xff] %v760_v8  ;;  %v3154_v12 = vadd.f32 %v763_v10, %v3140_v1 }
 0x2bd   :  { %v765_v15 = vpop.f32.mrf.mxu0 }
 0x2be   :  { %v931_v16 = vmul.f32 1.442695, %v906_v11  ;;  %1659 = vst [vmem:[#allocation13 + $0x30] sm:$0xff] %v3154_v12  ;;  %v766_v17 = vadd.f32 %v765_v15, %v3143_v3  ;;  %v149_v15 = vld [vmem:[#allocation2 + $0x38] sm:$0xff] }
 0x2bf   :  { %v769_v19 = vpop.f32.mrf.mxu0 }
 0x2c0   :  { %2445 = vpow2.f32 %v931_v16  ;;  %v907_v20 = vmul.f32 0.5, %v766_v17  ;;  %1660 = vst [vmem:[#allocation13 + $0x38] sm:$0xff] %v766_v17  ;;  %v3161_v21 = vadd.f32 %v769_v19, %v3140_v1 }
 0x2c1   :  { %v771_v24 = vpop.f32.mrf.mxu0 }
 0x2c2   :  { %v933_v25 = vmul.f32 1.442695, %v907_v20  ;;  %1661 = vst [vmem:[#allocation13 + $0x58] sm:$0xff] %v3161_v21  ;;  %v772_v27 = vadd.f32 %v771_v24, %v3143_v3 }
 0x2c3   :  { %v775_v29 = vpop.f32.mrf.mxu0 }
 0x2c4   :  { %2447 = vpow2.f32 %v933_v25  ;;  %v908_v30 = vmul.f32 0.5, %v772_v27  ;;  %1662 = vst [vmem:[#allocation13 + $0x60] sm:$0xff] %v772_v27  ;;  %v3168_v31 = vadd.f32 %v775_v29, %v3140_v1  ;;  %v150_v27 = vld [vmem:[#allocation2 + $0x48] sm:$0xff] }
 0x2c5   :  { %v777_v34 = vpop.f32.mrf.mxu0 }
 0x2c6   :  { %v935_v35 = vmul.f32 1.442695, %v908_v30  ;;  %1663 = vst [vmem:[#allocation13 + $0x80] sm:$0xff] %v3168_v31  ;;  %v778_v36 = vadd.f32 %v777_v34, %v3143_v3 }
 0x2c7   :  { %v781_v38 = vpop.f32.mrf.mxu0 }
 0x2c8   :  { %2449 = vpow2.f32 %v935_v35  ;;  %v909_v40 = vmul.f32 0.5, %v778_v36  ;;  %1664 = vst [vmem:[#allocation13 + $0x88] sm:$0xff] %v778_v36  ;;  %v3175_v41 = vadd.f32 %v781_v38, %v3140_v1  ;;  %v151_v38 = vld [vmem:[#allocation2 + $0x58] sm:$0xff] }
 0x2c9   :  { %v783_v43 = vpop.f32.mrf.mxu0 }
 0x2ca   :  { %v937_v44 = vmul.f32 1.442695, %v909_v40  ;;  %1665 = vst [vmem:[#allocation13 + $0xa8] sm:$0xff] %v3175_v41  ;;  %v784_v46 = vadd.f32 %v783_v43, %v3143_v3 }
 0x2cb   :  { %v787_v48 = vpop.f32.mrf.mxu0 }
 0x2cc   :  { %2451 = vpow2.f32 %v937_v44  ;;  %v910_v49 = vmul.f32 0.5, %v784_v46  ;;  %1666 = vst [vmem:[#allocation13 + $0xb0] sm:$0xff] %v784_v46  ;;  %v3182_v33 = vadd.f32 %v787_v48, %v3140_v1 }
 0x2cd   :  { %v2446_v39 = vpop.eup %2445  ;;  %v789_v52 = vpop.f32.mrf.mxu0 }
 0x2ce   :  { %v939_v45 = vmul.f32 1.442695, %v910_v49  ;;  %1667 = vst [vmem:[#allocation13 + $0xd0] sm:$0xff] %v3182_v33  ;;  %v790_v53 = vadd.f32 %v789_v52, %v3143_v3  ;;  %v981_v54 = vmul.f32 %v2446_v39, %v146_v26  ;;  %v152_v49 = vld [vmem:[#allocation2 + $0x68] sm:$0xff] }
 0x2cf   :  { %v793_v51 = vpop.f32.mrf.mxu0 }
 0x2d0   :  { %2453 = vpow2.f32 %v939_v45  ;;  %v911_v57 = vmul.f32 0.5, %v790_v53  ;;  %1668 = vst [vmem:[#allocation13 + $0xd8] sm:$0xff] %v790_v53  ;;  %v3189_v58 = vadd.f32 %v793_v51, %v3140_v1  ;;  %v1006_v59 = vadd.f32 %v981_v54, %v3147_v22 }
 0x2d1   :  { %v2448_v60 = vpop.eup %2447  ;;  %v795_v61 = vpop.f32.mrf.mxu0 }
 0x2d2   :  { %v941_v62 = vmul.f32 1.442695, %v911_v57  ;;  %1669 = vst [vmem:[#allocation13 + $0xf8] sm:$0xff] %v3189_v58  ;;  %v796_v63 = vadd.f32 %v795_v61, %v3143_v3  ;;  %2217 = vmatmul.mubr.f32.vlgmr.msra.gmra.mxu1 %v1006_v59  ;;  %1707 = vst [vmem:[#allocation13 + $0x18] sm:$0xff] %v1006_v59  ;;  %v982_v14 = vmul.f32 %v2448_v60, %v147_v56  ;;  %v153_v56 = vld [vmem:[#allocation2 + $0x78] sm:$0xff] }
 0x2d3   :  { %v799_v2 = vpop.f32.mrf.mxu0  ;;  %2219 = vmatprep.mubr.msk.f32.mxu1 %vm2756_vm0, %v2755_v0 }
 0x2d4   :  { %2455 = vpow2.f32 %v941_v62  ;;  %v912_v5 = vmul.f32 0.5, %v796_v63  ;;  %1670 = vst [vmem:[#allocation13 + $0x100] sm:$0xff] %v796_v63  ;;  %v3198_v22 = vadd.f32 %v799_v2, %v3140_v1  ;;  %v1007_v6 = vadd.f32 %v982_v14, %v3154_v12 }
 0x2d5   :  { %v2450_v7 = vpop.eup %2449  ;;  %v801_v8 = vpop.f32.mrf.mxu0 }
 0x2d6   :  { %v943_v9 = vmul.f32 1.442695, %v912_v5  ;;  %1671 = vst [vmem:[#allocation13 + $0x120] sm:$0xff] %v3198_v22  ;;  %v802_v10 = vadd.f32 %v801_v8, %v3143_v3  ;;  %2220 = vmatmul.mubr.f32.gmra.mxu1 %v1007_v6  ;;  %1708 = vst [vmem:[#allocation13 + $0x40] sm:$0xff] %v1007_v6  ;;  %v983_v11 = vmul.f32 %v2450_v7, %v148_v4  ;;  %v154_v4 = vld [vmem:[#allocation2 + $0x88] sm:$0xff] }
 0x2d7   :  { %v805_v13 = vpop.f32.mrf.mxu0  ;;  %2222 = vmatprep.mubr.msk.f32.mxu1 %vm2756_vm0, %v2755_v0 }
 0x2d8   :  { %2457 = vpow2.f32 %v943_v9  ;;  %v913_v16 = vmul.f32 0.5, %v802_v10  ;;  %1672 = vst [vmem:[#allocation13 + $0x128] sm:$0xff] %v802_v10  ;;  %v3206_v12 = vadd.f32 %v805_v13, %v3140_v1  ;;  %v1008_v17 = vadd.f32 %v983_v11, %v3161_v21 }
 0x2d9   :  { %v2452_v18 = vpop.eup %2451  ;;  %v807_v19 = vpop.f32.mrf.mxu0 }
 0x2da   :  { %v945_v20 = vmul.f32 1.442695, %v913_v16  ;;  %1673 = vst [vmem:[#allocation13 + $0x148] sm:$0xff] %v3206_v12  ;;  %v808_v23 = vadd.f32 %v807_v19, %v3143_v3  ;;  %2223 = vmatmul.mubr.f32.gmra.mxu1 %v1008_v17  ;;  %1709 = vst [vmem:[#allocation13 + $0x68] sm:$0xff] %v1008_v17  ;;  %v984_v24 = vmul.f32 %v2452_v18, %v149_v15  ;;  %v155_v15 = vld [vmem:[#allocation2 + $0x98] sm:$0xff] }
 0x2db   :  { %v811_v25 = vpop.f32.mrf.mxu0  ;;  %2225 = vmatprep.mubr.msk.f32.mxu1 %vm2756_vm0, %v2755_v0 }
 0x2dc   :  { %2459 = vpow2.f32 %v945_v20  ;;  %v914_v28 = vmul.f32 0.5, %v808_v23  ;;  %1674 = vst [vmem:[#allocation13 + $0x150] sm:$0xff] %v808_v23  ;;  %v3214_v21 = vadd.f32 %v811_v25, %v3140_v1  ;;  %v1009_v29 = vadd.f32 %v984_v24, %v3168_v31 }
 0x2dd   :  { %v2454_v30 = vpop.eup %2453  ;;  %v813_v32 = vpop.f32.mrf.mxu0 }
 0x2de   :  { %v947_v34 = vmul.f32 1.442695, %v914_v28  ;;  %1675 = vst [vmem:[#allocation13 + $0x170] sm:$0xff] %v3214_v21  ;;  %v814_v35 = vadd.f32 %v813_v32, %v3143_v3  ;;  %2226 = vmatmul.mubr.f32.gmra.mxu1 %v1009_v29  ;;  %1710 = vst [vmem:[#allocation13 + $0x90] sm:$0xff] %v1009_v29  ;;  %v985_v36 = vmul.f32 %v2454_v30, %v150_v27  ;;  %v156_v27 = vld [vmem:[#allocation2 + $0xa8] sm:$0xff] }
 0x2df   :  { %v817_v37 = vpop.f32.mrf.mxu0  ;;  %2228 = vmatprep.mubr.msk.f32.mxu1 %vm2756_vm0, %v2755_v0 }
 0x2e0   :  { %2461 = vpow2.f32 %v947_v34  ;;  %v915_v40 = vmul.f32 0.5, %v814_v35  ;;  %1676 = vst [vmem:[#allocation13 + $0x178] sm:$0xff] %v814_v35  ;;  %v3222_v31 = vadd.f32 %v817_v37, %v3140_v1  ;;  %v1010_v42 = vadd.f32 %v985_v36, %v3175_v41 }
 0x2e1   :  { %v2456_v43 = vpop.eup %2455  ;;  %v819_v44 = vpop.f32.mrf.mxu0 }
 0x2e2   :  { %v949_v46 = vmul.f32 1.442695, %v915_v40  ;;  %1677 = vst [vmem:[#allocation13 + $0x198] sm:$0xff] %v3222_v31  ;;  %v820_v47 = vadd.f32 %v819_v44, %v3143_v3  ;;  %2229 = vmatmul.mubr.f32.gmra.mxu1 %v1010_v42  ;;  %1711 = vst [vmem:[#allocation13 + $0xb8] sm:$0xff] %v1010_v42  ;;  %v986_v48 = vmul.f32 %v2456_v43, %v151_v38  ;;  %v157_v38 = vld [vmem:[#allocation2 + $0xb8] sm:$0xff] }
 0x2e3   :  { %v823_v26 = vpop.f32.mrf.mxu0  ;;  %2231 = vmatprep.mubr.msk.f32.mxu1 %vm2756_vm0, %v2755_v0 }
 0x2e4   :  { %2463 = vpow2.f32 %v949_v46  ;;  %v916_v50 = vmul.f32 0.5, %v820_v47  ;;  %1678 = vst [vmem:[#allocation13 + $0x1a0] sm:$0xff] %v820_v47  ;;  %v3230_v41 = vadd.f32 %v823_v26, %v3140_v1  ;;  %v1011_v39 = vadd.f32 %v986_v48, %v3182_v33 }
 0x2e5   :  { %v2458_v52 = vpop.eup %2457  ;;  %v825_v45 = vpop.f32.mrf.mxu0 }
 0x2e6   :  { %v951_v53 = vmul.f32 1.442695, %v916_v50  ;;  %1679 = vst [vmem:[#allocation13 + $0x1c0] sm:$0xff] %v3230_v41  ;;  %v826_v54 = vadd.f32 %v825_v45, %v3143_v3  ;;  %2232 = vmatmul.mubr.f32.gmra.mxu1 %v1011_v39  ;;  %1712 = vst [vmem:[#allocation13 + $0xe0] sm:$0xff] %v1011_v39  ;;  %v987_v55 = vmul.f32 %v2458_v52, %v152_v49  ;;  %v158_v49 = vld [vmem:[#allocation2 + $0xc8] sm:$0xff] }
 0x2e7   :  { %v829_v51 = vpop.f32.mrf.mxu0  ;;  %2234 = vmatprep.mubr.msk.f32.mxu1 %vm2756_vm0, %v2755_v0 }
 0x2e8   :  { %2465 = vpow2.f32 %v951_v53  ;;  %v917_v57 = vmul.f32 0.5, %v826_v54  ;;  %1680 = vst [vmem:[#allocation13 + $0x1c8] sm:$0xff] %v826_v54  ;;  %v3238_v33 = vadd.f32 %v829_v51, %v3140_v1  ;;  %v1012_v59 = vadd.f32 %v987_v55, %v3189_v58 }
 0x2e9   :  { %v2460_v60 = vpop.eup %2459  ;;  %v831_v61 = vpop.f32.mrf.mxu0 }
 0x2ea   :  { %v953_v62 = vmul.f32 1.442695, %v917_v57  ;;  %1681 = vst [vmem:[#allocation13 + $0x1e8] sm:$0xff] %v3238_v33  ;;  %v832_v63 = vadd.f32 %v831_v61, %v3143_v3  ;;  %2235 = vmatmul.mubr.f32.gmra.mxu1 %v1012_v59  ;;  %1713 = vst [vmem:[#allocation13 + $0x108] sm:$0xff] %v1012_v59  ;;  %v988_v14 = vmul.f32 %v2460_v60, %v153_v56  ;;  %v159_v56 = vld [vmem:[#allocation2 + $0xd8] sm:$0xff] }
 0x2eb   :  { %v835_v2 = vpop.f32.mrf.mxu0  ;;  %2237 = vmatprep.mubr.msk.f32.mxu1 %vm2756_vm0, %v2755_v0 }
 0x2ec   :  { %2467 = vpow2.f32 %v953_v62  ;;  %v918_v5 = vmul.f32 0.5, %v832_v63  ;;  %1682 = vst [vmem:[#allocation13 + $0x1f0] sm:$0xff] %v832_v63  ;;  %v3246_v58 = vadd.f32 %v835_v2, %v3140_v1  ;;  %v1013_v6 = vadd.f32 %v988_v14, %v3198_v22 }
 0x2ed   :  { %v2462_v7 = vpop.eup %2461  ;;  %v837_v8 = vpop.f32.mrf.mxu0 }
 0x2ee   :  { %v955_v9 = vmul.f32 1.442695, %v918_v5  ;;  %1683 = vst [vmem:[#allocation13 + $0x210] sm:$0xff] %v3246_v58  ;;  %v838_v10 = vadd.f32 %v837_v8, %v3143_v3  ;;  %2238 = vmatmul.mubr.f32.gmra.mxu1 %v1013_v6  ;;  %1714 = vst [vmem:[#allocation13 + $0x130] sm:$0xff] %v1013_v6  ;;  %v989_v11 = vmul.f32 %v2462_v7, %v154_v4  ;;  %v160_v4 = vld [vmem:[#allocation2 + $0xe8] sm:$0xff] }
 0x2ef   :  { %v841_v13 = vpop.f32.mrf.mxu0  ;;  %2240 = vmatprep.mubr.msk.f32.mxu1 %vm2756_vm0, %v2755_v0 }
 0x2f0   :  { %2469 = vpow2.f32 %v955_v9  ;;  %v919_v16 = vmul.f32 0.5, %v838_v10  ;;  %1684 = vst [vmem:[#allocation13 + $0x218] sm:$0xff] %v838_v10  ;;  %v3254_v22 = vadd.f32 %v841_v13, %v3140_v1  ;;  %v1014_v17 = vadd.f32 %v989_v11, %v3206_v12 }
 0x2f1   :  { %v2464_v18 = vpop.eup %2463  ;;  %v843_v19 = vpop.f32.mrf.mxu0 }
 0x2f2   :  { %v957_v20 = vmul.f32 1.442695, %v919_v16  ;;  %1685 = vst [vmem:[#allocation13 + $0x238] sm:$0xff] %v3254_v22  ;;  %v844_v23 = vadd.f32 %v843_v19, %v3143_v3  ;;  %2241 = vmatmul.mubr.f32.gmra.mxu1 %v1014_v17  ;;  %1715 = vst [vmem:[#allocation13 + $0x158] sm:$0xff] %v1014_v17  ;;  %v990_v24 = vmul.f32 %v2464_v18, %v155_v15  ;;  %v161_v15 = vld [vmem:[#allocation2 + $0xf8] sm:$0xff] }
 0x2f3   :  { %v847_v25 = vpop.f32.mrf.mxu0  ;;  %2243 = vmatprep.mubr.msk.f32.mxu1 %vm2756_vm0, %v2755_v0 }
 0x2f4   :  { %2471 = vpow2.f32 %v957_v20  ;;  %v920_v28 = vmul.f32 0.5, %v844_v23  ;;  %1686 = vst [vmem:[#allocation13 + $0x240] sm:$0xff] %v844_v23  ;;  %v3262_v12 = vadd.f32 %v847_v25, %v3140_v1  ;;  %v1015_v29 = vadd.f32 %v990_v24, %v3214_v21 }
 0x2f5   :  { %v2466_v30 = vpop.eup %2465  ;;  %v849_v32 = vpop.f32.mrf.mxu0 }
 0x2f6   :  { %v959_v34 = vmul.f32 1.442695, %v920_v28  ;;  %1687 = vst [vmem:[#allocation13 + $0x260] sm:$0xff] %v3262_v12  ;;  %v850_v35 = vadd.f32 %v849_v32, %v3143_v3  ;;  %2244 = vmatmul.mubr.f32.gmra.mxu1 %v1015_v29  ;;  %1716 = vst [vmem:[#allocation13 + $0x180] sm:$0xff] %v1015_v29  ;;  %v991_v36 = vmul.f32 %v2466_v30, %v156_v27  ;;  %v162_v27 = vld [vmem:[#allocation2 + $0x108] sm:$0xff] }
 0x2f7   :  { %v853_v37 = vpop.f32.mrf.mxu0  ;;  %2246 = vmatprep.mubr.msk.f32.mxu1 %vm2756_vm0, %v2755_v0 }
 0x2f8   :  { %2473 = vpow2.f32 %v959_v34  ;;  %v921_v40 = vmul.f32 0.5, %v850_v35  ;;  %1688 = vst [vmem:[#allocation13 + $0x268] sm:$0xff] %v850_v35  ;;  %v3270_v21 = vadd.f32 %v853_v37, %v3140_v1  ;;  %v1016_v42 = vadd.f32 %v991_v36, %v3222_v31 }
 0x2f9   :  { %v2468_v43 = vpop.eup %2467  ;;  %v855_v44 = vpop.f32.mrf.mxu0 }
 0x2fa   :  { %v961_v46 = vmul.f32 1.442695, %v921_v40  ;;  %1689 = vst [vmem:[#allocation13 + $0x288] sm:$0xff] %v3270_v21  ;;  %v856_v47 = vadd.f32 %v855_v44, %v3143_v3  ;;  %2247 = vmatmul.mubr.f32.gmra.mxu1 %v1016_v42  ;;  %1717 = vst [vmem:[#allocation13 + $0x1a8] sm:$0xff] %v1016_v42  ;;  %v992_v48 = vmul.f32 %v2468_v43, %v157_v38  ;;  %v163_v38 = vld [vmem:[#allocation2 + $0x118] sm:$0xff] }
 0x2fb   :  { %v859_v26 = vpop.f32.mrf.mxu0  ;;  %2249 = vmatprep.mubr.msk.f32.mxu1 %vm2756_vm0, %v2755_v0 }
 0x2fc   :  { %2475 = vpow2.f32 %v961_v46  ;;  %v922_v50 = vmul.f32 0.5, %v856_v47  ;;  %1690 = vst [vmem:[#allocation13 + $0x290] sm:$0xff] %v856_v47  ;;  %v3278_v31 = vadd.f32 %v859_v26, %v3140_v1  ;;  %v1017_v39 = vadd.f32 %v992_v48, %v3230_v41 }
 0x2fd   :  { %v2470_v52 = vpop.eup %2469  ;;  %v861_v45 = vpop.f32.mrf.mxu0 }
 0x2fe   :  { %v963_v53 = vmul.f32 1.442695, %v922_v50  ;;  %1691 = vst [vmem:[#allocation13 + $0x2b0] sm:$0xff] %v3278_v31  ;;  %v862_v54 = vadd.f32 %v861_v45, %v3143_v3  ;;  %2250 = vmatmul.mubr.f32.gmra.mxu1 %v1017_v39  ;;  %1718 = vst [vmem:[#allocation13 + $0x1d0] sm:$0xff] %v1017_v39  ;;  %v993_v55 = vmul.f32 %v2470_v52, %v158_v49  ;;  %v164_v49 = vld [vmem:[#allocation2 + $0x128] sm:$0xff] }
 0x2ff   :  { %v865_v51 = vpop.f32.mrf.mxu0  ;;  %2252 = vmatprep.mubr.msk.f32.mxu1 %vm2756_vm0, %v2755_v0 }
 0x300   :  { %2477 = vpow2.f32 %v963_v53  ;;  %v923_v57 = vmul.f32 0.5, %v862_v54  ;;  %1692 = vst [vmem:[#allocation13 + $0x2b8] sm:$0xff] %v862_v54  ;;  %v3286_v41 = vadd.f32 %v865_v51, %v3140_v1  ;;  %v1018_v59 = vadd.f32 %v993_v55, %v3238_v33 }
 0x301   :  { %v2472_v60 = vpop.eup %2471  ;;  %v867_v61 = vpop.f32.mrf.mxu0 }
 0x302   :  { %v965_v62 = vmul.f32 1.442695, %v923_v57  ;;  %1693 = vst [vmem:[#allocation13 + $0x2d8] sm:$0xff] %v3286_v41  ;;  %v868_v63 = vadd.f32 %v867_v61, %v3143_v3  ;;  %2253 = vmatmul.mubr.f32.gmra.mxu1 %v1018_v59  ;;  %1719 = vst [vmem:[#allocation13 + $0x1f8] sm:$0xff] %v1018_v59  ;;  %v994_v14 = vmul.f32 %v2472_v60, %v159_v56  ;;  %v165_v56 = vld [vmem:[#allocation2 + $0x138] sm:$0xff] }
 0x303   :  { %v871_v2 = vpop.f32.mrf.mxu0  ;;  %2255 = vmatprep.mubr.msk.f32.mxu1 %vm2756_vm0, %v2755_v0 }
 0x304   :  { %2479 = vpow2.f32 %v965_v62  ;;  %v924_v5 = vmul.f32 0.5, %v868_v63  ;;  %1694 = vst [vmem:[#allocation13 + $0x2e0] sm:$0xff] %v868_v63  ;;  %v3294_v33 = vadd.f32 %v871_v2, %v3140_v1  ;;  %v1019_v6 = vadd.f32 %v994_v14, %v3246_v58  ;;  %v166_v2 = vld [vmem:[#allocation2 + $0x148] sm:$0xff] }
 0x305   :  { %v2474_v7 = vpop.eup %2473  ;;  %v873_v8 = vpop.f32.mrf.mxu0 }
 0x306   :  { %v967_v9 = vmul.f32 1.442695, %v924_v5  ;;  %1695 = vst [vmem:[#allocation13 + $0x300] sm:$0xff] %v3294_v33  ;;  %v874_v10 = vadd.f32 %v873_v8, %v3143_v3  ;;  %2256 = vmatmul.mubr.f32.gmra.mxu1 %v1019_v6  ;;  %1720 = vst [vmem:[#allocation13 + $0x220] sm:$0xff] %v1019_v6  ;;  %v995_v11 = vmul.f32 %v2474_v7, %v160_v4 }
 0x307   :  { %v877_v13 = vpop.f32.mrf.mxu0  ;;  %2258 = vmatprep.mubr.msk.f32.mxu1 %vm2756_vm0, %v2755_v0 }
 0x308   :  { %2481 = vpow2.f32 %v967_v9  ;;  %v925_v16 = vmul.f32 0.5, %v874_v10  ;;  %1696 = vst [vmem:[#allocation13 + $0x308] sm:$0xff] %v874_v10  ;;  %v3302_v58 = vadd.f32 %v877_v13, %v3140_v1  ;;  %v1020_v17 = vadd.f32 %v995_v11, %v3254_v22 }
 0x309   :  { %v2476_v18 = vpop.eup %2475  ;;  %v879_v19 = vpop.f32.mrf.mxu0 }
 0x30a   :  { %v969_v20 = vmul.f32 1.442695, %v925_v16  ;;  %1697 = vst [vmem:[#allocation13 + $0x328] sm:$0xff] %v3302_v58  ;;  %v880_v23 = vadd.f32 %v879_v19, %v3143_v3  ;;  %2259 = vmatmul.mubr.f32.gmra.mxu1 %v1020_v17  ;;  %1721 = vst [vmem:[#allocation13 + $0x248] sm:$0xff] %v1020_v17  ;;  %v996_v24 = vmul.f32 %v2476_v18, %v161_v15  ;;  %v169_v15 = vld [vmem:[#allocation2 + $0x178] sm:$0xff]  ;;  %v170_v18 = vld [vmem:[#allocation2 + $0x188] sm:$0xff] }
 0x30b   :  { %v883_v25 = vpop.f32.mrf.mxu0  ;;  %2261 = vmatprep.mubr.msk.f32.mxu1 %vm2756_vm0, %v2755_v0 }
 0x30c   :  { %2483 = vpow2.f32 %v969_v20  ;;  %v926_v28 = vmul.f32 0.5, %v880_v23  ;;  %1698 = vst [vmem:[#allocation13 + $0x330] sm:$0xff] %v880_v23  ;;  %v3310_v22 = vadd.f32 %v883_v25, %v3140_v1  ;;  %v1021_v29 = vadd.f32 %v996_v24, %v3262_v12  ;;  %v3352_v25 = vld [vmem:[%s3468_s8] ss:$0 sm:$0xff] }
 0x30d   :  { %v2478_v30 = vpop.eup %2477  ;;  %v885_v32 = vpop.f32.mrf.mxu0 }
 0x30e   :  { %v971_v34 = vmul.f32 1.442695, %v926_v28  ;;  %1699 = vst [vmem:[#allocation13 + $0x350] sm:$0xff] %v3310_v22  ;;  %v886_v35 = vadd.f32 %v885_v32, %v3143_v3  ;;  %2262 = vmatmul.mubr.f32.gmra.mxu1 %v1021_v29  ;;  %1722 = vst [vmem:[#allocation13 + $0x270] sm:$0xff] %v1021_v29  ;;  %v997_v36 = vmul.f32 %v2478_v30, %v162_v27 }
 0x30f   :  { %v889_v37 = vpop.f32.mrf.mxu0  ;;  %2264 = vmatprep.mubr.msk.f32.mxu1 %vm2756_vm0, %v2755_v0 }
 0x310   :  { %2485 = vpow2.f32 %v971_v34  ;;  %v927_v40 = vmul.f32 0.5, %v886_v35  ;;  %1700 = vst [vmem:[#allocation13 + $0x358] sm:$0xff] %v886_v35  ;;  %v3318_v12 = vadd.f32 %v889_v37, %v3140_v1  ;;  %v1022_v42 = vadd.f32 %v997_v36, %v3270_v21 }
 0x311   :  { %v2480_v43 = vpop.eup %2479  ;;  %v891_v44 = vpop.f32.mrf.mxu0 }
 0x312   :  { %v973_v46 = vmul.f32 1.442695, %v927_v40  ;;  %1701 = vst [vmem:[#allocation13 + $0x378] sm:$0xff] %v3318_v12  ;;  %v892_v47 = vadd.f32 %v891_v44, %v3143_v3  ;;  %2265 = vmatmul.mubr.f32.gmra.mxu1 %v1022_v42  ;;  %1723 = vst [vmem:[#allocation13 + $0x298] sm:$0xff] %v1022_v42  ;;  %v998_v48 = vmul.f32 %v2480_v43, %v163_v38 }
 0x313   :  { %v895_v26 = vpop.f32.mrf.mxu0  ;;  %2267 = vmatprep.mubr.msk.f32.mxu1 %vm2756_vm0, %v2755_v0 }
 0x314   :  { %2487 = vpow2.f32 %v973_v46  ;;  %v928_v50 = vmul.f32 0.5, %v892_v47  ;;  %1702 = vst [vmem:[#allocation13 + $0x380] sm:$0xff] %v892_v47  ;;  %v896_v21 = vadd.f32 %v895_v26, %v3140_v1  ;;  %v1023_v39 = vadd.f32 %v998_v48, %v3278_v31 }
 0x315   :  { %v2482_v52 = vpop.eup %2481  ;;  %v897_v45 = vpop.f32.mrf.mxu0 }
 0x316   :  { %v975_v53 = vmul.f32 1.442695, %v928_v50  ;;  %1703 = vst [vmem:[#allocation13 + $0x3a0] sm:$0xff] %v896_v21  ;;  %v898_v54 = vadd.f32 %v897_v45, %v3143_v3  ;;  %2268 = vmatmul.mubr.f32.gmra.mxu1 %v1023_v39  ;;  %1724 = vst [vmem:[#allocation13 + $0x2c0] sm:$0xff] %v1023_v39  ;;  %v999_v55 = vmul.f32 %v2482_v52, %v164_v49 }
 0x317   :  { %v901_v51 = vpop.f32.mrf.mxu0  ;;  %2270 = vmatprep.mubr.msk.f32.mxu1 %vm2756_vm0, %v2755_v0 }
 0x318   :  { %2489 = vpow2.f32 %v975_v53  ;;  %v929_v57 = vmul.f32 0.5, %v898_v54  ;;  %1704 = vst [vmem:[#allocation13 + $0x3a8] sm:$0xff] %v898_v54  ;;  %v902_v59 = vadd.f32 %v901_v51, %v3140_v1  ;;  %v1024_v31 = vadd.f32 %v999_v55, %v3286_v41 }
 0x319   :  { %v2484_v60 = vpop.eup %2483  ;;  %v903_v61 = vpop.f32.mrf.mxu0 }
 0x31a   :  { %v977_v62 = vmul.f32 1.442695, %v929_v57  ;;  %1705 = vst [vmem:[#allocation13 + $0x3c8] sm:$0xff] %v902_v59  ;;  %v904_v63 = vadd.f32 %v903_v61, %v3143_v3  ;;  %2271 = vmatmul.mubr.f32.gmra.mxu1 %v1024_v31  ;;  %1725 = vst [vmem:[#allocation13 + $0x2e8] sm:$0xff] %v1024_v31  ;;  %v1000_v14 = vmul.f32 %v2484_v60, %v165_v56  ;;  %v167_v3 = vld [vmem:[#allocation2 + $0x158] sm:$0xff] }
 0x31b   :  { %2273 = vmatprep.mubr.msk.f32.mxu1 %vm2756_vm0, %v2755_v0 }
 0x31c   :  { %2491 = vpow2.f32 %v977_v62  ;;  %v930_v4 = vmul.f32 0.5, %v904_v63  ;;  %1706 = vst [vmem:[#allocation13 + $0x3d0] sm:$0xff] %v904_v63  ;;  %v1025_v1 = vadd.f32 %v1000_v14, %v3294_v33  ;;  %v168_v33 = vld [vmem:[#allocation2 + $0x168] sm:$0xff] }
 0x31d   :  { %v2486_v5 = vpop.eup %2485 }
 0x31e   :  { %v979_v41 = vmul.f32 1.442695, %v930_v4  ;;  %2274 = vmatmul.mubr.f32.gmra.mxu1 %v1025_v1  ;;  %1726 = vst [vmem:[#allocation13 + $0x310] sm:$0xff] %v1025_v1  ;;  %v1001_v6 = vmul.f32 %v2486_v5, %v166_v2 }
 0x31f   :  { %2276 = vmatprep.mubr.msk.f32.mxu1 %vm2756_vm0, %v2755_v0 }
 0x320   :  { %2493 = vpow2.f32 %v979_v41  ;;  %v1026_v7 = vadd.f32 %v1001_v6, %v3302_v58 }
 0x321   :  { %v2488_v8 = vpop.eup %2487 }
 0x322   :  { %2277 = vmatmul.mubr.f32.gmra.mxu1 %v1026_v7  ;;  %1727 = vst [vmem:[#allocation13 + $0x338] sm:$0xff] %v1026_v7  ;;  %v1002_v9 = vmul.f32 %v2488_v8, %v167_v3 }
 0x323   :  { %2279 = vmatprep.mubr.msk.f32.mxu1 %vm2756_vm0, %v2755_v0 }
 0x324   :  { %v1027_v10 = vadd.f32 %v1002_v9, %v3310_v22 }
 0x325   :  { %v2490_v11 = vpop.eup %2489 }
 0x326   :  { %2280 = vmatmul.mubr.f32.gmra.mxu1 %v1027_v10  ;;  %1728 = vst [vmem:[#allocation13 + $0x360] sm:$0xff] %v1027_v10  ;;  %v1003_v13 = vmul.f32 %v2490_v11, %v168_v33 }
 0x327   :  { %2282 = vmatprep.mubr.msk.f32.mxu1 %vm2756_vm0, %v2755_v0 }
 0x328   :  { %v1028_v16 = vadd.f32 %v1003_v13, %v3318_v12 }
 0x329   :  { %v2492_v58 = vpop.eup %2491 }
 0x32a   :  { %2283 = vmatmul.mubr.f32.gmra.mxu1 %v1028_v16  ;;  %1729 = vst [vmem:[#allocation13 + $0x388] sm:$0xff] %v1028_v16  ;;  %v1004_v17 = vmul.f32 %v2492_v58, %v169_v15 }
 0x32b   :  { %2285 = vmatprep.mubr.msk.f32.mxu1 %vm2756_vm0, %v2755_v0 }
 0x32c   :  { %v1029_v19 = vadd.f32 %v1004_v17, %v896_v21 }
 0x32d   :  { %v2494_v20 = vpop.eup %2493 }
 0x32e   :  { %2286 = vmatmul.mubr.f32.gmra.mxu1 %v1029_v19  ;;  %1730 = vst [vmem:[#allocation13 + $0x3b0] sm:$0xff] %v1029_v19  ;;  %v1005_v23 = vmul.f32 %v2494_v20, %v170_v18 }
 0x32f   :  { %2288 = vmatprep.mubr.msk.f32.mxu1 %vm2756_vm0, %v2755_v0 }
 0x330   :  { %v1030_v24 = vadd.f32 %v1005_v23, %v902_v59 }
 0x332   :  { %2289 = vmatmul.mubr.f32.gmra.mxu1 %v1030_v24  ;;  %1731 = vst [vmem:[#allocation13 + $0x3d8] sm:$0xff] %v1030_v24 }
 0x392   :  { %v1120_v27 = vpop.f32.mrf.mxu1 }
 0x393   :  { %v1121_v28 = vadd.f32 %v3352_v25, %v1120_v27 }
 0x394   :  { %v2218_v22 = vpop.f32.mrf.mxu1 }
 0x395   :  { %v1244_v29 = vmax.f32 %v1121_v28, 0.0 }
 0x396   :  { %v1125_v30 = vpop.f32.mrf.mxu1 }
 0x397   :  { %v1126_v32 = vadd.f32 %v3352_v25, %v1125_v30  ;;  %2324 = vmatmul.mubr.f32.vlgmr.msra.gmra.mxu0 %v1244_v29 }
 0x398   :  { %v2221_v34 = vpop.f32.mrf.mxu1  ;;  %2326 = vmatprep.mubr.msk.f32.mxu0 %vm2756_vm0, %v2755_v0 }
 0x399   :  { %v1245_v35 = vmax.f32 %v1126_v32, 0.0 }
 0x39a   :  { %v1130_v36 = vpop.f32.mrf.mxu1 }
 0x39b   :  { %v1131_v37 = vadd.f32 %v3352_v25, %v1130_v36  ;;  %2327 = vmatmul.mubr.f32.gmra.mxu0 %v1245_v35 }
 0x39c   :  { %v2224_v38 = vpop.f32.mrf.mxu1  ;;  %2329 = vmatprep.mubr.msk.f32.mxu0 %vm2756_vm0, %v2755_v0 }
 0x39d   :  { %v1246_v40 = vmax.f32 %v1131_v37, 0.0 }
 0x39e   :  { %v1135_v12 = vpop.f32.mrf.mxu1 }
 0x39f   :  { %v1136_v42 = vadd.f32 %v3352_v25, %v1135_v12  ;;  %2330 = vmatmul.mubr.f32.gmra.mxu0 %v1246_v40 }
 0x3a0   :  { %v2227_v43 = vpop.f32.mrf.mxu1  ;;  %2332 = vmatprep.mubr.msk.f32.mxu0 %vm2756_vm0, %v2755_v0 }
 0x3a1   :  { %v1247_v44 = vmax.f32 %v1136_v42, 0.0 }
 0x3a2   :  { %v1140_v46 = vpop.f32.mrf.mxu1 }
 0x3a3   :  { %v1141_v47 = vadd.f32 %v3352_v25, %v1140_v46  ;;  %2333 = vmatmul.mubr.f32.gmra.mxu0 %v1247_v44 }
 0x3a4   :  { %v2230_v48 = vpop.f32.mrf.mxu1  ;;  %2335 = vmatprep.mubr.msk.f32.mxu0 %vm2756_vm0, %v2755_v0 }
 0x3a5   :  { %v1248_v26 = vmax.f32 %v1141_v47, 0.0 }
 0x3a6   :  { %v1145_v49 = vpop.f32.mrf.mxu1 }
 0x3a7   :  { %v1146_v50 = vadd.f32 %v3352_v25, %v1145_v49  ;;  %2336 = vmatmul.mubr.f32.gmra.mxu0 %v1248_v26 }
 0x3a8   :  { %v2233_v21 = vpop.f32.mrf.mxu1  ;;  %2338 = vmatprep.mubr.msk.f32.mxu0 %vm2756_vm0, %v2755_v0 }
 0x3a9   :  { %v1249_v39 = vmax.f32 %v1146_v50, 0.0 }
 0x3aa   :  { %v1150_v52 = vpop.f32.mrf.mxu1 }
 0x3ab   :  { %v1151_v45 = vadd.f32 %v3352_v25, %v1150_v52  ;;  %2339 = vmatmul.mubr.f32.gmra.mxu0 %v1249_v39 }
 0x3ac   :  { %v2236_v53 = vpop.f32.mrf.mxu1  ;;  %2341 = vmatprep.mubr.msk.f32.mxu0 %vm2756_vm0, %v2755_v0 }
 0x3ad   :  { %v1250_v54 = vmax.f32 %v1151_v45, 0.0 }
 0x3ae   :  { %v1155_v55 = vpop.f32.mrf.mxu1 }
 0x3af   :  { %v1156_v51 = vadd.f32 %v3352_v25, %v1155_v55  ;;  %2342 = vmatmul.mubr.f32.gmra.mxu0 %v1250_v54 }
 0x3b0   :  { %v2239_v56 = vpop.f32.mrf.mxu1  ;;  %2344 = vmatprep.mubr.msk.f32.mxu0 %vm2756_vm0, %v2755_v0 }
 0x3b1   :  { %v1251_v57 = vmax.f32 %v1156_v51, 0.0 }
 0x3b2   :  { %v1160_v59 = vpop.f32.mrf.mxu1 }
 0x3b3   :  { %v1161_v31 = vadd.f32 %v3352_v25, %v1160_v59  ;;  %2345 = vmatmul.mubr.f32.gmra.mxu0 %v1251_v57 }
 0x3b4   :  { %v2242_v60 = vpop.f32.mrf.mxu1  ;;  %2347 = vmatprep.mubr.msk.f32.mxu0 %vm2756_vm0, %v2755_v0 }
 0x3b5   :  { %v1252_v61 = vmax.f32 %v1161_v31, 0.0 }
 0x3b6   :  { %v1165_v62 = vpop.f32.mrf.mxu1 }
 0x3b7   :  { %v1166_v63 = vadd.f32 %v3352_v25, %v1165_v62  ;;  %2348 = vmatmul.mubr.f32.gmra.mxu0 %v1252_v61 }
 0x3b8   :  { %v2245_v14 = vpop.f32.mrf.mxu1  ;;  %2350 = vmatprep.mubr.msk.f32.mxu0 %vm2756_vm0, %v2755_v0 }
 0x3b9   :  { %v1253_v2 = vmax.f32 %v1166_v63, 0.0  ;;  %v3430_v14 = vld [vmem:[%s3470_s10] ss:$0 sm:$0xff]  ;;  %s2757_s10 = smov [#allocation13]  }
 0x3ba   :  { %v1170_v4 = vpop.f32.mrf.mxu1  ;;  %s1762_s13 = sshll.u32 %s2757_s10, 4  ;;  %s1763_s13 = int_to_ptr.vmem [resolvable:$true] %s1762_s13 }
 0x3bb   :  { %v1171_v1 = vadd.f32 %v3352_v25, %v1170_v4  ;;  %2351 = vmatmul.mubr.f32.gmra.mxu0 %v1253_v2  ;;  %s2715_s1 = scalar_lea.vmem %s1763_s13, 16000  ;;  %p2720_p3 = scmp.lt.s32.totalorder %s1763_s13, %s1763_s13 }
 0x3bc   :  { %v2248_v5 = vpop.f32.mrf.mxu1  ;;  %2353 = vmatprep.mubr.msk.f32.mxu0 %vm2756_vm0, %v2755_v0  ;;  %p2716_p2 = scmp.ne.s32.totalorder %s1763_s13, %s2715_s1  ;;  %p2721_p4 = scmp.lt.s32.totalorder %s2715_s1, %s2715_s1 }
 0x3bd   :  { %v1254_v41 = vmax.f32 %v1171_v1, 0.0 }
 0x3be   :  { %v1175_v6 = vpop.f32.mrf.mxu1  ;;  %p2722_p5 = por %p2721_p4, %p2720_p3 }
 0x3bf   :  { %v1176_v3 = vadd.f32 %v3352_v25, %v1175_v6  ;;  %2354 = vmatmul.mubr.f32.gmra.mxu0 %v1254_v41 }
 0x3c0   :  { %v2251_v7 = vpop.f32.mrf.mxu1  ;;  %2356 = vmatprep.mubr.msk.f32.mxu0 %vm2756_vm0, %v2755_v0  ;;  %p2723_p6 = pnand %p2722_p5, %p2716_p2 }
 0x3c1   :  { %v1255_v8 = vmax.f32 %v1176_v3, 0.0 }
 0x3c2   :  { %v1180_v9 = vpop.f32.mrf.mxu1 }
 0x3c3   :  { %v1181_v33 = vadd.f32 %v3352_v25, %v1180_v9  ;;  %2357 = vmatmul.mubr.f32.gmra.mxu0 %v1255_v8 }
 0x3c4   :  { %v2254_v10 = vpop.f32.mrf.mxu1  ;;  %2359 = vmatprep.mubr.msk.f32.mxu0 %vm2756_vm0, %v2755_v0 }
 0x3c5   :  { %v1256_v11 = vmax.f32 %v1181_v33, 0.0 }
 0x3c6   :  { %v1185_v13 = vpop.f32.mrf.mxu1 }
 0x3c7   :  { %v1186_v15 = vadd.f32 %v3352_v25, %v1185_v13  ;;  %2360 = vmatmul.mubr.f32.gmra.mxu0 %v1256_v11 }
 0x3c8   :  { %v2257_v16 = vpop.f32.mrf.mxu1  ;;  %2362 = vmatprep.mubr.msk.f32.mxu0 %vm2756_vm0, %v2755_v0 }
 0x3c9   :  { %v1257_v58 = vmax.f32 %v1186_v15, 0.0 }
 0x3ca   :  { %v1190_v17 = vpop.f32.mrf.mxu1 }
 0x3cb   :  { %v1191_v18 = vadd.f32 %v3352_v25, %v1190_v17  ;;  %2363 = vmatmul.mubr.f32.gmra.mxu0 %v1257_v58 }
 0x3cc   :  { %v2260_v19 = vpop.f32.mrf.mxu1  ;;  %2365 = vmatprep.mubr.msk.f32.mxu0 %vm2756_vm0, %v2755_v0 }
 0x3cd   :  { %v1258_v20 = vmax.f32 %v1191_v18, 0.0 }
 0x3ce   :  { %v1195_v23 = vpop.f32.mrf.mxu1 }
 0x3cf   :  { %v1196_v24 = vadd.f32 %v3352_v25, %v1195_v23  ;;  %2366 = vmatmul.mubr.f32.gmra.mxu0 %v1258_v20 }
 0x3d0   :  { %v2263_v27 = vpop.f32.mrf.mxu1  ;;  %2368 = vmatprep.mubr.msk.f32.mxu0 %vm2756_vm0, %v2755_v0 }
 0x3d1   :  { %v1259_v28 = vmax.f32 %v1196_v24, 0.0 }
 0x3d2   :  { %v1200_v22 = vpop.f32.mrf.mxu1 }
 0x3d3   :  { %v1201_v29 = vadd.f32 %v3352_v25, %v1200_v22  ;;  %2369 = vmatmul.mubr.f32.gmra.mxu0 %v1259_v28 }
 0x3d4   :  { %v2266_v30 = vpop.f32.mrf.mxu1  ;;  %2371 = vmatprep.mubr.msk.f32.mxu0 %vm2756_vm0, %v2755_v0 }
 0x3d5   :  { %v1260_v32 = vmax.f32 %v1201_v29, 0.0 }
 0x3d6   :  { %v1205_v34 = vpop.f32.mrf.mxu1 }
 0x3d7   :  { %v1206_v35 = vadd.f32 %v3352_v25, %v1205_v34  ;;  %2372 = vmatmul.mubr.f32.gmra.mxu0 %v1260_v32 }
 0x3d8   :  { %v2269_v36 = vpop.f32.mrf.mxu1  ;;  %2374 = vmatprep.mubr.msk.f32.mxu0 %vm2756_vm0, %v2755_v0 }
 0x3d9   :  { %v1261_v37 = vmax.f32 %v1206_v35, 0.0 }
 0x3da   :  { %v1210_v38 = vpop.f32.mrf.mxu1 }
 0x3db   :  { %v1211_v40 = vadd.f32 %v3352_v25, %v1210_v38  ;;  %2375 = vmatmul.mubr.f32.gmra.mxu0 %v1261_v37 }
 0x3dc   :  { %v2272_v12 = vpop.f32.mrf.mxu1  ;;  %2377 = vmatprep.mubr.msk.f32.mxu0 %vm2756_vm0, %v2755_v0 }
 0x3dd   :  { %v1262_v42 = vmax.f32 %v1211_v40, 0.0 }
 0x3de   :  { %v1215_v43 = vpop.f32.mrf.mxu1 }
 0x3df   :  { %v1216_v44 = vadd.f32 %v3352_v25, %v1215_v43  ;;  %2378 = vmatmul.mubr.f32.gmra.mxu0 %v1262_v42 }
 0x3e0   :  { %v2275_v46 = vpop.f32.mrf.mxu1  ;;  %2380 = vmatprep.mubr.msk.f32.mxu0 %vm2756_vm0, %v2755_v0 }
 0x3e1   :  { %v1263_v47 = vmax.f32 %v1216_v44, 0.0 }
 0x3e2   :  { %v1220_v48 = vpop.f32.mrf.mxu1 }
 0x3e3   :  { %v1221_v26 = vadd.f32 %v3352_v25, %v1220_v48  ;;  %2381 = vmatmul.mubr.f32.gmra.mxu0 %v1263_v47 }
 0x3e4   :  { %v2278_v49 = vpop.f32.mrf.mxu1  ;;  %2383 = vmatprep.mubr.msk.f32.mxu0 %vm2756_vm0, %v2755_v0 }
 0x3e5   :  { %v1264_v50 = vmax.f32 %v1221_v26, 0.0 }
 0x3e6   :  { %v1225_v21 = vpop.f32.mrf.mxu1 }
 0x3e7   :  { %v1226_v39 = vadd.f32 %v3352_v25, %v1225_v21  ;;  %2384 = vmatmul.mubr.f32.gmra.mxu0 %v1264_v50 }
 0x3e8   :  { %v2281_v52 = vpop.f32.mrf.mxu1  ;;  %2386 = vmatprep.mubr.msk.f32.mxu0 %vm2756_vm0, %v2755_v0 }
 0x3e9   :  { %v1265_v45 = vmax.f32 %v1226_v39, 0.0 }
 0x3ea   :  { %v1230_v53 = vpop.f32.mrf.mxu1 }
 0x3eb   :  { %v1231_v54 = vadd.f32 %v3352_v25, %v1230_v53  ;;  %2387 = vmatmul.mubr.f32.gmra.mxu0 %v1265_v45 }
 0x3ec   :  { %v2284_v55 = vpop.f32.mrf.mxu1  ;;  %2389 = vmatprep.mubr.msk.f32.mxu0 %vm2756_vm0, %v2755_v0 }
 0x3ed   :  { %v1266_v51 = vmax.f32 %v1231_v54, 0.0 }
 0x3ee   :  { %v1235_v56 = vpop.f32.mrf.mxu1 }
 0x3ef   :  { %v1236_v57 = vadd.f32 %v3352_v25, %v1235_v56  ;;  %2390 = vmatmul.mubr.f32.gmra.mxu0 %v1266_v51 }
 0x3f0   :  { %v2287_v59 = vpop.f32.mrf.mxu1  ;;  %2392 = vmatprep.mubr.msk.f32.mxu0 %vm2756_vm0, %v2755_v0 }
 0x3f1   :  { %v1267_v31 = vmax.f32 %v1236_v57, 0.0 }
 0x3f2   :  { %v1240_v60 = vpop.f32.mrf.mxu1 }
 0x3f3   :  { %v1241_v61 = vadd.f32 %v3352_v25, %v1240_v60  ;;  %2393 = vmatmul.mubr.f32.gmra.mxu0 %v1267_v31 }
 0x3f4   :  { %v2290_v62 = vpop.f32.mrf.mxu1  ;;  %2395 = vmatprep.mubr.msk.f32.mxu0 %vm2756_vm0, %v2755_v0 }
 0x3f5   :  { %v1268_v63 = vmax.f32 %v1241_v61, 0.0 }
 0x3f7   :  { %2396 = vmatmul.mubr.f32.gmra.mxu0 %v1268_v63 }
 0x457   :  { %v1358_v2 = vpop.f32.mrf.mxu0 }
 0x458   :  { %v1359_v4 = vadd.f32 %v3430_v14, %v1358_v2 }
 0x459   :  { %v2325_v1 = vpop.f32.mrf.mxu0 }
 0x45a   :  { %v1781_v5 = vmul.f32 -1.442695, %v1359_v4 }
 0x45b   :  { %v1363_v41 = vpop.f32.mrf.mxu0 }
 0x45c   :  { %2495 = vpow2.f32 %v1781_v5  ;;  %v1364_v25 = vadd.f32 %v3430_v14, %v1363_v41 }
 0x45d   :  { %v2328_v6 = vpop.f32.mrf.mxu0 }
 0x45e   :  { %v1782_v3 = vmul.f32 -1.442695, %v1364_v25 }
 0x45f   :  { %v1368_v7 = vpop.f32.mrf.mxu0 }
 0x460   :  { %2497 = vpow2.f32 %v1782_v3  ;;  %v1369_v0 = vadd.f32 %v3430_v14, %v1368_v7 }
 0x461   :  { %v2331_v8 = vpop.f32.mrf.mxu0 }
 0x462   :  { %v1783_v9 = vmul.f32 -1.442695, %v1369_v0 }
 0x463   :  { %v1373_v33 = vpop.f32.mrf.mxu0 }
 0x464   :  { %2499 = vpow2.f32 %v1783_v9  ;;  %v1374_v10 = vadd.f32 %v3430_v14, %v1373_v33 }
 0x465   :  { %v2334_v11 = vpop.f32.mrf.mxu0 }
 0x466   :  { %v1784_v13 = vmul.f32 -1.442695, %v1374_v10 }
 0x467   :  { %v1378_v15 = vpop.f32.mrf.mxu0 }
 0x468   :  { %2501 = vpow2.f32 %v1784_v13  ;;  %v1379_v16 = vadd.f32 %v3430_v14, %v1378_v15 }
 0x469   :  { %v2496_v58 = vpop.eup %2495  ;;  %v2337_v17 = vpop.f32.mrf.mxu0 }
 0x46a   :  { %v1557_v18 = vadd.f32 1.0, %v2496_v58  ;;  %v1785_v19 = vmul.f32 -1.442695, %v1379_v16 }
 0x46b   :  { %v1383_v20 = vpop.f32.mrf.mxu0 }
 0x46c   :  { %2503 = vrcp.f32 %v1557_v18  ;;  %v1384_v23 = vadd.f32 %v3430_v14, %v1383_v20 }
 0x46d   :  { %v2498_v24 = vpop.eup %2497  ;;  %2505 = vpow2.f32 %v1785_v19  ;;  %v2340_v27 = vpop.f32.mrf.mxu0 }
 0x46e   :  { %v1558_v28 = vadd.f32 1.0, %v2498_v24  ;;  %v1786_v22 = vmul.f32 -1.442695, %v1384_v23 }
 0x46f   :  { %v1388_v29 = vpop.f32.mrf.mxu0 }
 0x470   :  { %2507 = vrcp.f32 %v1558_v28  ;;  %v1389_v30 = vadd.f32 %v3430_v14, %v1388_v29 }
 0x471   :  { %v2500_v32 = vpop.eup %2499  ;;  %2509 = vpow2.f32 %v1786_v22  ;;  %v2343_v34 = vpop.f32.mrf.mxu0 }
 0x472   :  { %v1559_v35 = vadd.f32 1.0, %v2500_v32  ;;  %v1787_v36 = vmul.f32 -1.442695, %v1389_v30 }
 0x473   :  { %v1393_v37 = vpop.f32.mrf.mxu0 }
 0x474   :  { %2511 = vrcp.f32 %v1559_v35  ;;  %v1394_v38 = vadd.f32 %v3430_v14, %v1393_v37 }
 0x475   :  { %v2502_v40 = vpop.eup %2501  ;;  %2513 = vpow2.f32 %v1787_v36  ;;  %v2346_v12 = vpop.f32.mrf.mxu0 }
 0x476   :  { %v1560_v42 = vadd.f32 1.0, %v2502_v40  ;;  %v1788_v43 = vmul.f32 -1.442695, %v1394_v38 }
 0x477   :  { %v1398_v44 = vpop.f32.mrf.mxu0 }
 0x478   :  { %2515 = vrcp.f32 %v1560_v42  ;;  %v1399_v46 = vadd.f32 %v3430_v14, %v1398_v44 }
 0x479   :  { %v2504_v47 = vpop.eup %2503  ;;  %2517 = vpow2.f32 %v1788_v43  ;;  %v2349_v48 = vpop.f32.mrf.mxu0 }
 0x47a   :  { %v2506_v26 = vpop.eup %2505  ;;  %1732 = vst [vmem:[#allocation13 + $0x20] sm:$0xff] %v2504_v47  ;;  %v1789_v49 = vmul.f32 -1.442695, %v1399_v46 }
 0x47b   :  { %v1561_v50 = vadd.f32 1.0, %v2506_v26  ;;  %v1403_v21 = vpop.f32.mrf.mxu0 }
 0x47c   :  { %2519 = vpow2.f32 %v1789_v49  ;;  %v1404_v39 = vadd.f32 %v3430_v14, %v1403_v21 }
 0x47d   :  { %v2508_v52 = vpop.eup %2507  ;;  %2521 = vrcp.f32 %v1561_v50  ;;  %v2352_v45 = vpop.f32.mrf.mxu0 }
 0x47e   :  { %v2510_v53 = vpop.eup %2509  ;;  %1733 = vst [vmem:[#allocation13 + $0x48] sm:$0xff] %v2508_v52  ;;  %v1790_v54 = vmul.f32 -1.442695, %v1404_v39 }
 0x47f   :  { %v1562_v55 = vadd.f32 1.0, %v2510_v53  ;;  %v1408_v51 = vpop.f32.mrf.mxu0 }
 0x480   :  { %2523 = vpow2.f32 %v1790_v54  ;;  %v1409_v56 = vadd.f32 %v3430_v14, %v1408_v51 }
 0x481   :  { %v2512_v57 = vpop.eup %2511  ;;  %2525 = vrcp.f32 %v1562_v55  ;;  %v2355_v59 = vpop.f32.mrf.mxu0 }
 0x482   :  { %v2514_v31 = vpop.eup %2513  ;;  %1734 = vst [vmem:[#allocation13 + $0x70] sm:$0xff] %v2512_v57  ;;  %v1791_v60 = vmul.f32 -1.442695, %v1409_v56 }
 0x483   :  { %v1563_v61 = vadd.f32 1.0, %v2514_v31  ;;  %v1413_v62 = vpop.f32.mrf.mxu0 }
 0x484   :  { %2527 = vpow2.f32 %v1791_v60  ;;  %v1414_v63 = vadd.f32 %v3430_v14, %v1413_v62 }
 0x485   :  { %v2516_v2 = vpop.eup %2515  ;;  %2529 = vrcp.f32 %v1563_v61  ;;  %v2358_v4 = vpop.f32.mrf.mxu0 }
 0x486   :  { %v2518_v1 = vpop.eup %2517  ;;  %1735 = vst [vmem:[#allocation13 + $0x98] sm:$0xff] %v2516_v2  ;;  %v1792_v5 = vmul.f32 -1.442695, %v1414_v63 }
 0x487   :  { %v1564_v41 = vadd.f32 1.0, %v2518_v1  ;;  %v1418_v25 = vpop.f32.mrf.mxu0 }
 0x488   :  { %2531 = vpow2.f32 %v1792_v5  ;;  %v1419_v6 = vadd.f32 %v3430_v14, %v1418_v25 }
 0x489   :  { %v2520_v3 = vpop.eup %2519  ;;  %2533 = vrcp.f32 %v1564_v41  ;;  %v2361_v7 = vpop.f32.mrf.mxu0 }
 0x48a   :  { %v2522_v0 = vpop.eup %2521  ;;  %v1565_v8 = vadd.f32 1.0, %v2520_v3  ;;  %v1793_v9 = vmul.f32 -1.442695, %v1419_v6 }
 0x48b   :  { %1736 = vst [vmem:[#allocation13 + $0xc0] sm:$0xff] %v2522_v0  ;;  %v1423_v33 = vpop.f32.mrf.mxu0 }
 0x48c   :  { %2535 = vrcp.f32 %v1565_v8  ;;  %v1424_v10 = vadd.f32 %v3430_v14, %v1423_v33 }
 0x48d   :  { %v2524_v11 = vpop.eup %2523  ;;  %2537 = vpow2.f32 %v1793_v9  ;;  %v2364_v13 = vpop.f32.mrf.mxu0 }
 0x48e   :  { %v2526_v15 = vpop.eup %2525  ;;  %v1566_v16 = vadd.f32 1.0, %v2524_v11  ;;  %v1794_v58 = vmul.f32 -1.442695, %v1424_v10 }
 0x48f   :  { %1737 = vst [vmem:[#allocation13 + $0xe8] sm:$0xff] %v2526_v15  ;;  %v1428_v17 = vpop.f32.mrf.mxu0 }
 0x490   :  { %2539 = vrcp.f32 %v1566_v16  ;;  %v1429_v18 = vadd.f32 %v3430_v14, %v1428_v17 }
 0x491   :  { %v2528_v19 = vpop.eup %2527  ;;  %2541 = vpow2.f32 %v1794_v58  ;;  %v2367_v20 = vpop.f32.mrf.mxu0 }
 0x492   :  { %v2530_v23 = vpop.eup %2529  ;;  %v1567_v24 = vadd.f32 1.0, %v2528_v19  ;;  %v1795_v27 = vmul.f32 -1.442695, %v1429_v18 }
 0x493   :  { %1738 = vst [vmem:[#allocation13 + $0x110] sm:$0xff] %v2530_v23  ;;  %v1433_v28 = vpop.f32.mrf.mxu0 }
 0x494   :  { %2543 = vrcp.f32 %v1567_v24  ;;  %v1434_v22 = vadd.f32 %v3430_v14, %v1433_v28 }
 0x495   :  { %v2532_v29 = vpop.eup %2531  ;;  %2545 = vpow2.f32 %v1795_v27  ;;  %v2370_v30 = vpop.f32.mrf.mxu0 }
 0x496   :  { %v2534_v32 = vpop.eup %2533  ;;  %v1568_v34 = vadd.f32 1.0, %v2532_v29  ;;  %v1796_v35 = vmul.f32 -1.442695, %v1434_v22 }
 0x497   :  { %1739 = vst [vmem:[#allocation13 + $0x138] sm:$0xff] %v2534_v32  ;;  %v1438_v36 = vpop.f32.mrf.mxu0 }
 0x498   :  { %2547 = vrcp.f32 %v1568_v34  ;;  %v1439_v37 = vadd.f32 %v3430_v14, %v1438_v36 }
 0x499   :  { %v2536_v38 = vpop.eup %2535  ;;  %2549 = vpow2.f32 %v1796_v35  ;;  %v2373_v40 = vpop.f32.mrf.mxu0 }
 0x49a   :  { %v2538_v12 = vpop.eup %2537  ;;  %1740 = vst [vmem:[#allocation13 + $0x160] sm:$0xff] %v2536_v38  ;;  %v1797_v42 = vmul.f32 -1.442695, %v1439_v37 }
 0x49b   :  { %v1569_v43 = vadd.f32 1.0, %v2538_v12  ;;  %v1443_v44 = vpop.f32.mrf.mxu0 }
 0x49c   :  { %2551 = vpow2.f32 %v1797_v42  ;;  %v1444_v46 = vadd.f32 %v3430_v14, %v1443_v44 }
 0x49d   :  { %v2540_v47 = vpop.eup %2539  ;;  %2553 = vrcp.f32 %v1569_v43  ;;  %v2376_v48 = vpop.f32.mrf.mxu0 }
 0x49e   :  { %v2542_v26 = vpop.eup %2541  ;;  %1741 = vst [vmem:[#allocation13 + $0x188] sm:$0xff] %v2540_v47  ;;  %v1798_v49 = vmul.f32 -1.442695, %v1444_v46 }
 0x49f   :  { %v1570_v50 = vadd.f32 1.0, %v2542_v26  ;;  %v1448_v21 = vpop.f32.mrf.mxu0 }
 0x4a0   :  { %2555 = vpow2.f32 %v1798_v49  ;;  %v1449_v39 = vadd.f32 %v3430_v14, %v1448_v21 }
 0x4a1   :  { %v2544_v52 = vpop.eup %2543  ;;  %2557 = vrcp.f32 %v1570_v50  ;;  %v2379_v45 = vpop.f32.mrf.mxu0 }
 0x4a2   :  { %v2546_v53 = vpop.eup %2545  ;;  %1742 = vst [vmem:[#allocation13 + $0x1b0] sm:$0xff] %v2544_v52  ;;  %v1799_v54 = vmul.f32 -1.442695, %v1449_v39 }
 0x4a3   :  { %v1571_v55 = vadd.f32 1.0, %v2546_v53  ;;  %v1453_v51 = vpop.f32.mrf.mxu0 }
 0x4a4   :  { %2559 = vpow2.f32 %v1799_v54  ;;  %v1454_v56 = vadd.f32 %v3430_v14, %v1453_v51 }
 0x4a5   :  { %v2548_v57 = vpop.eup %2547  ;;  %2561 = vrcp.f32 %v1571_v55  ;;  %v2382_v59 = vpop.f32.mrf.mxu0 }
 0x4a6   :  { %v2550_v31 = vpop.eup %2549  ;;  %1743 = vst [vmem:[#allocation13 + $0x1d8] sm:$0xff] %v2548_v57  ;;  %v1800_v60 = vmul.f32 -1.442695, %v1454_v56 }
 0x4a7   :  { %v1572_v61 = vadd.f32 1.0, %v2550_v31  ;;  %v1458_v62 = vpop.f32.mrf.mxu0 }
 0x4a8   :  { %2563 = vpow2.f32 %v1800_v60  ;;  %v1459_v63 = vadd.f32 %v3430_v14, %v1458_v62 }
 0x4a9   :  { %v2552_v2 = vpop.eup %2551  ;;  %2565 = vrcp.f32 %v1572_v61  ;;  %v2385_v4 = vpop.f32.mrf.mxu0 }
 0x4aa   :  { %v2554_v1 = vpop.eup %2553  ;;  %v1573_v5 = vadd.f32 1.0, %v2552_v2  ;;  %v1801_v41 = vmul.f32 -1.442695, %v1459_v63 }
 0x4ab   :  { %1744 = vst [vmem:[#allocation13 + $0x200] sm:$0xff] %v2554_v1  ;;  %v1463_v25 = vpop.f32.mrf.mxu0 }
 0x4ac   :  { %2567 = vrcp.f32 %v1573_v5  ;;  %v1464_v6 = vadd.f32 %v3430_v14, %v1463_v25 }
 0x4ad   :  { %v2556_v3 = vpop.eup %2555  ;;  %2569 = vpow2.f32 %v1801_v41  ;;  %v2388_v7 = vpop.f32.mrf.mxu0 }
 0x4ae   :  { %v2558_v0 = vpop.eup %2557  ;;  %v1574_v8 = vadd.f32 1.0, %v2556_v3  ;;  %v1802_v9 = vmul.f32 -1.442695, %v1464_v6 }
 0x4af   :  { %1745 = vst [vmem:[#allocation13 + $0x228] sm:$0xff] %v2558_v0  ;;  %v1468_v33 = vpop.f32.mrf.mxu0 }
 0x4b0   :  { %2571 = vrcp.f32 %v1574_v8  ;;  %v1469_v10 = vadd.f32 %v3430_v14, %v1468_v33 }
 0x4b1   :  { %v2560_v11 = vpop.eup %2559  ;;  %2573 = vpow2.f32 %v1802_v9  ;;  %v2391_v13 = vpop.f32.mrf.mxu0 }
 0x4b2   :  { %v2562_v15 = vpop.eup %2561  ;;  %v1575_v16 = vadd.f32 1.0, %v2560_v11  ;;  %v1803_v58 = vmul.f32 -1.442695, %v1469_v10 }
 0x4b3   :  { %1746 = vst [vmem:[#allocation13 + $0x250] sm:$0xff] %v2562_v15  ;;  %v1473_v17 = vpop.f32.mrf.mxu0 }
 0x4b4   :  { %2575 = vrcp.f32 %v1575_v16  ;;  %v1474_v18 = vadd.f32 %v3430_v14, %v1473_v17 }
 0x4b5   :  { %v2564_v19 = vpop.eup %2563  ;;  %2577 = vpow2.f32 %v1803_v58  ;;  %v2394_v20 = vpop.f32.mrf.mxu0 }
 0x4b6   :  { %v2566_v23 = vpop.eup %2565  ;;  %v1576_v24 = vadd.f32 1.0, %v2564_v19  ;;  %v1804_v27 = vmul.f32 -1.442695, %v1474_v18 }
 0x4b7   :  { %1747 = vst [vmem:[#allocation13 + $0x278] sm:$0xff] %v2566_v23  ;;  %v1478_v28 = vpop.f32.mrf.mxu0 }
 0x4b8   :  { %2579 = vrcp.f32 %v1576_v24  ;;  %v1479_v22 = vadd.f32 %v3430_v14, %v1478_v28 }
 0x4b9   :  { %v2568_v29 = vpop.eup %2567  ;;  %2581 = vpow2.f32 %v1804_v27  ;;  %v2397_v30 = vpop.f32.mrf.mxu0 }
 0x4ba   :  { %v2570_v32 = vpop.eup %2569  ;;  %1748 = vst [vmem:[#allocation13 + $0x2a0] sm:$0xff] %v2568_v29  ;;  %v1805_v34 = vmul.f32 -1.442695, %v1479_v22 }
 0x4bb   :  { %v1577_v35 = vadd.f32 1.0, %v2570_v32 }
 0x4bc   :  { %2583 = vpow2.f32 %v1805_v34 }
 0x4bd   :  { %v2572_v36 = vpop.eup %2571  ;;  %2585 = vrcp.f32 %v1577_v35 }
 0x4be   :  { %v2574_v37 = vpop.eup %2573  ;;  %1749 = vst [vmem:[#allocation13 + $0x2c8] sm:$0xff] %v2572_v36 }
 0x4bf   :  { %v1578_v38 = vadd.f32 1.0, %v2574_v37 }
 0x4c1   :  { %v2576_v40 = vpop.eup %2575  ;;  %2587 = vrcp.f32 %v1578_v38 }
 0x4c2   :  { %v2578_v12 = vpop.eup %2577  ;;  %1750 = vst [vmem:[#allocation13 + $0x2f0] sm:$0xff] %v2576_v40 }
 0x4c3   :  { %v1579_v42 = vadd.f32 1.0, %v2578_v12 }
 0x4c5   :  { %v2580_v43 = vpop.eup %2579  ;;  %2589 = vrcp.f32 %v1579_v42 }
 0x4c6   :  { %v2582_v14 = vpop.eup %2581  ;;  %1751 = vst [vmem:[#allocation13 + $0x318] sm:$0xff] %v2580_v43 }
 0x4c7   :  { %v1580_v44 = vadd.f32 1.0, %v2582_v14 }
 0x4c9   :  { %v2584_v46 = vpop.eup %2583  ;;  %2591 = vrcp.f32 %v1580_v44 }
 0x4ca   :  { %v2586_v47 = vpop.eup %2585  ;;  %v1581_v48 = vadd.f32 1.0, %v2584_v46 }
 0x4cb   :  { %1752 = vst [vmem:[#allocation13 + $0x340] sm:$0xff] %v2586_v47 }
 0x4cc   :  { %2593 = vrcp.f32 %v1581_v48 }
 0x4ce   :  { %v2588_v26 = vpop.eup %2587 }
 0x4cf   :  { %1753 = vst [vmem:[#allocation13 + $0x368] sm:$0xff] %v2588_v26 }
 0x4d2   :  { %v2590_v49 = vpop.eup %2589 }
 0x4d3   :  { %1754 = vst [vmem:[#allocation13 + $0x390] sm:$0xff] %v2590_v49 }
 0x4d6   :  { %v2592_v50 = vpop.eup %2591 }
 0x4d7   :  { %1755 = vst [vmem:[#allocation13 + $0x3b8] sm:$0xff] %v2592_v50 }
 0x4d9   :  { %v2594_v21 = vpop.eup %2593 }
 0x4da   :  { %1756 = vst [vmem:[#allocation13 + $0x3e0] sm:$0xff] %v2594_v21 }
 0x4db   :  { %2726 = shalt.err (!%p2723_p6)
}
 0x4dc   :  { %s2758_s14 = smov 640   ;;  %s2759_s15 = smov 40  }
 0x4dd   :  { %1768 = dma.vmem_to_hbm [thread:$0]  %s1763_s13, 16000, %s3471_s11, [#allocation4], %s2758_s14, %s2758_s14, %s2759_s15  }
 0x4de   :  { %2743 = dma.done.wait [#allocation4], 16000  }
 0x4df   :  { %2744 = vsyncadd [#allocation4], 4294951296 }
 0x4e0   :  { %1772 = vsyncpa [#allocation3], 1 }
 0x4e1   :  { %1773 = vsyncpa [#allocation6], 1 }
 0x4e2   :  { %1774 = vsyncpa [#allocation9], 1 }
 0x4e3   :  { %1775 = vsyncpa [#allocation12], 1 }
 0x4e4   :  { %1776 = vsyncpa [#allocation4], 1 }

</bundles_post_ra>
